<compile_context>
chip_gen: v7x
topology: tpu7x:2x2x1
jax: 0.10.0
libtpu: 0.0.40
codegen_flags: <defaults>
</compile_context>

<pallas_src>
import math
from functools import partial

import jax
import jax.numpy as jnp
from jax import lax
from jax.experimental import pallas as pl
from jax.experimental.pallas import tpu as pltpu


def _pick_vmem_limit():
    """Generation-aware scoped-VMEM limit: ~75% of physical, capped."""
    default_cap = 64 * 1024 * 1024            # conservative (v7x) fallback
    try:
        info = pltpu.get_tpu_info()
        cap = int(getattr(info, "vmem_capacity_bytes", 0)) or default_cap
    except Exception:                          # defensive: never fail import
        cap = default_cap
    # ~48 MiB on v7x (64 MiB VMEM), ~96 MiB on v5e/v6e (128 MiB VMEM).
    return max(32 * 1024 * 1024, min((cap * 3) // 4, 112 * 1024 * 1024))


_VMEM_LIMIT_BYTES = _pick_vmem_limit()


def _tile(dim, candidates):
    """Largest candidate that divides `dim`, else the full dim (legal but can
    cost VMEM for large odd shapes)."""
    for c in candidates:
        if c <= dim and dim % c == 0:
            return c
    return dim


# ---------------------------------------------------------------------------
# Tiled matmul kernels: (M, K) @ (K, N) [+ (1, N)]
# ---------------------------------------------------------------------------
def _matmul_kernel(x_ref, w_ref, o_ref, acc_ref):
    k = pl.program_id(2)

    @pl.when(k == 0)
    def _():
        acc_ref[...] = jnp.zeros_like(acc_ref)

    acc_ref[...] += jnp.dot(x_ref[...], w_ref[...],
                            preferred_element_type=jnp.float32)

    @pl.when(k == pl.num_programs(2) - 1)
    def _():
        o_ref[...] = acc_ref[...].astype(o_ref.dtype)


def _matmul_bias_kernel(x_ref, w_ref, b_ref, o_ref, acc_ref):
    k = pl.program_id(2)

    @pl.when(k == 0)
    def _():
        acc_ref[...] = jnp.zeros_like(acc_ref)

    acc_ref[...] += jnp.dot(x_ref[...], w_ref[...],
                            preferred_element_type=jnp.float32)

    @pl.when(k == pl.num_programs(2) - 1)
    def _():
        o_ref[...] = (acc_ref[...] + b_ref[...]).astype(o_ref.dtype)


def matmul(x, w, b=None):
    """x: (M, K), w: (K, N), optional b: (1, N) -> (M, N) (f32 accumulate)."""
    M, K = x.shape
    K2, N = w.shape
    assert K == K2
    tm = _tile(M, (512, 256, 128))
    tn = _tile(N, (512, 256, 128))
    tk = _tile(K, (1024, 512, 256, 128))
    grid = (M // tm, N // tn, K // tk)

    in_specs = [
        pl.BlockSpec((tm, tk), lambda i, j, k: (i, k)),
        # weight tiles streamed over (k, j): never fully resident in VMEM
        pl.BlockSpec((tk, tn), lambda i, j, k: (k, j)),
    ]
    # TODO(synk): on v5e, sweep pipeline_mode=pl.Buffered(3) on the weight
    # stream (lowest-HBM-bandwidth generation; exposed k-inner DMA).
    args = (x, w)
    kernel = _matmul_kernel
    if b is not None:
        assert b.shape == (1, N)
        in_specs.append(pl.BlockSpec((1, tn), lambda i, j, k: (0, j)))
        args = (x, w, b)
        kernel = _matmul_bias_kernel

    return pl.pallas_call(
        kernel,
        out_shape=jax.ShapeDtypeStruct((M, N), x.dtype),
        grid_spec=pltpu.PrefetchScalarGridSpec(
            num_scalar_prefetch=0,
            grid=grid,
            in_specs=in_specs,
            out_specs=pl.BlockSpec((tm, tn), lambda i, j, k: (i, j)),
            scratch_shapes=[pltpu.VMEM((tm, tn), jnp.float32)],
        ),
        compiler_params=pltpu.CompilerParams(
            dimension_semantics=("parallel", "parallel", "arbitrary"),
            vmem_limit_bytes=_VMEM_LIMIT_BYTES),
    )(*args)


# ---------------------------------------------------------------------------
# Flash-style causal multi-head attention over packed qkv = (B, T, 3*D)
# ---------------------------------------------------------------------------
def _flash_mhsa_kernel(q_ref, k_ref, v_ref, o_ref, m_sc, l_sc, acc_sc, q_sc,
                       *, scale, tq, tkv):
    qi = pl.program_id(2)
    ki = pl.program_id(3)
    q_start = qi * tq
    k_start = ki * tkv

    @pl.when(ki == 0)
    def _():
        m_sc[...] = jnp.full_like(m_sc, -jnp.inf)
        l_sc[...] = jnp.zeros_like(l_sc)
        acc_sc[...] = jnp.zeros_like(acc_sc)
        # Hoist the 1/sqrt(head_dim) scaling out of the kv loop: q tile is
        # resident across the whole loop, scale it exactly once.
        q_sc[...] = (q_ref[0] * scale).astype(q_sc.dtype)

    def update(apply_mask):
        s = lax.dot_general(q_sc[...], k_ref[0], (((1,), (1,)), ((), ())),
                            preferred_element_type=jnp.float32)  # (tq, tkv)
        if apply_mask:  # only traced into the diagonal-intersecting branch
            row = q_start + lax.broadcasted_iota(jnp.int32, (tq, tkv), 0)
            col = k_start + lax.broadcasted_iota(jnp.int32, (tq, tkv), 1)
            s = jnp.where(col <= row, s, -jnp.inf)
        m_prev = m_sc[...]                                        # (tq, 1)
        m_new = jnp.maximum(m_prev, jnp.max(s, axis=-1, keepdims=True))
        alpha = jnp.exp(m_prev - m_new)
        p = jnp.exp(s - m_new)
        l_sc[...] = alpha * l_sc[...] + jnp.sum(p, axis=-1, keepdims=True)
        acc_sc[...] = alpha * acc_sc[...] + lax.dot_general(
            p.astype(v_ref.dtype), v_ref[0], (((1,), (0,)), ((), ())),
            preferred_element_type=jnp.float32)
        m_sc[...] = m_new

    # Fast path: block entirely below the causal diagonal -> no mask work.
    @pl.when((ki + 1) * tkv <= q_start)
    def _():
        update(apply_mask=False)

    # Diagonal-intersecting block: apply the causal mask only here.
    @pl.when(jnp.logical_and(k_start < q_start + tq,
                             (ki + 1) * tkv > q_start))
    def _():
        update(apply_mask=True)

    # Blocks strictly above the diagonal: neither branch fires (compute skip),
    # and the clamped K/V index maps mean they were never DMA'd either.

    @pl.when(ki == pl.num_programs(3) - 1)
    def _():
        o_ref[0] = (acc_sc[...] *
                    pl.reciprocal(l_sc[...], approx=True)).astype(o_ref.dtype)


def flash_causal_mhsa(qkv, n_heads, *, tq=256, tkv=256):
    """qkv: (B, T, 3*D) packed [q | k | v]; returns merged-head (B, T, D)."""
    B, T, threeD = qkv.shape
    D = threeD // 3
    assert D % n_heads == 0
    hd = D // n_heads
    assert hd % 128 == 0, "head_dim must be a multiple of 128 (lane-dense)"
    tq = _tile(T, (tq, 128))
    tkv = _tile(T, (tkv, 128))
    scale = 1.0 / math.sqrt(hd)
    H = n_heads
    grid = (B, H, T // tq, T // tkv)

    # K/V index maps clamp ki to the last causally-allowed block for this q
    # tile: skipped (fully-masked) grid steps repeat the previous block index,
    # so Pallas issues no new DMA for them.
    def _clamp_kv(qi, ki):
        return jnp.minimum(ki, ((qi + 1) * tq - 1) // tkv)

    q_map = lambda b, h, qi, ki: (b, qi, h)
    k_map = lambda b, h, qi, ki: (b, _clamp_kv(qi, ki), H + h)
    v_map = lambda b, h, qi, ki: (b, _clamp_kv(qi, ki), 2 * H + h)

    # TODO(synk): for very long T, replace the dense (qi, ki) grid with a
    # scalar-prefetched enumeration of only lower-triangular pairs.
    return pl.pallas_call(
        partial(_flash_mhsa_kernel, scale=scale, tq=tq, tkv=tkv),
        out_shape=jax.ShapeDtypeStruct((B, T, D), qkv.dtype),
        grid_spec=pltpu.PrefetchScalarGridSpec(
            num_scalar_prefetch=0,
            grid=grid,
            in_specs=[
                # per-head lane slices of the same packed qkv array
                pl.BlockSpec((1, tq, hd), q_map),
                pl.BlockSpec((1, tkv, hd), k_map),
                pl.BlockSpec((1, tkv, hd), v_map),
            ],
            # head h writes directly into merged-head columns [h*hd, (h+1)*hd)
            out_specs=pl.BlockSpec((1, tq, hd), lambda b, h, qi, ki: (b, qi, h)),
            scratch_shapes=[
                pltpu.VMEM((tq, 1), jnp.float32),    # running max
                pltpu.VMEM((tq, 1), jnp.float32),    # running denom
                pltpu.VMEM((tq, hd), jnp.float32),   # output accumulator
                pltpu.VMEM((tq, hd), qkv.dtype),     # pre-scaled q tile
            ],
        ),
        compiler_params=pltpu.CompilerParams(
            dimension_semantics=("parallel", "parallel", "parallel",
                                 "arbitrary"),
            vmem_limit_bytes=_VMEM_LIMIT_BYTES),
    )(qkv, qkv, qkv)


# ---------------------------------------------------------------------------
# Module forward
# ---------------------------------------------------------------------------
def multi_head_self_attention(x, params, n_heads):
    """x: (B, T, D); params: w_qkv (D, 3D), w_o (D, D), b_o (1, D).

    Weights are stored pre-transposed (in, out), matching x @ W.
    """
    B, T, D = x.shape
    # att_weights has bias=False -> no-bias matmul kernel (no fake zero bias).
    qkv = matmul(x.reshape(B * T, D), params["w_qkv"])
    qkv = qkv.reshape(B, T, 3 * D)
    y = flash_causal_mhsa(qkv, n_heads)                 # (B, T, D) merged heads
    y = matmul(y.reshape(B * T, D), params["w_o"], params["b_o"])
    # TODO(synk): attn_dropout / resid_dropout with p>0 (training) would need
    # in-kernel pltpu.prng_*; identity here (p=0.0 / eval mode).
    return y.reshape(B, T, D)


# ---------------------------------------------------------------------------
# Pure-JAX reference (matches the PyTorch module)
# ---------------------------------------------------------------------------
def mhsa_reference(x, params, n_heads):
    B, T, D = x.shape
    hd = D // n_heads
    qkv = x @ params["w_qkv"]
    q, k, v = jnp.split(qkv, 3, axis=-1)

    def sep(t):
        return t.reshape(B, T, n_heads, hd).transpose(0, 2, 1, 3)

    q, k, v = sep(q), sep(k), sep(v)
    att = jnp.einsum("bhqd,bhkd->bhqk", q, k) / math.sqrt(hd)
    mask = jnp.tril(jnp.ones((T, T), dtype=bool))
    att = jnp.where(mask[None, None], att, -jnp.inf)
    att = jax.nn.softmax(att, axis=-1)
    y = jnp.einsum("bhqk,bhkd->bhqd", att, v)
    y = y.transpose(0, 2, 1, 3).reshape(B, T, D)
    return y @ params["w_o"] + params["b_o"][0]


# ---------------------------------------------------------------------------
if __name__ == "__main__":
    # Make the XLA reference use full-f32 matmuls so the comparison is fair.
    jax.config.update("jax_default_matmul_precision", "highest")

    # Lane-dense shapes: D and head_dim are multiples of 128, and T spans
    # multiple 256-wide q/kv tiles so the online softmax, masked-vs-unmasked
    # block branches, causal block-skip and DMA-clamp paths are all exercised.
    B, T, D, n_heads = 2, 512, 256, 2            # head_dim = 128

    key = jax.random.PRNGKey(0)
    kx, kq, ko, kb = jax.random.split(key, 4)
    x = jax.random.normal(kx, (B, T, D), jnp.float32)
    params = {
        "w_qkv": jax.random.normal(kq, (D, 3 * D), jnp.float32) * 0.02,
        "w_o": jax.random.normal(ko, (D, D), jnp.float32) * 0.02,
        "b_o": jax.random.normal(kb, (1, D), jnp.float32) * 0.02,
    }

    # float32 run, checked tightly against the reference.  (pl.reciprocal
    # approx=True contributes ~1e-3-level relative error by design.)
    y = jax.block_until_ready(multi_head_self_attention(x, params, n_heads))
    ref = mhsa_reference(x, params, n_heads)
    assert y.shape == (B, T, D)
    max_err = float(jnp.max(jnp.abs(y - ref)))
    assert jnp.allclose(y, ref, atol=3e-3, rtol=3e-3), max_err

    # bfloat16 run (f32 accumulation inside the kernels), loose check.
    x16 = x.astype(jnp.bfloat16)
    p16 = {k_: v_.astype(jnp.bfloat16) for k_, v_ in params.items()}
    y16 = jax.block_until_ready(multi_head_self_attention(x16, p16, n_heads))
    assert y16.shape == (B, T, D) and y16.dtype == jnp.bfloat16
    assert jnp.allclose(y16.astype(jnp.float32), ref, atol=7.5e-2, rtol=7.5e-2)

    print("KERNEL_OK")
</pallas_src>

<mosaic_0001>
module attributes {stable_mosaic.version = 11 : i64} {
  func.func @_matmul_kernel(%arg0: i32, %arg1: i32, %arg2: i32, %arg3: memref<512x256xf32, #tpu.memory_space<vmem>>, %arg4: memref<256x256xf32, #tpu.memory_space<vmem>>, %arg5: memref<512x256xf32, #tpu.memory_space<vmem>>, %arg6: memref<512x256xf32, #tpu.memory_space<vmem>>) attributes {dimension_semantics = [#tpu.dimension_semantics<parallel>, #tpu.dimension_semantics<parallel>, #tpu.dimension_semantics<arbitrary>], iteration_bounds = array<i64: 2, 3, 1>, scalar_prefetch = 0 : i64, scratch_operands = 1 : i64, tpu.core_type = #tpu.core_type<tc>, window_params = [{transform_indices = @transform_0, window_bounds = array<i64: 512, 256>}, {transform_indices = @transform_1, window_bounds = array<i64: 256, 256>}, {transform_indices = @transform_2, window_bounds = array<i64: 512, 256>}]} {
    %c0_i32 = arith.constant 0 : i32
    %0 = arith.cmpi eq, %arg2, %c0_i32 : i32
    %1 = arith.extui %0 : i1 to i32
    %c0_i32_0 = arith.constant 0 : i32
    %2 = arith.cmpi ne, %1, %c0_i32_0 : i32
    scf.if %2 {
      %cst_10 = arith.constant 0.000000e+00 : f32
      %12 = vector.broadcast %cst_10 : f32 to vector<512x256xf32>
      %c0_11 = arith.constant 0 : index
      %c0_12 = arith.constant 0 : index
      %13 = vector.load %arg6[%c0_11, %c0_12] : memref<512x256xf32, #tpu.memory_space<vmem>>, vector<512x256xf32>
      tpu.vector_store %arg6[%c0_11, %c0_12], %12 {strides = array<i32>} : memref<512x256xf32, #tpu.memory_space<vmem>>, vector<512x256xf32>,
    } else {
    }
    %c0 = arith.constant 0 : index
    %c0_1 = arith.constant 0 : index
    %3 = vector.load %arg6[%c0, %c0_1] : memref<512x256xf32, #tpu.memory_space<vmem>>, vector<512x256xf32>
    %c0_2 = arith.constant 0 : index
    %c0_3 = arith.constant 0 : index
    %4 = vector.load %arg3[%c0_2, %c0_3] : memref<512x256xf32, #tpu.memory_space<vmem>>, vector<512x256xf32>
    %c0_4 = arith.constant 0 : index
    %c0_5 = arith.constant 0 : index
    %5 = vector.load %arg4[%c0_4, %c0_5] : memref<256x256xf32, #tpu.memory_space<vmem>>, vector<256x256xf32>
    %cst = arith.constant dense<0.000000e+00> : vector<512x256xf32>
    %6 = tpu.matmul %4, %5, %cst {dimension_numbers = #tpu.dot_dimension_numbers<[1], [0], [0], [1], [0, 0, 1, 1], [], []>, precision = #tpu.contract_precision<fp32>} : vector<512x256xf32>, vector<256x256xf32>, vector<512x256xf32> -> vector<512x256xf32>
    %7 = arith.addf %3, %6 : vector<512x256xf32>
    %c0_6 = arith.constant 0 : index
    %c0_7 = arith.constant 0 : index
    %8 = vector.load %arg6[%c0_6, %c0_7] : memref<512x256xf32, #tpu.memory_space<vmem>>, vector<512x256xf32>
    tpu.vector_store %arg6[%c0_6, %c0_7], %7 {strides = array<i32>} : memref<512x256xf32, #tpu.memory_space<vmem>>, vector<512x256xf32>,
    %c0_i32_8 = arith.constant 0 : i32
    %9 = arith.cmpi eq, %arg2, %c0_i32_8 : i32
    %10 = arith.extui %9 : i1 to i32
    %c0_i32_9 = arith.constant 0 : i32
    %11 = arith.cmpi ne, %10, %c0_i32_9 : i32
    scf.if %11 {
      %c0_10 = arith.constant 0 : index
      %c0_11 = arith.constant 0 : index
      %12 = vector.load %arg6[%c0_10, %c0_11] : memref<512x256xf32, #tpu.memory_space<vmem>>, vector<512x256xf32>
      %c0_12 = arith.constant 0 : index
      %c0_13 = arith.constant 0 : index
      %13 = vector.load %arg5[%c0_12, %c0_13] : memref<512x256xf32, #tpu.memory_space<vmem>>, vector<512x256xf32>
      tpu.vector_store %arg5[%c0_12, %c0_13], %12 {strides = array<i32>} : memref<512x256xf32, #tpu.memory_space<vmem>>, vector<512x256xf32>,
    } else {
    }
    return
  }
  func.func @transform_0(%arg0: i32, %arg1: i32, %arg2: i32) -> (i32, i32) {
    %c0_i32 = arith.constant 0 : i32
    return %arg0, %arg2 : i32, i32
  }
  func.func @transform_1(%arg0: i32, %arg1: i32, %arg2: i32) -> (i32, i32) {
    %c0_i32 = arith.constant 0 : i32
    return %arg2, %arg1 : i32, i32
  }
  func.func @transform_2(%arg0: i32, %arg1: i32, %arg2: i32) -> (i32, i32) {
    %c0_i32 = arith.constant 0 : i32
    return %arg0, %arg1 : i32, i32
  }
}

</mosaic_0001>

<bundles_post_ra>
// kernel: tpu_custom_call.1
= control target key start
LH: loop header
LB: loop body
LE: loop exit
PB: predicated region body
PF: predicated region fallthrough
CT: control target
= control target key end

     0   :  { %s11398_s0 = inlined_call_operand.hbm [shape: f32[1024,256], index: 0, kind: input, shape index: {}]   ;;  %s11399_s1 = inlined_call_operand.hbm [shape: f32[256,768], index: 1, kind: input, shape index: {}]   ;;  %s11400_s2 = inlined_call_operand.hbm [shape: f32[1024,768], index: 2, kind: output, shape index: {}]  }
   0x1   :  { %11989 = sst [smem:[#allocation335_spill]] %s11398_s0 }
   0x2   :  { %11990 = sst [smem:[#allocation336_spill]] %s11400_s2 }
   0x3   :  { %7 = vsyncpa [#allocation4], 0 }
   0x4   :  { %9 = vsyncpa [#allocation4 + $0x1], 0 }
   0x5   :  { %10 = vsyncpa [#allocation7], 0 }
   0x6   :  { %12 = vsyncpa [#allocation7 + $0x1], 0 }
   0x7   :  { %13 = vsyncpa [#allocation5], 0 }
   0x8   :  { %15 = vsyncpa [#allocation5 + $0x1], 0  ;;  %s7955_s9 = smov 0   ;;  %s7957_s10 = smov 0  }
   0x9   :  { %s7959_s11 = smov 0   ;;  %s7961_s12 = smov 0  }
   0xa   :  { %s7963_s13 = smov 0   ;;  %s7965_s14 = smov 0  }
   0xb   :  { %s7967_s15 = smov 0   ;;  %s7969_s16 = smov 0  }
   0xc   :  { %s7971_s17 = smov 0   ;;  %s7973_s18 = smov 0  }
   0xd   :  { %s7975_s19 = smov 0   ;;  %s7977_s20 = smov 0  }
   0xe   :  { %s7979_s21 = smov 0   ;;  %s7981_s22 = smov 0  }
   0xf LB: > { %11991 = sst [smem:[#allocation12_spill]] %s7913_s18  ;;  %s6532_s23 = sadd.s32 4294967295, %s7929_s22   ;;  %s7929_s22 = sphi %s7981_s22, %s21_s22   ;;  %s7925_s21 = sphi %s7979_s21, %s13022_s21   ;;  %s7921_s20 = sphi %s7977_s20, %s13033_s20   ;;  %s7917_s19 = sphi %s7975_s19, %s13020_s19   ;;  %s7913_s18 = sphi %s7973_s18, %s13032_s18   ;;  %s7909_s17 = sphi %s7971_s17, %s13031_s17   ;;  %s7905_s16 = sphi %s7969_s16, %s13030_s16   ;;  %s7901_s15 = sphi %s7967_s15, %s13029_s15   ;;  %s7897_s14 = sphi %s7965_s14, %s13028_s14   ;;  %s7893_s13 = sphi %s7963_s13, %s13027_s13   ;;  %s7889_s12 = sphi %s7961_s12, %s13026_s12   ;;  %s7885_s11 = sphi %s7959_s11, %s13025_s11   ;;  %s7881_s10 = sphi %s7957_s10, %s13024_s10   ;;  %s7877_s9 = sphi %s7955_s9, %s13023_s9  }
  0x10   : > { %11992 = sst [smem:[#allocation13_spill]] %s7925_s21  ;;  %s40_s24 = sadd.s32 1, %s7925_s21 }
  0x11   : > { %p56_p0 = scmp.ne.s32.totalorder %s7909_s17, %s7905_s16  ;;  %p11402_p1 = scmp.eq.s32.totalorder %s7929_s22, 0 }
  0x12   : > { %p62_p2 = scmp.ne.s32.totalorder %s7905_s16, %s7901_s15  ;;  %p8030_p3 = scmp.eq.s32.totalorder %s6532_s23, 0 }
  0x13   : > { %p8034_p4 = scmp.eq.s32.totalorder %s6532_s23, 5  ;;  %p58_p5 = por %p11402_p1, %p56_p0 }
  0x14   : > { %p8042_p6 = por %p8030_p3, %p62_p2  ;;  %p11401_p7 = scmp.lt.s32.totalorder %s7929_s22, 6 }
  0x15   : > { %s11994_s27 = scalar_select %p8034_p4, 1, 0 }
  0x16   : > { %s11995_s28 = scalar_select %p8042_p6, 1, 0 }
  0x17   : > { %s142_s29 = sand.u32 1, %s7909_s17   ;;  %s6555_s30 = sshll.u32 %s7925_s21, 14 }
  0x18   : > { %s6536_s3 = sshll.u32 %s142_s29, 10  ;;  %s11996_s0 = sld [smem:[#allocation335_spill]] }
  0x19   : > { %s146_s7 = scalar_lea.vmem [#allocation3], %s6536_s3  ;;  %p8056_p8 = pnand %p11401_p7, %p58_p5 }
  0x1a   : > { %s156_s8 = sshll.u32 %s146_s7, 4  ;;  %s8062_s23 = scalar_lea.sflag [#allocation4], %s142_s29  ;;  %s8060_s8 = int_to_ptr.vmem [resolvable:$true] %s156_s8 }
  0x1b   : > { %p7721_p10 = pneg %p8056_p8 }
  0x1e   : > { %s8052_s6 = scalar_lea.hbm %s11996_s0, %s6555_s30  ;;  %s7724_s5 = scalar_lea.hbm %s11996_s0, 32768 }
  0x1f   : > { %s7719_s4 = scalar_lea.hbm %s8052_s6, 16384  ;;  %p7725_p13 = scmp.lt.u32.totalorder %s8052_s6, %s11996_s0 }
  0x20   : > { %p7720_p9 = scmp.ne.s32.totalorder %s8052_s6, %s7719_s4  ;;  %p7726_p0 = scmp.lt.u32.totalorder %s7724_s5, %s7719_s4 }
  0x21   : > { %p7728_p5 = scmp.lt.u32.totalorder %s7719_s4, %s8052_s6 }
  0x22   : > { %p7722_p11 = pnand %p7721_p10, %p7720_p9  ;;  %p7727_p2 = por %p7726_p0, %p7725_p13 }
  0x24   : > { %p7723_p12 = pneg %p7722_p11  ;;  %p7729_p7 = por %p7728_p5, %p7727_p2 }
  0x26   : > { %p7730_p1 = pnand %p7729_p7, %p7723_p12 }
  0x28   : > { %7733 = shalt.err (!%p7730_p1)
}
  0x29   : > { %s7734_s29 = scalar_lea.vmem %s8060_s8, 16384  ;;  %s7931_s30 = smov [#allocation3]  }
  0x2a   : > { %p7735_p9 = scmp.ne.s32.totalorder %s8060_s8, %s7734_s29  ;;  %s7739_s3 = sshll.u32 %s7931_s30, 4  ;;  %s7740_s3 = int_to_ptr.vmem [resolvable:$false] %s7739_s3 }
  0x2b   : > { %s7741_s25 = scalar_lea.vmem %s7740_s3, 32768  ;;  %p7742_p4 = scmp.lt.s32.totalorder %s8060_s8, %s7740_s3 }
  0x2c   : > { %p7737_p11 = pnand %p7735_p9, %p7721_p10  ;;  %p7743_p13 = scmp.lt.s32.totalorder %s7741_s25, %s7734_s29 }
  0x2e   : > { %p7738_p6 = pneg %p7737_p11  ;;  %p7744_p0 = por %p7743_p13, %p7742_p4 }
  0x30   : > { %p7745_p2 = pnand %p7744_p0, %p7738_p6 }
  0x32   : > { %7748 = shalt.err (!%p7745_p2)
}
  0x33   : > { %s11404_s4 = smov 256   ;;  %s11405_s5 = smov 16  }
  0x34   : > { %7591 = dma.hbm_to_vmem [thread:$0]  (!%p8056_p8), %s8052_s6, 16384, %s8060_s8, %s8062_s23, %s11404_s4, %s11404_s4, %s11405_s5  }
  0x35   : > { %p6543_p1 = scmp.ge.s32.totalorder %s7929_s22, 1  ;;  %p188_p4 = scmp.lt.s32.totalorder %s7929_s22, 7 }
  0x36   : > { %s6533_s29 = sadd.s32 4294967294, %s7929_s22   ;;  %s36_s30 = sadd.s32 1, %s7921_s20 }
  0x37   : > { %p8095_p6 = pnand %p6543_p1, %p188_p4  ;;  %s77_s3 = sadd.s32 1, %s7897_s14 }
  0x38   : > { %p38_p7 = scmp.ge.s32.totalorder %s36_s30, 3  ;;  %p84_p10 = scmp.ne.s32.totalorder %s7897_s14, %s7893_s13 }
  0x39   : > { %p90_p12 = scmp.ne.s32.totalorder %s7893_s13, %s7889_s12  ;;  %s105_s15 = sadd.s32 1, %s7885_s11 }
  0x3a   : > { %s13035_s30 = smov (%p38_p7, %s36_s30), 0  ;;  %s13037_s24 = smov (!%p38_p7, %s40_s24), %s7925_s21 }
  0x3b   : > { %11999 = sst [smem:[#allocation14_spill]] %s13035_s30  ;;  %s73_s6 = ssub.s32 %s7921_s20, %s13035_s30 }
  0x3c   : > { %p12000_p8 = scmp.eq.s32.totalorder %s7929_s22, 0  ;;  %p42_p9 = scmp.ge.s32.totalorder %s13037_s24, 2 }
  0x3d   : > { %p75_p11 = scmp.eq.s32.totalorder %s73_s6, 0  ;;  %p8122_p13 = por %p90_p12, %p8030_p3 }
  0x3e   : > { %p8116_p5 = por %p84_p10, %p12000_p8  ;;  %p115_p0 = scmp.ne.s32.totalorder %s7885_s11, %s7881_s10 }
  0x3f   : > { %s12002_s12 = scalar_select %p8122_p13, 1, 0 }
  0x40   : > { %s13039_s24 = smov (%p42_p9, %s13037_s24), 0  ;;  %p12005_p2 = scmp.ne.s32.totalorder %s11994_s27, 0 }
  0x41   : > { %12003 = sst [smem:[#allocation15_spill]] %s13039_s24  ;;  %s44_s25 = ssub.s32 %s7925_s21, %s13039_s24 }
  0x42   : > { %s8131_s23 = scalar_select %p75_p11, %s7897_s14, %s77_s3  }
  0x43   : > { %p8137_p1 = por %p12005_p2, %p115_p0  ;;  %p47_p4 = scmp.eq.s32.totalorder %s44_s25, 0 }
  0x44   : > { %12004 = sst [smem:[#allocation16_spill]] %s8131_s23  ;;  %s102_s26 = sor.u32 %s73_s6, %s44_s25 }
  0x45   : > { %s12006_s4 = scalar_select %p8137_p1, 1, 0 }
  0x46   : > { %p103_p3 = scmp.eq.s32.totalorder %s102_s26, 0  ;;  %p121_p7 = scmp.ne.s32.totalorder %s7881_s10, %s7877_s9 }
  0x47   : > { %12007 = sst [smem:[#allocation17_spill]] %s12006_s4  ;;  %s12008_s5 = sadd.s32 1, %s7909_s17 }
  0x48   : > { %s8146_s0 = scalar_select %p47_p4, %s7909_s17, %s12008_s5  }
  0x49   : > { %s8149_s30 = scalar_select %p103_p3, %s7885_s11, %s105_s15  }
  0x4a   : > { %p122_p10 = scmp.eq.s32.totalorder %s6533_s29, 5  ;;  %s166_s3 = sand.u32 1, %s7897_s14  }
  0x4b   : > { %s6540_s23 = sshll.u32 %s166_s3, 9  ;;  %s6556_s24 = sshll.u32 %s7921_s20, 8 }
  0x4c   : > { %p8152_p12 = por %p122_p10, %p121_p7  ;;  %s170_s21 = scalar_lea.vmem [#allocation6], %s6540_s23 }
  0x4d   : > { %s180_s2 = sshll.u32 %s170_s21, 4  ;;  %s8160_s6 = scalar_lea.hbm %s11399_s1, %s6556_s24  ;;  %s8162_s2 = int_to_ptr.vmem [resolvable:$true] %s180_s2 }
  0x4e   : > { %s12009_s27 = scalar_select %p8152_p12, 1, 0 }
  0x4f   : > { %p12010_p8 = scmp.lt.s32.totalorder %s7929_s22, 6  ;;  %s8172_s21 = scalar_lea.sflag [#allocation7], %s166_s3 }
  0x50   : > { %s7749_s29 = scalar_lea.hbm %s8160_s6, 8192  ;;  %s7754_s4 = scalar_lea.hbm %s11399_s1, 24576 }
  0x51   : > { %p8168_p9 = pnand %p12010_p8, %p8116_p5  ;;  %p7750_p11 = scmp.ne.s32.totalorder %s8160_s6, %s7749_s29 }
  0x52   : > { %p7755_p5 = scmp.lt.u32.totalorder %s8160_s6, %s11399_s1  ;;  %p7756_p3 = scmp.lt.u32.totalorder %s7754_s4, %s7749_s29 }
  0x53   : > { %p7751_p0 = pneg %p8168_p9  ;;  %p7758_p10 = scmp.lt.u32.totalorder %s7749_s29, %s8160_s6 }
  0x54   : > { %p7757_p7 = por %p7756_p3, %p7755_p5 }
  0x55   : > { %p7752_p2 = pnand %p7751_p0, %p7750_p11 }
  0x56   : > { %p7759_p8 = por %p7758_p10, %p7757_p7 }
  0x57   : > { %p7753_p4 = pneg %p7752_p2 }
  0x59   : > { %p7760_p12 = pnand %p7759_p8, %p7753_p4 }
  0x5b   : > { %7763 = shalt.err (!%p7760_p12)
}
  0x5c   : > { %s7764_s23 = scalar_lea.vmem %s8162_s2, 8192  ;;  %s7934_s25 = smov [#allocation6]  }
  0x5d   : > { %p7765_p11 = scmp.ne.s32.totalorder %s8162_s2, %s7764_s23  ;;  %s7769_s26 = sshll.u32 %s7934_s25, 4  ;;  %s7770_s26 = int_to_ptr.vmem [resolvable:$false] %s7769_s26 }
  0x5e   : > { %s7771_s3 = scalar_lea.vmem %s7770_s26, 16384  ;;  %p7772_p13 = scmp.lt.s32.totalorder %s8162_s2, %s7770_s26 }
  0x5f   : > { %p7767_p2 = pnand %p7765_p11, %p7751_p0  ;;  %p7773_p5 = scmp.lt.s32.totalorder %s7771_s3, %s7764_s23 }
  0x61   : > { %p7768_p1 = pneg %p7767_p2  ;;  %p7774_p3 = por %p7773_p5, %p7772_p13 }
  0x63   : > { %p7775_p7 = pnand %p7774_p3, %p7768_p1 }
  0x65   : > { %7778 = shalt.err (!%p7775_p7)
}
  0x66   : > { %s7935_s29 = smov 768   ;;  %s12012_s18 = smov 16  }
  0x67   : > { %s12013_s24 = smov 256   ;;  %192 = sbr.rel (%p8095_p6) target bundleno = 1207 (0x4b7), region = 28 }
  0x68   : > { %7594 = dma.hbm_to_vmem [thread:$0]  (!%p8168_p9), %s8160_s6, 8192, %s8162_s2, %s8172_s21, %s7935_s29, %s12013_s24, %s12012_s18  }
  0x6e   : > { %s194_s4 = sand.u32 1, %s7905_s16   ;;  %p12014_p13 = scmp.ne.s32.totalorder %s11995_s28, 0 }
  0x6f   : > { %s6544_s15 = sshll.u32 %s194_s4, 10  ;;  %s195_s8 = scalar_lea.sflag [#allocation4], %s194_s4 }
  0x70   : > { %s8205_s23 = scalar_lea.vmem [#allocation3], %s6544_s15 }
  0x71   : > { %7864 = dma.done.wait (%p12014_p13), %s195_s8, 16384  }
  0x72   : > { %7866 = vsyncadd (%p12014_p13), %s195_s8, 4294950912  ;;  %s203_s5 = sand.u32 1, %s7893_s13   ;;  %p12015_p6 = scmp.ne.s32.totalorder %s12002_s12, 0 }
  0x73   : > { %s6545_s25 = sshll.u32 %s203_s5, 9  ;;  %s204_s2 = scalar_lea.sflag [#allocation7], %s203_s5 }
  0x74   : > { %s8212_s6 = scalar_lea.vmem [#allocation6], %s6545_s25 }
  0x75   : > { %7868 = dma.done.wait (%p12015_p6), %s204_s2, 8192  }
  0x76   : > { %7870 = vsyncadd (%p12015_p6), %s204_s2, 4294959104  ;;  %v8219_v0 = vld [vmem:[%s8212_s6 + $0x8] sm:$0xff]  ;;  %v8222_v1 = vld [vmem:[%s8212_s6 + $0x18] sm:$0xff]  ;;  %s230_s28 = sand.u32 1, %s7881_s10   ;;  %s13013_s21 = sld [smem:[#allocation12_spill]] }
  0x77   : > { %v8225_v2 = vld [vmem:[%s8212_s6] sm:$0xff]  ;;  %v11425_v3 = vand.u32 4294901760, %v8219_v0  ;;  %v11424_v4 = vand.u32 4294901760, %v8222_v1  ;;  %v8230_v5 = vld [vmem:[%s8212_s6 + $0x10] sm:$0xff]  ;;  %v8234_v7 = vld [vmem:[%s8212_s6 + $0x28] sm:$0xff]  ;;  %s6546_s7 = sshll.u32 %s230_s28, 10 }
  0x78   : > { %v11423_v6 = vand.u32 4294901760, %v8225_v2  ;;  %v8237_v8 = vld [vmem:[%s8212_s6 + $0x38] sm:$0xff]  ;;  %v11422_v9 = vand.u32 4294901760, %v8230_v5  ;;  %v11421_v10 = vand.u32 4294901760, %v8234_v7  ;;  %v8243_v12 = vld [vmem:[%s8212_s6 + $0x20] sm:$0xff]  ;;  %v8246_v13 = vld [vmem:[%s8212_s6 + $0x30] sm:$0xff] }
  0x79   : > { %v11420_v11 = vand.u32 4294901760, %v8237_v8  ;;  %v8249_v14 = vld [vmem:[%s8212_s6 + $0x48] sm:$0xff]  ;;  %v8255_v15 = vpack.c.bf16 %v11424_v4, %v11425_v3  ;;  %v8258_v16 = vld [vmem:[%s8212_s6 + $0x58] sm:$0xff]  ;;  %v8261_v17 = vld [vmem:[%s8212_s6 + $0x40] sm:$0xff]  ;;  %v11419_v23 = vand.u32 4294901760, %v8243_v12  ;;  %v11418_v24 = vand.u32 4294901760, %v8246_v13 }
  0x7a   : > { %v8264_v18 = vld [vmem:[%s8212_s6 + $0x50] sm:$0xff]  ;;  %v8270_v19 = vpack.c.bf16 %v11422_v9, %v11423_v6  ;;  %v640_v21 = vld [vmem:[%s8212_s6 + $0x68] sm:$0xff]  ;;  %v642_v22 = vld [vmem:[%s8212_s6 + $0x78] sm:$0xff]  ;;  %v11417_v25 = vand.u32 4294901760, %v8249_v14  ;;  %v11416_v26 = vand.u32 4294901760, %v8258_v16  ;;  %v11415_v27 = vand.u32 4294901760, %v8261_v17 }
  0x7b   : > { %12016 = vst [vmem:[#allocation18_spill] sm:$0xff] %v8255_v15  ;;  %v8276_v20 = vpack.c.bf16 %v11420_v11, %v11421_v10  ;;  %6558 = vmatprep.subr.bf16.mxu1 %v8255_v15  ;;  %6750 = vmatprep.subr.bf16.mxu0 %v8255_v15  ;;  %v11414_v28 = vand.u32 4294901760, %v8264_v18  ;;  %v8296_v29 = vpack.c.bf16 %v11418_v24, %v11419_v23  ;;  %v715_v30 = vand.u32 4294901760, %v640_v21  ;;  %v639_v32 = vld [vmem:[%s8212_s6 + $0x60] sm:$0xff]  ;;  %v641_v33 = vld [vmem:[%s8212_s6 + $0x70] sm:$0xff]  ;;  %v644_v34 = vld [vmem:[%s8212_s6 + $0x88] sm:$0xff] }
  0x7c   : > { %12017 = vst [vmem:[#allocation19_spill] sm:$0xff] %v8270_v19  ;;  %6560 = vmatpush1.bf16.msra.mxu1 %v8270_v19  ;;  %6752 = vmatpush1.bf16.msra.mxu0 %v8270_v19  ;;  %v719_v31 = vand.u32 4294901760, %v642_v22  ;;  %v8305_v35 = vpack.c.bf16 %v11416_v26, %v11417_v25  ;;  %v646_v36 = vld [vmem:[%s8212_s6 + $0x98] sm:$0xff]  ;;  %v643_v37 = vld [vmem:[%s8212_s6 + $0x80] sm:$0xff]  ;;  %v645_v38 = vld [vmem:[%s8212_s6 + $0x90] sm:$0xff]  ;;  %v717_v43 = vand.u32 4294901760, %v639_v32 }
  0x7d   : > { %12018 = vst [vmem:[#allocation20_spill] sm:$0xff] %v8276_v20  ;;  %6562 = vmatprep.subr.bf16.mxu1 %v8276_v20  ;;  %6754 = vmatprep.subr.bf16.mxu0 %v8276_v20  ;;  %12019 = vst [vmem:[#allocation21_spill] sm:$0xff] %v8296_v29  ;;  %v8314_v39 = vpack.c.bf16 %v11414_v28, %v11415_v27  ;;  %v8316_v40 = vsub.f32 %v640_v21, %v715_v30  ;;  %v648_v41 = vld [vmem:[%s8212_s6 + $0xa8] sm:$0xff]  ;;  %v721_v44 = vand.u32 4294901760, %v641_v33  ;;  %v650_v50 = vld [vmem:[%s8212_s6 + $0xb8] sm:$0xff]  ;;  %s11142_s12 = scalar_lea.vmem [#allocation8], %s6546_s7 }
  0x7e   : > { %12020 = vst [vmem:[#allocation22_spill] sm:$0xff] %v8305_v35  ;;  %v8321_v42 = vsub.f32 %v642_v22, %v719_v31  ;;  %v723_v45 = vand.u32 4294901760, %v644_v34  ;;  %v8325_v46 = vpack.c.bf16 %v719_v31, %v715_v30  ;;  %v727_v47 = vand.u32 4294901760, %v646_v36  ;;  %v647_v51 = vld [vmem:[%s8212_s6 + $0xa0] sm:$0xff]  ;;  %v649_v56 = vld [vmem:[%s8212_s6 + $0xb0] sm:$0xff]  ;;  %v652_v57 = vld [vmem:[%s8212_s6 + $0xc8] sm:$0xff] }
  0x7f   : > { %12021 = vst [vmem:[#allocation23_spill] sm:$0xff] %v8314_v39  ;;  %v725_v48 = vand.u32 4294901760, %v643_v37  ;;  %v729_v49 = vand.u32 4294901760, %v645_v38  ;;  %v8329_v52 = vsub.f32 %v639_v32, %v717_v43  ;;  %v8331_v53 = vsub.f32 %v641_v33, %v721_v44  ;;  %v654_v61 = vld [vmem:[%s8212_s6 + $0xd8] sm:$0xff]  ;;  %v8345_v62 = vld [vmem:[%s8212_s6 + $0xc0] sm:$0xff]  ;;  %v8354_v31 = vld [vmem:[%s8212_s6 + $0xd0] sm:$0xff] }
  0x80   : > { %6564 = vmatpush1.bf16.msra.mxu1 %v8296_v29  ;;  %6756 = vmatpush1.bf16.msra.mxu0 %v8296_v29  ;;  %12022 = vst [vmem:[#allocation24_spill] sm:$0xff] %v8325_v46  ;;  %v8333_v54 = vsub.f32 %v644_v34, %v723_v45  ;;  %v731_v55 = vand.u32 4294901760, %v648_v41  ;;  %v8337_v58 = vpack.c.bf16 %v721_v44, %v717_v43  ;;  %v735_v21 = vand.u32 4294901760, %v650_v50  ;;  %v8369_v44 = vld [vmem:[%s8212_s6 + $0xf8] sm:$0xff]  ;;  %v8372_v28 = vld [vmem:[%s8212_s6 + $0xe0] sm:$0xff]  ;;  %v8380_v26 = vld [vmem:[%s8212_s6 + $0xf0] sm:$0xff] }
  0x81   : > { %6566 = vmatprep.subr.bf16.mxu1 %v8305_v35  ;;  %6758 = vmatprep.subr.bf16.mxu0 %v8305_v35  ;;  %v8339_v59 = vsub.f32 %v646_v36, %v727_v47  ;;  %v8341_v60 = vsub.f32 %v643_v37, %v725_v48  ;;  %v8349_v63 = vsub.f32 %v645_v38, %v729_v49  ;;  %v733_v30 = vand.u32 4294901760, %v647_v51  ;;  %v8361_v36 = vld [vmem:[%s8212_s6 + $0xe8] sm:$0xff]  ;;  %v8396_v24 = vld [vmem:[%s8212_s6 + $0x118] sm:$0xff]  ;;  %v8399_v23 = vld [vmem:[%s8212_s6 + $0x100] sm:$0xff]  ;;  %s7581_s26 = smul.u32 384, %s7917_s19  ;;  %s6549_s3 = sshll.u32 %s13013_s21, 1 }
  0x82   : > { %12023 = vst [vmem:[#allocation25_spill] sm:$0xff] %v8337_v58  ;;  %v8351_v22 = vsub.f32 %v648_v41, %v731_v55  ;;  %v8358_v32 = vpack.c.bf16 %v727_v47, %v723_v45  ;;  %v737_v33 = vand.u32 4294901760, %v649_v56  ;;  %v739_v34 = vand.u32 4294901760, %v652_v57  ;;  %v8411_v11 = vld [vmem:[%s8212_s6 + $0x110] sm:$0xff]  ;;  %v8437_v3 = vld [vmem:[%s8212_s6 + $0x120] sm:$0xff]  ;;  %v8487_v19 = vld [vmem:[%s8212_s6 + $0x168] sm:$0xff] }
  0x83   : > { %v8363_v37 = vsub.f32 %v650_v50, %v735_v21  ;;  %v8365_v38 = vsub.f32 %v647_v51, %v733_v30  ;;  %v743_v41 = vand.u32 4294901760, %v654_v61  ;;  %v741_v43 = vand.u32 4294901760, %v8345_v62  ;;  %v8383_v50 = vld [vmem:[%s8212_s6 + $0x108] sm:$0xff]  ;;  %v8481_v29 = vld [vmem:[%s8212_s6 + $0x140] sm:$0xff]  ;;  %v8484_v20 = vld [vmem:[%s8212_s6 + $0x150] sm:$0xff]  ;;  %s6410_s29 = sadd.s32 %s7581_s26, %s6549_s3  ;;  %s6413_s18 = sshll.u32 %s11142_s12, 4  ;;  %s11316_s18 = int_to_ptr.vmem [resolvable:$true] %s6413_s18 }
  0x84   : > { %6568 = vmatpush1.bf16.msra.mxu1 %v8314_v39  ;;  %6760 = vmatpush1.bf16.msra.mxu0 %v8314_v39  ;;  %12024 = vst [vmem:[#allocation26_spill] sm:$0xff] %v8358_v32  ;;  %v8374_v27 = vsub.f32 %v649_v56, %v737_v33  ;;  %v8376_v45 = vsub.f32 %v652_v57, %v739_v34  ;;  %v745_v47 = vand.u32 4294901760, %v8354_v31  ;;  %v747_v57 = vand.u32 4294901760, %v8361_v36  ;;  %v8473_v39 = vld [vmem:[%s8212_s6 + $0x158] sm:$0xff]  ;;  %s6551_s19 = sshll.u32 %s6410_s29, 7  ;;  %s13014_s24 = sld [smem:[#allocation17_spill]] }
  0x85   : > { %6570 = vmatprep.subr.bf16.mxu1 %v8325_v46  ;;  %6762 = vmatprep.subr.bf16.mxu0 %v8325_v46  ;;  %v8387_v51 = vpack.c.bf16 %v729_v49, %v725_v48  ;;  %v8389_v25 = vsub.f32 %v654_v61, %v743_v41  ;;  %v8392_v56 = vsub.f32 %v8345_v62, %v741_v43  ;;  %v751_v61 = vand.u32 4294901760, %v8369_v44  ;;  %v8503_v35 = vld [vmem:[%s8212_s6 + $0x178] sm:$0xff]  ;;  %s13015_s8 = sld [smem:[#allocation336_spill]]  ;;  %s11322_s5 = scalar_lea.sflag [#allocation5], %s230_s28 }
  0x86   : > { %v8403_v48 = vpack.c.bf16 %v735_v21, %v731_v55  ;;  %v8406_v49 = vsub.f32 %v8354_v31, %v745_v47  ;;  %v11426_v62 = vand.u32 4294901760, %v8372_v28  ;;  %v8413_v10 = vpack.c.bf16 %v737_v33, %v733_v30  ;;  %v8421_v21 = vld [vmem:[%s8212_s6 + $0x128] sm:$0xff]  ;;  %v8424_v31 = vld [vmem:[%s8212_s6 + $0x138] sm:$0xff]  ;;  %v8440_v55 = vld [vmem:[%s8212_s6 + $0x130] sm:$0xff]  ;;  %s7779_s25 = scalar_lea.vmem %s11316_s18, 16384  ;;  %s7936_s2 = smov [#allocation8]  }
  0x87   : > { %12025 = vst [vmem:[#allocation27_spill] sm:$0xff] %v8387_v51  ;;  %12026 = vst [vmem:[#allocation28_spill] sm:$0xff] %v8392_v56  ;;  %v8416_v9 = vsub.f32 %v8361_v36, %v747_v57  ;;  %v753_v6 = vand.u32 4294901760, %v8380_v26  ;;  %v8427_v4 = vsub.f32 %v8369_v44, %v751_v61  ;;  %v8444_v44 = vpack.c.bf16 %v743_v41, %v739_v34  ;;  %p7780_p1 = scmp.ne.s32.totalorder %s11316_s18, %s7779_s25 }
  0x88   : > { %6572 = vmatpush1.bf16.msra.mxu1 %v8337_v58  ;;  %6764 = vmatpush1.bf16.msra.mxu0 %v8337_v58  ;;  %12027 = vst [vmem:[#allocation29_spill] sm:$0xff] %v8403_v48  ;;  %12028 = vst [vmem:[#allocation30_spill] sm:$0xff] %v8406_v49  ;;  %v8432_v30 = vsub.f32 %v8372_v28, %v11426_v62  ;;  %v12035_v33 = vand.u32 4294901760, %v8383_v50  ;;  %v8456_v58 = vld [vmem:[%s8212_s6 + $0x148] sm:$0xff]  ;;  %v12037_v34 = vand.u32 4294901760, %v8396_v24  ;;  %v12039_v41 = vand.u32 4294901760, %v8399_v23 }
  0x89   : > { %6574 = vmatprep.subr.bf16.mxu1 %v8358_v32  ;;  %6766 = vmatprep.subr.bf16.mxu0 %v8358_v32  ;;  %12029 = vst [vmem:[#allocation31_spill] sm:$0xff] %v8413_v10  ;;  %12030 = vst [vmem:[#allocation32_spill] sm:$0xff] %v8416_v9  ;;  %v8447_v62 = vsub.f32 %v8380_v26, %v753_v6  ;;  %v761_v32 = vand.u32 4294901760, %v8411_v11 }
  0x8a   : > { %12031 = vst [vmem:[#allocation33_spill] sm:$0xff] %v8427_v4  ;;  %12032 = vst [vmem:[#allocation34_spill] sm:$0xff] %v8432_v30  ;;  %v8452_v36 = vsub.f32 %v8383_v50, %v12035_v33  ;;  %v8463_v26 = vsub.f32 %v8396_v24, %v12037_v34  ;;  %v8468_v33 = vsub.f32 %v8399_v23, %v12039_v41  ;;  %v500_v4 = vld [vmem:[%s8205_s23 + $0x8] sm:$0xff]  ;;  %p13016_p12 = scmp.ne.s32.totalorder %s13014_s24, 0 }
  0x8b   : > { %12033 = vst [vmem:[#allocation35_spill] sm:$0xff] %v8444_v44  ;;  %12034 = vst [vmem:[#allocation36_spill] sm:$0xff] %v8447_v62  ;;  %v8489_v41 = vpack.c.bf16 %v745_v47, %v741_v43  ;;  %v8510_v43 = vpack.c.bf16 %v751_v61, %v747_v57  ;;  %v12047_v47 = vand.u32 4294901760, %v8437_v3  ;;  %v12051_v57 = vand.u32 4294901760, %v8456_v58 }
  0x8c   : > { %6576 = vmatpush1.bf16.msra.mxu1 %v8387_v51  ;;  %6768 = vmatpush1.bf16.msra.mxu0 %v8387_v51  ;;  %12036 = vst [vmem:[#allocation37_spill] sm:$0xff] %v8452_v36  ;;  %12038 = vst [vmem:[#allocation38_spill] sm:$0xff] %v8463_v26  ;;  %v11439_v51 = vand.u32 4294901760, %v8421_v21  ;;  %v8588_v36 = vld [vmem:[%s8212_s6 + $0x1a8] sm:$0xff]  ;;  %p7781_p9 = pnand %p7780_p1, %p13016_p12 }
  0x8d   : > { %6578 = vmatprep.subr.bf16.mxu1 %v8403_v48  ;;  %6770 = vmatprep.subr.bf16.mxu0 %v8403_v48  ;;  %12040 = vst [vmem:[#allocation39_spill] sm:$0xff] %v8468_v33  ;;  %v8476_v48 = vsub.f32 %v8411_v11, %v761_v32  ;;  %12042 = vst [vmem:[#allocation41_spill] sm:$0xff] %v8489_v41  ;;  %v12044_v11 = vand.u32 4294901760, %v8424_v31  ;;  %v8528_v61 = vsub.f32 %v8456_v58, %v12051_v57  ;;  %v8565_v57 = vld [vmem:[%s8212_s6 + $0x180] sm:$0xff]  ;;  %v8568_v33 = vld [vmem:[%s8212_s6 + $0x190] sm:$0xff] }
  0x8e   : > { %v8494_v46 = vsub.f32 %v8421_v21, %v11439_v51  ;;  %12046 = vst [vmem:[#allocation44_spill] sm:$0xff] %v8510_v43  ;;  %v12049_v51 = vand.u32 4294901760, %v8440_v55  ;;  %p7782_p0 = pneg %p7781_p9 }
  0x8f   : > { %12041 = vst [vmem:[#allocation40_spill] sm:$0xff] %v8476_v48  ;;  %v8499_v15 = vsub.f32 %v8424_v31, %v12044_v11  ;;  %v8506_v48 = vld [vmem:[%s8212_s6 + $0x160] sm:$0xff]  ;;  %v8515_v11 = vsub.f32 %v8437_v3, %v12047_v47  ;;  %12052 = vst [vmem:[#allocation47_spill] sm:$0xff] %v8528_v61  ;;  %v8544_v61 = vld [vmem:[%s8212_s6 + $0x188] sm:$0xff] }
  0x90   : > { %12043 = vst [vmem:[#allocation42_spill] sm:$0xff] %v8494_v46  ;;  %6580 = vmatpush1.bf16.msra.mxu1 %v8413_v10  ;;  %6772 = vmatpush1.bf16.msra.mxu0 %v8413_v10  ;;  %v8520_v34 = vsub.f32 %v8440_v55, %v12049_v51  ;;  %v8547_v47 = vld [vmem:[%s8212_s6 + $0x198] sm:$0xff]  ;;  %v12054_v10 = vand.u32 4294901760, %v8481_v29  ;;  %v12056_v46 = vand.u32 4294901760, %v8484_v20 }
  0x91   : > { %12045 = vst [vmem:[#allocation43_spill] sm:$0xff] %v8499_v15  ;;  %12048 = vst [vmem:[#allocation45_spill] sm:$0xff] %v8515_v11  ;;  %v11447_v15 = vand.u32 4294901760, %v8473_v39  ;;  %6582 = vmatprep.subr.bf16.mxu1 %v8444_v44  ;;  %6774 = vmatprep.subr.bf16.mxu0 %v8444_v44 }
  0x92   : > { %12050 = vst [vmem:[#allocation46_spill] sm:$0xff] %v8520_v34  ;;  %v8534_v34 = vld [vmem:[%s8212_s6 + $0x170] sm:$0xff]  ;;  %v8552_v51 = vsub.f32 %v8481_v29, %v12054_v10  ;;  %v12060_v10 = vand.u32 4294901760, %v8372_v28  ;;  %v12067_v28 = vand.u32 4294901760, %v8396_v24  ;;  %v8639_v24 = vld [vmem:[%s8212_s6 + $0x1c0] sm:$0xff] }
  0x93   : > { %v8539_v11 = vsub.f32 %v8473_v39, %v11447_v15  ;;  %v8557_v15 = vsub.f32 %v8484_v20, %v12056_v46  ;;  %v12062_v46 = vand.u32 4294901760, %v8503_v35  ;;  %v12071_v62 = vand.u32 4294901760, %v8534_v34 }
  0x94   : > { %12055 = vst [vmem:[#allocation49_spill] sm:$0xff] %v8552_v51  ;;  %6584 = vmatpush1.bf16.msra.mxu1 %v8489_v41  ;;  %6776 = vmatpush1.bf16.msra.mxu0 %v8489_v41  ;;  %v8574_v51 = vpack.c.bf16 %v753_v6, %v12060_v10  ;;  %v8591_v41 = vld [vmem:[%s8212_s6 + $0x1b8] sm:$0xff]  ;;  %v12066_v6 = vand.u32 4294901760, %v8383_v50 }
  0x95   : > { %12053 = vst [vmem:[#allocation48_spill] sm:$0xff] %v8539_v11  ;;  %12057 = vst [vmem:[#allocation50_spill] sm:$0xff] %v8557_v15  ;;  %v12058_v11 = vand.u32 4294901760, %v8487_v19  ;;  %v8579_v15 = vsub.f32 %v8503_v35, %v12062_v46  ;;  %6586 = vmatprep.subr.bf16.mxu1 %v8510_v43  ;;  %6778 = vmatprep.subr.bf16.mxu0 %v8510_v43  ;;  %v11460_v46 = vand.u32 4294901760, %v8544_v61  ;;  %v8636_v50 = vld [vmem:[%s8212_s6 + $0x1d8] sm:$0xff] }
  0x96   : > { %12061 = vst [vmem:[#allocation52_spill] sm:$0xff] %v8574_v51  ;;  %v8599_v10 = vpack.c.bf16 %v12067_v28, %v12066_v6  ;;  %v8613_v43 = vsub.f32 %v8534_v34, %v12071_v62  ;;  %v8618_v6 = vld [vmem:[%s8212_s6 + $0x1b0] sm:$0xff]  ;;  %v8621_v28 = vld [vmem:[%s8212_s6 + $0x1c8] sm:$0xff]  ;;  %v12080_v62 = vand.u32 4294901760, %v8568_v33 }
  0x97   : > { %v8562_v44 = vsub.f32 %v8487_v19, %v12058_v11  ;;  %12063 = vst [vmem:[#allocation53_spill] sm:$0xff] %v8579_v15  ;;  %v8604_v11 = vld [vmem:[%s8212_s6 + $0x1a0] sm:$0xff]  ;;  %v11477_v30 = vand.u32 4294901760, %v8621_v28 }
  0x98   : > { %12068 = vst [vmem:[#allocation55_spill] sm:$0xff] %v8599_v10  ;;  %12072 = vst [vmem:[#allocation57_spill] sm:$0xff] %v8613_v43  ;;  %6588 = vmatpush1.bf16.msra.mxu1 %v8574_v51  ;;  %6780 = vmatpush1.bf16.msra.mxu0 %v8574_v51  ;;  %v8661_v51 = vld [vmem:[%s8212_s6 + $0x1d0] sm:$0xff] }
  0x99   : > { %12059 = vst [vmem:[#allocation51_spill] sm:$0xff] %v8562_v44  ;;  %v12064_v44 = vand.u32 4294901760, %v8506_v48  ;;  %6590 = vmatprep.subr.bf16.mxu1 %v8599_v10  ;;  %6782 = vmatprep.subr.bf16.mxu0 %v8599_v10 }
  0x9b   : > { %v8585_v26 = vsub.f32 %v8506_v48, %v12064_v44  ;;  %v11463_v44 = vand.u32 4294901760, %v8547_v47 }
  0x9d   : > { %12065 = vst [vmem:[#allocation54_spill] sm:$0xff] %v8585_v26  ;;  %v12069_v26 = vand.u32 4294901760, %v8399_v23  ;;  %v8626_v23 = vsub.f32 %v8544_v61, %v11460_v46  ;;  %v12075_v46 = vand.u32 4294901760, %v8421_v21  ;;  %v8664_v21 = vld [vmem:[%s8212_s6 + $0x1e8] sm:$0xff] }
  0x9f   : > { %v8608_v15 = vpack.c.bf16 %v761_v32, %v12069_v26  ;;  %12073 = vst [vmem:[#allocation58_spill] sm:$0xff] %v8626_v23  ;;  %v8631_v32 = vsub.f32 %v8547_v47, %v11463_v44  ;;  %v12076_v23 = vand.u32 4294901760, %v8424_v31  ;;  %v12078_v44 = vand.u32 4294901760, %v8565_v57 }
  0xa0   : > { %v12082_v31 = vand.u32 4294901760, %v8588_v36 }
  0xa1   : > { %12070 = vst [vmem:[#allocation56_spill] sm:$0xff] %v8608_v15  ;;  %12074 = vst [vmem:[#allocation59_spill] sm:$0xff] %v8631_v32  ;;  %v8647_v43 = vpack.c.bf16 %v12076_v23, %v12075_v46  ;;  %v8652_v26 = vsub.f32 %v8565_v57, %v12078_v44  ;;  %v8657_v32 = vsub.f32 %v8568_v33, %v12080_v62  ;;  %v12084_v44 = vand.u32 4294901760, %v8591_v41 }
  0xa2   : > { %v8671_v46 = vsub.f32 %v8588_v36, %v12082_v31  ;;  %v11475_v62 = vand.u32 4294901760, %v8618_v6  ;;  %6592 = vmatpush1.bf16.msra.mxu1 %v8608_v15  ;;  %6784 = vmatpush1.bf16.msra.mxu0 %v8608_v15  ;;  %v12090_v31 = vand.u32 4294901760, %v8437_v3  ;;  %v12098_v3 = vand.u32 4294901760, %v8639_v24 }
  0xa3   : > { %12077 = vst [vmem:[#allocation60_spill] sm:$0xff] %v8647_v43  ;;  %12079 = vst [vmem:[#allocation61_spill] sm:$0xff] %v8652_v26  ;;  %v8676_v23 = vsub.f32 %v8591_v41, %v12084_v44  ;;  %v12086_v26 = vand.u32 4294901760, %v8604_v11  ;;  %6594 = vmatprep.subr.bf16.mxu1 %v8647_v43  ;;  %6786 = vmatprep.subr.bf16.mxu0 %v8647_v43  ;;  %v12108_v43 = vand.u32 4294901760, %v8484_v20 }
  0xa4   : > { %12081 = vst [vmem:[#allocation62_spill] sm:$0xff] %v8657_v32  ;;  %12083 = vst [vmem:[#allocation63_spill] sm:$0xff] %v8671_v46  ;;  %v8681_v32 = vld [vmem:[%s8212_s6 + $0x1f8] sm:$0xff]  ;;  %v8691_v46 = vld [vmem:[%s8212_s6 + $0x1e0] sm:$0xff]  ;;  %v8696_v44 = vsub.f32 %v8618_v6, %v11475_v62  ;;  %v12091_v62 = vand.u32 4294901760, %v8440_v55  ;;  %v8734_v55 = vsub.f32 %v8639_v24, %v12098_v3  ;;  %v8753_v3 = vand.u32 4294901760, %v500_v4 }
  0xa5   : > { %12085 = vst [vmem:[#allocation64_spill] sm:$0xff] %v8676_v23  ;;  %v8686_v10 = vsub.f32 %v8604_v11, %v12086_v26  ;;  %v8701_v23 = vsub.f32 %v8621_v28, %v11477_v30  ;;  %v12093_v30 = vand.u32 4294901760, %v8456_v58  ;;  %v12096_v26 = vand.u32 4294901760, %v8636_v50 }
  0xa6   : > { %12088 = vst [vmem:[#allocation66_spill] sm:$0xff] %v8696_v44  ;;  %v8715_v44 = vpack.c.bf16 %v12091_v62, %v12090_v31  ;;  %v11482_v56 = vand.u32 4294901760, %v8681_v32  ;;  %12099 = vst [vmem:[#allocation71_spill] sm:$0xff] %v8734_v55  ;;  %v11485_v62 = vand.u32 4294901760, %v8691_v46 }
  0xa7   : > { %12087 = vst [vmem:[#allocation65_spill] sm:$0xff] %v8686_v10  ;;  %12089 = vst [vmem:[#allocation67_spill] sm:$0xff] %v8701_v23  ;;  %v8706_v10 = vld [vmem:[%s8212_s6 + $0x1f0] sm:$0xff]  ;;  %v12094_v23 = vand.u32 4294901760, %v8473_v39  ;;  %v8726_v49 = vsub.f32 %v8636_v50, %v12096_v26  ;;  %v12100_v39 = vand.u32 4294901760, %v8661_v51  ;;  %s7783_s6 = sshll.u32 %s7936_s2, 4  ;;  %s7784_s6 = int_to_ptr.vmem [resolvable:$false] %s7783_s6 }
  0xa8   : > { %12092 = vst [vmem:[#allocation68_spill] sm:$0xff] %v8715_v44  ;;  %v8750_v31 = vsub.f32 %v8681_v32, %v11482_v56  ;;  %v11487_v26 = vand.u32 4294901760, %v8706_v10  ;;  %12105 = vst [vmem:[#allocation75_spill] sm:$0xff] %v8753_v3  ;;  %6596 = vmatpush1.bf16.msra.mxu1 %v8715_v44  ;;  %6788 = vmatpush1.bf16.msra.mxu0 %v8715_v44  ;;  %v499_v44 = vld [vmem:[%s8205_s23] sm:$0xff]  ;;  %s7785_s7 = scalar_lea.vmem %s7784_s6, 32768  ;;  %p7786_p4 = scmp.lt.s32.totalorder %s11316_s18, %s7784_s6 }
  0xa9   : > { %v8721_v9 = vpack.c.bf16 %v12094_v23, %v12093_v30  ;;  %12097 = vst [vmem:[#allocation70_spill] sm:$0xff] %v8726_v49  ;;  %v8739_v58 = vsub.f32 %v8661_v51, %v12100_v39  ;;  %v12102_v30 = vand.u32 4294901760, %v8664_v21  ;;  %v8758_v39 = vsub.f32 %v8691_v46, %v11485_v62  ;;  %p7787_p10 = scmp.lt.s32.totalorder %s7785_s7, %s7779_s25 }
  0xaa   : > { %12104 = vst [vmem:[#allocation74_spill] sm:$0xff] %v8750_v31  ;;  %v8771_v15 = vsub.f32 %v8706_v10, %v11487_v26  ;;  %v8774_v31 = vsub.f32 %v500_v4, %v8753_v3  ;;  %v12112_v62 = vand.u32 4294901760, %v8219_v0  ;;  %v12119_v26 = vand.u32 4294901760, %v8225_v2 }
  0xab   : > { %12095 = vst [vmem:[#allocation69_spill] sm:$0xff] %v8721_v9  ;;  %12101 = vst [vmem:[#allocation72_spill] sm:$0xff] %v8739_v58  ;;  %v8744_v23 = vsub.f32 %v8664_v21, %v12102_v30  ;;  %v12107_v30 = vand.u32 4294901760, %v8481_v29  ;;  %v12114_v29 = vand.u32 4294901760, %v8222_v1  ;;  %6598 = vmatprep.subr.bf16.mxu1 %v8721_v9  ;;  %6790 = vmatprep.subr.bf16.mxu0 %v8721_v9  ;;  %v12123_v9 = vand.u32 4294901760, %v8234_v7  ;;  %p7788_p8 = por %p7787_p10, %p7786_p4 }
  0xac   : > { %12106 = vst [vmem:[#allocation76_spill] sm:$0xff] %v8758_v39  ;;  %12110 = vst [vmem:[#allocation78_spill] sm:$0xff] %v8771_v15  ;;  %v8779_v39 = vsub.f32 %v8219_v0, %v12112_v62  ;;  %v8797_v0 = vsub.f32 %v8225_v2, %v12119_v26  ;;  %v821_v62 = vand.u32 4294901760, %v8774_v31  ;;  %v12127_v26 = vand.u32 4294901760, %v8243_v12 }
  0xad   : > { %12103 = vst [vmem:[#allocation73_spill] sm:$0xff] %v8744_v23  ;;  %v8766_v56 = vpack.c.bf16 %v12108_v43, %v12107_v30  ;;  %12111 = vst [vmem:[#allocation79_spill] sm:$0xff] %v8774_v31  ;;  %v8784_v20 = vsub.f32 %v8222_v1, %v12114_v29  ;;  %v12116_v43 = vand.u32 4294901760, %v8487_v19  ;;  %v12117_v30 = vand.u32 4294901760, %v8503_v35  ;;  %p7789_p11 = pnand %p7788_p8, %p7782_p0 }
  0xae   : > { %12113 = vst [vmem:[#allocation80_spill] sm:$0xff] %v8779_v39  ;;  %12120 = vst [vmem:[#allocation83_spill] sm:$0xff] %v8797_v0  ;;  %v12121_v1 = vand.u32 4294901760, %v8230_v5  ;;  %v8809_v19 = vsub.f32 %v8234_v7, %v12123_v9  ;;  %v12125_v35 = vand.u32 4294901760, %v8237_v8  ;;  %v12131_v7 = vand.u32 4294901760, %v8506_v48  ;;  %3705 = vmatprep.mubr.f32.mxu0 %v821_v62 }
  0xaf   : > { %12109 = vst [vmem:[#allocation77_spill] sm:$0xff] %v8766_v56  ;;  %12115 = vst [vmem:[#allocation81_spill] sm:$0xff] %v8784_v20  ;;  %v8792_v4 = vpack.c.bf16 %v12117_v30, %v12116_v43  ;;  %v8819_v43 = vsub.f32 %v8243_v12, %v12127_v26  ;;  %v502_v30 = vld [vmem:[%s8205_s23 + $0x18] sm:$0xff]  ;;  %6600 = vmatpush1.bf16.msra.mxu1 %v8766_v56  ;;  %6792 = vmatpush1.bf16.msra.mxu0 %v8766_v56  ;;  %v1846_v48 = vand.u32 4294901760, %v8779_v39 }
  0xb0   : > { %v8804_v29 = vsub.f32 %v8230_v5, %v12121_v1  ;;  %12124 = vst [vmem:[#allocation85_spill] sm:$0xff] %v8809_v19  ;;  %v8814_v2 = vsub.f32 %v8237_v8, %v12125_v35  ;;  %v12129_v5 = vand.u32 4294901760, %v8246_v13  ;;  %v12132_v8 = vand.u32 4294901760, %v8534_v34 }
  0xb1   : > { %12118 = vst [vmem:[#allocation82_spill] sm:$0xff] %v8792_v4  ;;  %12128 = vst [vmem:[#allocation87_spill] sm:$0xff] %v8819_v43  ;;  %v822_v12 = vsub.f32 %v8774_v31, %v821_v62  ;;  %6602 = vmatprep.subr.bf16.mxu1 %v8792_v4  ;;  %6794 = vmatprep.subr.bf16.mxu0 %v8792_v4  ;;  %v12135_v35 = vand.u32 4294901760, %v8547_v47  ;;  %v1858_v34 = vand.u32 4294901760, %v8784_v20  ;;  %v12138_v31 = vand.u32 4294901760, %v8249_v14 }
  0xb2   : > { %12122 = vst [vmem:[#allocation84_spill] sm:$0xff] %v8804_v29  ;;  %12126 = vst [vmem:[#allocation86_spill] sm:$0xff] %v8814_v2  ;;  %v8825_v1 = vsub.f32 %v8246_v13, %v12129_v5  ;;  %v8833_v9 = vpack.c.bf16 %v12132_v8, %v12131_v7  ;;  %v12134_v13 = vand.u32 4294901760, %v8544_v61  ;;  %v8844_v5 = vand.u32 4294901760, %v499_v44  ;;  %v501_v7 = vld [vmem:[%s8205_s23 + $0x10] sm:$0xff]  ;;  %v504_v8 = vld [vmem:[%s8205_s23 + $0x28] sm:$0xff] }
  0xb3   : > { %v8853_v56 = vsub.f32 %v8249_v14, %v12138_v31  ;;  %v823_v4 = vand.u32 4294901760, %v822_v12  ;;  %v1852_v61 = vand.u32 4294901760, %v8797_v0  ;;  %v8856_v47 = vand.u32 4294901760, %v502_v30 }
  0xb4   : > { %12130 = vst [vmem:[#allocation88_spill] sm:$0xff] %v8825_v1  ;;  %12133 = vst [vmem:[#allocation89_spill] sm:$0xff] %v8833_v9  ;;  %v8842_v26 = vpack.c.bf16 %v12135_v35, %v12134_v13  ;;  %v503_v13 = vld [vmem:[%s8205_s23 + $0x20] sm:$0xff]  ;;  %v12140_v35 = vand.u32 4294901760, %v8258_v16  ;;  %v12141_v15 = vand.u32 4294901760, %v8261_v17  ;;  %v12142_v14 = vand.u32 4294901760, %v8264_v18  ;;  %6604 = vmatpush1.bf16.msra.mxu1 %v8833_v9  ;;  %6796 = vmatpush1.bf16.msra.mxu0 %v8833_v9 }
  0xb5   : > { %12137 = vst [vmem:[#allocation91_spill] sm:$0xff] %v8844_v5  ;;  %12139 = vst [vmem:[#allocation92_spill] sm:$0xff] %v8856_v47  ;;  %v12143_v62 = vand.u32 4294901760, %v8565_v57  ;;  %v12144_v12 = vand.u32 4294901760, %v8568_v33  ;;  %v8894_v57 = vand.u32 4294901760, %v501_v7  ;;  %v8896_v33 = vand.u32 4294901760, %v504_v8  ;;  %824 = vmatprep.mubr.f32.mxu1 %v823_v4 }
  0xb6   : > { %12136 = vst [vmem:[#allocation90_spill] sm:$0xff] %v8842_v26  ;;  %v8862_v3 = vsub.f32 %v8258_v16, %v12140_v35  ;;  %v8867_v23 = vsub.f32 %v8261_v17, %v12141_v15  ;;  %v8872_v31 = vsub.f32 %v8264_v18, %v12142_v14  ;;  %v12146_v16 = vand.u32 4294901760, %v8588_v36  ;;  %6606 = vmatprep.subr.bf16.mxu1 %v8842_v26 }
  0xb7   : > { %v8878_v58 = vpack.c.bf16 %v12144_v12, %v12143_v62  ;;  %v12147_v15 = vand.u32 4294901760, %v8591_v41  ;;  %v12149_v35 = vand.u32 4294901760, %v8604_v11  ;;  %v12150_v18 = vand.u32 4294901760, %v8618_v6  ;;  %12152 = vst [vmem:[#allocation96_spill] sm:$0xff] %v8894_v57  ;;  %12153 = vst [vmem:[#allocation97_spill] sm:$0xff] %v8896_v33  ;;  %v506_v62 = vld [vmem:[%s8205_s23 + $0x38] sm:$0xff]  ;;  %6798 = vmatprep.subr.bf16.mxu0 %v8842_v26 }
  0xb8   : > { %v8902_v36 = vsub.f32 %v499_v44, %v8844_v5  ;;  %v1847_v41 = vsub.f32 %v8779_v39, %v1846_v48  ;;  %v1859_v11 = vsub.f32 %v8784_v20, %v1858_v34  ;;  %v8906_v6 = vand.u32 4294901760, %v503_v13  ;;  %v514_v20 = vld [vmem:[%s8205_s23 + $0x78] sm:$0xff] }
  0xb9   : > { %12145 = vst [vmem:[#allocation93_spill] sm:$0xff] %v8878_v58  ;;  %v8886_v17 = vpack.c.bf16 %v12147_v15, %v12146_v16  ;;  %v8892_v14 = vpack.c.bf16 %v12150_v18, %v12149_v35  ;;  %v12156_v12 = vand.u32 4294901760, %v8621_v28  ;;  %v12157_v16 = vand.u32 4294901760, %v8636_v50  ;;  %6608 = vmatpush1.bf16.msra.mxu1 %v8878_v58  ;;  %6800 = vmatpush1.bf16.msra.mxu0 %v8878_v58 }
  0xba   : > { %12154 = vst [vmem:[#allocation98_spill] sm:$0xff] %v8902_v36  ;;  %12155 = vst [vmem:[#allocation99_spill] sm:$0xff] %v8906_v6  ;;  %v8915_v35 = vsub.f32 %v8797_v0, %v1852_v61  ;;  %v1864_v44 = vand.u32 4294901760, %v8804_v29  ;;  %v8919_v18 = vsub.f32 %v502_v30, %v8856_v47  ;;  %v12160_v26 = vand.u32 4294901760, %v8639_v24 }
  0xbb   : > { %12148 = vst [vmem:[#allocation94_spill] sm:$0xff] %v8886_v17  ;;  %12151 = vst [vmem:[#allocation95_spill] sm:$0xff] %v8892_v14  ;;  %v8912_v15 = vpack.c.bf16 %v12157_v16, %v12156_v12  ;;  %v12161_v9 = vand.u32 4294901760, %v8661_v51  ;;  %v12163_v50 = vand.u32 4294901760, %v8664_v21  ;;  %v12164_v28 = vand.u32 4294901760, %v8681_v32  ;;  %v505_v21 = vld [vmem:[%s8205_s23 + $0x30] sm:$0xff]  ;;  %6610 = vmatprep.subr.bf16.mxu1 %v8886_v17  ;;  %6802 = vmatprep.subr.bf16.mxu0 %v8886_v17 }
  0xbc   : > { %12159 = vst [vmem:[#allocation101_spill] sm:$0xff] %v8919_v18  ;;  %v12166_v4 = vand.u32 4294901760, %v8691_v46  ;;  %v12167_v16 = vand.u32 4294901760, %v8706_v10  ;;  %v8939_v30 = vand.u32 4294901760, %v506_v62  ;;  %v8943_v51 = vpack.c.bf16 %v1858_v34, %v1846_v48  ;;  %v508_v46 = vld [vmem:[%s8205_s23 + $0x48] sm:$0xff]  ;;  %v507_v48 = vld [vmem:[%s8205_s23 + $0x40] sm:$0xff] }
  0xbd   : > { %12158 = vst [vmem:[#allocation100_spill] sm:$0xff] %v8912_v15  ;;  %v8925_v5 = vpack.c.bf16 %v12161_v9, %v12160_v26  ;;  %v8931_v12 = vpack.c.bf16 %v12164_v28, %v12163_v50  ;;  %v8946_v24 = vsub.f32 %v501_v7, %v8894_v57  ;;  %v8949_v32 = vsub.f32 %v504_v8, %v8896_v33 }
  0xbe   : > { %v8937_v0 = vpack.c.bf16 %v12167_v16, %v12166_v4  ;;  %12169 = vst [vmem:[#allocation105_spill] sm:$0xff] %v8939_v30  ;;  %v1848_v9 = vand.u32 4294901760, %v1847_v41  ;;  %v1860_v26 = vand.u32 4294901760, %v1859_v11  ;;  %v8957_v50 = vsub.f32 %v503_v13, %v8906_v6  ;;  %6612 = vmatpush1.bf16.msra.mxu1 %v8892_v14  ;;  %6804 = vmatpush1.bf16.msra.mxu0 %v8892_v14 }
  0xbf   : > { %12162 = vst [vmem:[#allocation102_spill] sm:$0xff] %v8925_v5  ;;  %12165 = vst [vmem:[#allocation103_spill] sm:$0xff] %v8931_v12  ;;  %v1854_v34 = vand.u32 4294901760, %v8915_v35  ;;  %v1865_v7 = vsub.f32 %v8804_v29, %v1864_v44  ;;  %v1870_v28 = vand.u32 4294901760, %v8809_v19  ;;  %v8965_v4 = vsub.f32 %v506_v62, %v8939_v30  ;;  %6614 = vmatprep.subr.bf16.mxu1 %v8912_v15 }
  0xc0   : > { %12168 = vst [vmem:[#allocation104_spill] sm:$0xff] %v8937_v0  ;;  %12170 = vst [vmem:[#allocation106_spill] sm:$0xff] %v8946_v24  ;;  %v8967_v16 = vand.u32 4294901760, %v505_v21  ;;  %v8969_v10 = vand.u32 4294901760, %v508_v46  ;;  %v1882_v41 = vand.u32 4294901760, %v8814_v2  ;;  %v8974_v13 = vpack.c.bf16 %v1864_v44, %v1852_v61  ;;  %6806 = vmatprep.subr.bf16.mxu0 %v8912_v15 }
  0xc1   : > { %12171 = vst [vmem:[#allocation107_spill] sm:$0xff] %v8949_v32  ;;  %12172 = vst [vmem:[#allocation108_spill] sm:$0xff] %v8957_v50  ;;  %v8978_v8 = vand.u32 4294901760, %v507_v48  ;;  %v12177_v62 = vand.u32 4294901760, %v8902_v36  ;;  %v1876_v61 = vand.u32 4294901760, %v8819_v43  ;;  %v1888_v44 = vand.u32 4294901760, %v8825_v1 }
  0xc2   : > { %12173 = vst [vmem:[#allocation109_spill] sm:$0xff] %v8965_v4  ;;  %12174 = vst [vmem:[#allocation110_spill] sm:$0xff] %v8967_v16  ;;  %v1866_v11 = vand.u32 4294901760, %v1865_v7  ;;  %v12178_v35 = vand.u32 4294901760, %v8919_v18  ;;  %v1871_v30 = vsub.f32 %v8809_v19, %v1870_v28  ;;  %v1883_v15 = vsub.f32 %v8814_v2, %v1882_v41  ;;  %6616 = vmatpush1.bf16.msra.mxu1 %v8925_v5 }
  0xc3   : > { %12175 = vst [vmem:[#allocation111_spill] sm:$0xff] %v8969_v10  ;;  %12176 = vst [vmem:[#allocation112_spill] sm:$0xff] %v8978_v8  ;;  %v828_v17 = vsub.f32 %v8902_v36, %v12177_v62  ;;  %v6621_v6 = vpack.c.bf16 %v1860_v26, %v1848_v9  ;;  %v8995_v58 = vsub.f32 %v505_v21, %v8967_v16  ;;  %6808 = vmatpush1.bf16.msra.mxu0 %v8925_v5  ;;  %v510_v62 = vld [vmem:[%s8205_s23 + $0x58] sm:$0xff]  ;;  %v509_v16 = vld [vmem:[%s8205_s23 + $0x50] sm:$0xff] }
  0xc4   : > { %v838_v14 = vsub.f32 %v8919_v18, %v12178_v35  ;;  %v8998_v33 = vsub.f32 %v508_v46, %v8969_v10  ;;  %v12181_v7 = vand.u32 4294901760, %v8946_v24  ;;  %v12182_v9 = vand.u32 4294901760, %v8949_v32  ;;  %6618 = vmatprep.subr.bf16.mxu1 %v8931_v12  ;;  %6810 = vmatprep.subr.bf16.mxu0 %v8931_v12 }
  0xc5   : > { %12179 = vst [vmem:[#allocation113_spill] sm:$0xff] %v8995_v58  ;;  %v9013_v21 = vsub.f32 %v507_v48, %v8978_v8  ;;  %v829_v46 = vand.u32 4294901760, %v828_v17  ;;  %v12184_v5 = vand.u32 4294901760, %v8957_v50  ;;  %v1877_v10 = vsub.f32 %v8819_v43, %v1876_v61  ;;  %v512_v48 = vld [vmem:[%s8205_s23 + $0x68] sm:$0xff]  ;;  %v511_v43 = vld [vmem:[%s8205_s23 + $0x60] sm:$0xff] }
  0xc6   : > { %12180 = vst [vmem:[#allocation114_spill] sm:$0xff] %v8998_v33  ;;  %v9005_v35 = vsub.f32 %v8946_v24, %v12181_v7  ;;  %v9010_v26 = vsub.f32 %v8949_v32, %v12182_v9  ;;  %v1889_v9 = vsub.f32 %v8825_v1, %v1888_v44  ;;  %v6623_v8 = vpack.c.bf16 %v1866_v11, %v1854_v34 }
  0xc7   : > { %12183 = vst [vmem:[#allocation115_spill] sm:$0xff] %v9013_v21  ;;  %v9021_v7 = vsub.f32 %v8957_v50, %v12184_v5  ;;  %v839_v57 = vand.u32 4294901760, %v838_v14  ;;  %v1872_v47 = vand.u32 4294901760, %v1871_v30  ;;  %v1884_v2 = vand.u32 4294901760, %v1883_v15  ;;  %6620 = vmatpush1.bf16.msra.mxu1 %v8937_v0  ;;  %6812 = vmatpush1.bf16.msra.mxu0 %v8937_v0  ;;  %v513_v15 = vld [vmem:[%s8205_s23 + $0x70] sm:$0xff] }
  0xc8   : > { %v12185_v19 = vand.u32 4294901760, %v8965_v4  ;;  %v9034_v29 = vand.u32 4294901760, %v510_v62  ;;  %v845_v14 = vand.u32 4294901760, %v9005_v35  ;;  %v9042_v30 = vand.u32 4294901760, %v509_v16  ;;  %6622 = vmatprep.subr.bf16.mxu1 %v6621_v6  ;;  %6814 = vmatprep.subr.bf16.mxu0 %v8943_v51 }
  0xc9   : > { %v855_v34 = vand.u32 4294901760, %v9010_v26  ;;  %v861_v11 = vand.u32 4294901760, %v9021_v7  ;;  %v1878_v5 = vand.u32 4294901760, %v1877_v10  ;;  %v1890_v17 = vand.u32 4294901760, %v1889_v9 }
  0xca   : > { %v9030_v12 = vsub.f32 %v8965_v4, %v12185_v19  ;;  %v9044_v19 = vand.u32 4294901760, %v512_v48  ;;  %v6625_v1 = vpack.c.bf16 %v1884_v2, %v1872_v47  ;;  %v6817_v39 = vpack.c.bf16 %v1882_v41, %v1870_v28  ;;  %830 = vmatmul.mubr.f32.vlgmr.msra.gmra.mrb[0].mxu1 %v829_v46 }
  0xcb   : > { %v9049_v0 = vand.u32 4294901760, %v511_v43  ;;  %v9051_v35 = vand.u32 4294901760, %v514_v20  ;;  %v12188_v55 = vand.u32 4294901760, %v8902_v36  ;;  %v12189_v51 = vand.u32 4294901760, %v8995_v58  ;;  %6624 = vmatpush1.bf16.msra.mxu1 %v6623_v8  ;;  %840 = vmatprep.mubr.f32.mxu1 %v839_v57 }
  0xcc   : > { %v871_v6 = vand.u32 4294901760, %v9030_v12  ;;  %v12190_v10 = vand.u32 4294901760, %v8998_v33  ;;  %v9068_v47 = vsub.f32 %v510_v62, %v9034_v29  ;;  %v6819_v28 = vpack.c.bf16 %v1888_v44, %v1876_v61  ;;  %6626 = vmatprep.subr.bf16.mxu1 %v6625_v1 }
  0xcd   : > { %12186 = vst [vmem:[#allocation116_spill] sm:$0xff] %v9049_v0  ;;  %12187 = vst [vmem:[#allocation117_spill] sm:$0xff] %v9051_v35  ;;  %3709 = vmatmul.mubr.f32.vlgmr.msra.gmra.mrb[0].mxu0 %v12188_v55  ;;  %v9060_v26 = vsub.f32 %v8995_v58, %v12189_v51  ;;  %v9072_v55 = vsub.f32 %v509_v16, %v9042_v30  ;;  %v9075_v12 = vsub.f32 %v512_v48, %v9044_v19 }
  0xce   : > { %v9065_v2 = vsub.f32 %v8998_v33, %v12190_v10  ;;  %12191 = vst [vmem:[#allocation118_spill] sm:$0xff] %v9068_v47  ;;  %6816 = vmatpush1.bf16.msra.mxu0 %v8974_v13  ;;  %v1894_v41 = vand.u32 4294901760, %v8853_v56  ;;  %v12194_v46 = vand.u32 4294901760, %v8919_v18  ;;  %v6627_v62 = vpack.c.bf16 %v1890_v17, %v1878_v5  ;;  %846 = vmatmul.mubr.f32.gmra.mrb[2].mxu1 %v845_v14  ;;  %v516_v17 = vld [vmem:[%s8205_s23 + $0x88] sm:$0xff]  ;;  %v515_v5 = vld [vmem:[%s8205_s23 + $0x80] sm:$0xff] }
  0xcf   : > { %12192 = vst [vmem:[#allocation119_spill] sm:$0xff] %v9072_v55  ;;  %12193 = vst [vmem:[#allocation120_spill] sm:$0xff] %v9075_v12  ;;  %v9080_v7 = vand.u32 4294901760, %v513_v15  ;;  %v1906_v8 = vand.u32 4294901760, %v8862_v3  ;;  %v1900_v13 = vand.u32 4294901760, %v8867_v23  ;;  %6818 = vmatprep.subr.bf16.mxu0 %v6817_v39  ;;  %v9085_v16 = vsub.f32 %v511_v43, %v9049_v0  ;;  %856 = vmatprep.mubr.f32.mxu1 %v855_v34 }
  0xd0   : > { %3717 = vmatprep.mubr.f32.mxu0 %v12194_v46  ;;  %v9088_v61 = vsub.f32 %v514_v20, %v9051_v35  ;;  %v1895_v57 = vsub.f32 %v8853_v56, %v1894_v41  ;;  %v1912_v44 = vand.u32 4294901760, %v8872_v31  ;;  %v12198_v9 = vand.u32 4294901760, %v8946_v24  ;;  %6628 = vmatpush1.bf16.msra.mxu1 %v6627_v62  ;;  %v518_v24 = vld [vmem:[%s8205_s23 + $0x98] sm:$0xff] }
  0xd1   : > { %12195 = vst [vmem:[#allocation121_spill] sm:$0xff] %v9080_v7  ;;  %12196 = vst [vmem:[#allocation122_spill] sm:$0xff] %v9085_v16  ;;  %v1907_v39 = vsub.f32 %v8862_v3, %v1906_v8  ;;  %v6821_v43 = vpack.c.bf16 %v1906_v8, %v1894_v41  ;;  %v1901_v1 = vsub.f32 %v8867_v23, %v1900_v13  ;;  %v12199_v20 = vand.u32 4294901760, %v8949_v32 }
  0xd2   : > { %12197 = vst [vmem:[#allocation123_spill] sm:$0xff] %v9088_v61  ;;  %3721 = vmatmul.mubr.f32.gmra.mrb[2].mxu0 %v12198_v9  ;;  %v11538_v51 = vand.u32 4294901760, %v9072_v55  ;;  %v1896_v10 = vand.u32 4294901760, %v1895_v57  ;;  %v1913_v46 = vsub.f32 %v8872_v31, %v1912_v44  ;;  %v9105_v9 = vsub.f32 %v513_v15, %v9080_v7  ;;  %862 = vmatmul.mubr.f32.gmra.mrb[4].mxu1 %v861_v11 }
  0xd3   : > { %3729 = vmatprep.mubr.f32.mxu0 %v12199_v20  ;;  %6820 = vmatpush1.bf16.msra.mxu0 %v6819_v28  ;;  %v1908_v48 = vand.u32 4294901760, %v1907_v39  ;;  %v1902_v41 = vand.u32 4294901760, %v1901_v1  ;;  %v6823_v8 = vpack.c.bf16 %v1912_v44, %v1900_v13  ;;  %v11536_v34 = vand.u32 4294901760, %v9085_v16 }
  0xd4   : > { %12200 = vst [vmem:[#allocation124_spill] sm:$0xff] %v9105_v9  ;;  %v9109_v32 = vand.u32 4294901760, %v516_v17  ;;  %v9111_v20 = vand.u32 4294901760, %v515_v5  ;;  %6822 = vmatprep.subr.bf16.mxu0 %v6821_v43  ;;  %v1914_v14 = vand.u32 4294901760, %v1913_v46  ;;  %v12203_v57 = vand.u32 4294901760, %v8957_v50  ;;  %872 = vmatprep.mubr.f32.mxu1 %v871_v6 }
  0xd5   : > { %v877_v15 = vand.u32 4294901760, %v9060_v26  ;;  %v887_v28 = vand.u32 4294901760, %v9065_v2  ;;  %v12204_v62 = vand.u32 4294901760, %v9013_v21  ;;  %v6629_v44 = vpack.c.bf16 %v1908_v48, %v1896_v10 }
  0xd6   : > { %12201 = vst [vmem:[#allocation125_spill] sm:$0xff] %v9109_v32  ;;  %12202 = vst [vmem:[#allocation126_spill] sm:$0xff] %v9111_v20  ;;  %3733 = vmatmul.mubr.f32.gmra.mrb[4].mxu0 %v12203_v57  ;;  %v12205_v39 = vand.u32 4294901760, %v8965_v4  ;;  %v12206_v43 = vand.u32 4294901760, %v9068_v47  ;;  %v11537_v1 = vand.u32 4294901760, %v9088_v61  ;;  %v6631_v46 = vpack.c.bf16 %v1914_v14, %v1902_v41  ;;  %v517_v57 = vld [vmem:[%s8205_s23 + $0x90] sm:$0xff] }
  0xd7   : > { %v892_v13 = vsub.f32 %v9013_v21, %v12204_v62  ;;  %v9126_v26 = vand.u32 4294901760, %v518_v24  ;;  %v908_v2 = vsub.f32 %v9072_v55, %v11538_v51  ;;  %v12208_v48 = vand.u32 4294901760, %v9075_v12  ;;  %6630 = vmatprep.subr.bf16.mxu1 %v6629_v44  ;;  %6824 = vmatpush1.bf16.msra.mxu0 %v6823_v8  ;;  %v520_v44 = vld [vmem:[%s8205_s23 + $0xa8] sm:$0xff] }
  0xd8   : > { %3741 = vmatprep.mubr.f32.mxu0 %v12205_v39  ;;  %v902_v11 = vsub.f32 %v9068_v47, %v12206_v43  ;;  %v11540_v10 = vand.u32 4294901760, %v9105_v9  ;;  %v9139_v14 = vsub.f32 %v9085_v16, %v11536_v34  ;;  %v9142_v41 = vsub.f32 %v516_v17, %v9109_v32  ;;  %6632 = vmatpush1.bf16.msra.mxu1 %v6631_v46  ;;  %v519_v46 = vld [vmem:[%s8205_s23 + $0xa0] sm:$0xff] }
  0xd9   : > { %12207 = vst [vmem:[#allocation127_spill] sm:$0xff] %v9126_v26  ;;  %v918_v6 = vsub.f32 %v9075_v12, %v12208_v48  ;;  %v9145_v62 = vsub.f32 %v515_v5, %v9111_v20  ;;  %878 = vmatmul.mubr.f32.gmra.mrb[6].mxu1 %v877_v15  ;;  %v12211_v39 = vand.u32 4294901760, %v8995_v58  ;;  %v893_v8 = vand.u32 4294901760, %v892_v13 }
  0xda   : > { %12209 = vst [vmem:[#allocation128_spill] sm:$0xff] %v9142_v41  ;;  %888 = vmatprep.mubr.f32.mxu1 %v887_v28  ;;  %v12212_v43 = vand.u32 4294901760, %v8998_v33  ;;  %v903_v48 = vand.u32 4294901760, %v902_v11  ;;  %v9155_v17 = vsub.f32 %v9088_v61, %v11537_v1  ;;  %v9158_v5 = vsub.f32 %v518_v24, %v9126_v26  ;;  %v521_v33 = vld [vmem:[%s8205_s23 + $0xb0] sm:$0xff] }
  0xdb   : > { %12210 = vst [vmem:[#allocation129_spill] sm:$0xff] %v9145_v62  ;;  %3745 = vmatmul.mubr.f32.gmra.mrb[6].mxu0 %v12211_v39  ;;  %v9160_v15 = vand.u32 4294901760, %v517_v57  ;;  %v522_v39 = vld [vmem:[%s8205_s23 + $0xb8] sm:$0xff]  ;;  %v909_v13 = vand.u32 4294901760, %v908_v2  ;;  %v919_v34 = vand.u32 4294901760, %v918_v6  ;;  %v9167_v28 = vsub.f32 %v9105_v9, %v11540_v10 }
  0xdc   : > { %3753 = vmatprep.mubr.f32.mxu0 %v12212_v43  ;;  %12213 = vst [vmem:[#allocation130_spill] sm:$0xff] %v9158_v5  ;;  %v1918_v11 = vand.u32 4294901760, %v8316_v40  ;;  %v925_v43 = vand.u32 4294901760, %v9139_v14  ;;  %v9173_v51 = vand.u32 4294901760, %v520_v44  ;;  %v12216_v2 = vand.u32 4294901760, %v9013_v21 }
  0xdd   : > { %12214 = vst [vmem:[#allocation131_spill] sm:$0xff] %v9160_v15  ;;  %894 = vmatmul.mubr.f32.gmra.mrb[8].mxu1 %v893_v8  ;;  %v9178_v6 = vand.u32 4294901760, %v519_v46  ;;  %v9180_v10 = vand.u32 4294901760, %v522_v39  ;;  %v1930_v4 = vand.u32 4294901760, %v8321_v42  ;;  %v12219_v14 = vand.u32 4294901760, %v9068_v47  ;;  %v524_v8 = vld [vmem:[%s8205_s23 + $0xc8] sm:$0xff] }
  0xde   : > { %12215 = vst [vmem:[#allocation132_spill] sm:$0xff] %v9173_v51  ;;  %v1919_v58 = vsub.f32 %v8316_v40, %v1918_v11  ;;  %904 = vmatprep.mubr.f32.mxu1 %v903_v48  ;;  %v9188_v1 = vsub.f32 %v517_v57, %v9160_v15  ;;  %v1936_v21 = vand.u32 4294901760, %v8331_v53  ;;  %v9193_v50 = vand.u32 4294901760, %v521_v33 }
  0xdf   : > { %3757 = vmatmul.mubr.f32.gmra.mrb[8].mxu0 %v12216_v2  ;;  %12217 = vst [vmem:[#allocation133_spill] sm:$0xff] %v9178_v6  ;;  %12218 = vst [vmem:[#allocation134_spill] sm:$0xff] %v9180_v10  ;;  %v1924_v2 = vand.u32 4294901760, %v8329_v52  ;;  %v1931_v36 = vsub.f32 %v8321_v42, %v1930_v4  ;;  %v6825_v26 = vpack.c.bf16 %v1930_v4, %v1918_v11  ;;  %v12223_v47 = vand.u32 4294901760, %v9072_v55 }
  0xe0   : > { %3765 = vmatprep.mubr.f32.mxu0 %v12219_v14  ;;  %12220 = vst [vmem:[#allocation135_spill] sm:$0xff] %v9188_v1  ;;  %12221 = vst [vmem:[#allocation136_spill] sm:$0xff] %v9193_v50  ;;  %v1920_v18 = vand.u32 4294901760, %v1919_v58  ;;  %v9197_v48 = vsub.f32 %v520_v44, %v9173_v51  ;;  %v1937_v24 = vsub.f32 %v8331_v53, %v1936_v21  ;;  %v935_v15 = vand.u32 4294901760, %v9155_v17 }
  0xe1   : > { %v1925_v14 = vsub.f32 %v8329_v52, %v1924_v2  ;;  %v6827_v57 = vpack.c.bf16 %v1936_v21, %v1924_v2  ;;  %910 = vmatmul.mubr.f32.gmra.mrb[10].mxu1 %v909_v13  ;;  %v9205_v58 = vsub.f32 %v519_v46, %v9178_v6  ;;  %v9207_v4 = vand.u32 4294901760, %v524_v8  ;;  %6826 = vmatprep.subr.bf16.mxu0 %v6825_v26 }
  0xe2   : > { %12222 = vst [vmem:[#allocation137_spill] sm:$0xff] %v9197_v48  ;;  %v1932_v44 = vand.u32 4294901760, %v1931_v36  ;;  %920 = vmatprep.mubr.f32.mxu1 %v919_v34  ;;  %v12226_v11 = vand.u32 4294901760, %v9075_v12  ;;  %v12227_v51 = vand.u32 4294901760, %v9142_v41  ;;  %v11558_v13 = vand.u32 4294901760, %v9188_v1  ;;  %v523_v34 = vld [vmem:[%s8205_s23 + $0xc0] sm:$0xff] }
  0xe3   : > { %3769 = vmatmul.mubr.f32.gmra.mrb[10].mxu0 %v12223_v47  ;;  %12224 = vst [vmem:[#allocation138_spill] sm:$0xff] %v9205_v58  ;;  %12225 = vst [vmem:[#allocation139_spill] sm:$0xff] %v9207_v4  ;;  %v1926_v47 = vand.u32 4294901760, %v1925_v14  ;;  %v1938_v2 = vand.u32 4294901760, %v1937_v24  ;;  %v12228_v17 = vand.u32 4294901760, %v9145_v62  ;;  %v12229_v55 = vand.u32 4294901760, %v9158_v5 }
  0xe4   : > { %3777 = vmatprep.mubr.f32.mxu0 %v12226_v11  ;;  %v950_v21 = vsub.f32 %v9142_v41, %v12227_v51  ;;  %v6633_v6 = vpack.c.bf16 %v1932_v44, %v1920_v18  ;;  %v526_v11 = vld [vmem:[%s8205_s23 + $0xd8] sm:$0xff]  ;;  %v11559_v12 = vand.u32 4294901760, %v9197_v48  ;;  %v9225_v51 = vsub.f32 %v522_v39, %v9180_v10  ;;  %6828 = vmatpush1.bf16.msra.mxu0 %v6827_v57 }
  0xe5   : > { %v956_v46 = vsub.f32 %v9145_v62, %v12228_v17  ;;  %v966_v36 = vsub.f32 %v9158_v5, %v12229_v55  ;;  %v9228_v24 = vsub.f32 %v521_v33, %v9193_v50  ;;  %v6635_v14 = vpack.c.bf16 %v1938_v2, %v1926_v47  ;;  %926 = vmatmul.mubr.f32.gmra.mrb[12].mxu1 %v925_v43 }
  0xe6   : > { %12230 = vst [vmem:[#allocation140_spill] sm:$0xff] %v9225_v51  ;;  %v12232_v17 = vand.u32 4294901760, %v9085_v16  ;;  %v941_v18 = vand.u32 4294901760, %v9167_v28  ;;  %v11560_v55 = vand.u32 4294901760, %v9205_v58  ;;  %v9235_v26 = vsub.f32 %v524_v8, %v9207_v4  ;;  %936 = vmatprep.mubr.f32.mxu1 %v935_v15  ;;  %v525_v28 = vld [vmem:[%s8205_s23 + $0xd0] sm:$0xff]  ;;  %6634 = vmatprep.subr.bf16.mxu1 %v6633_v6  ;;  %v528_v8 = vld [vmem:[%s8205_s23 + $0xe8] sm:$0xff] }
  0xe7   : > { %12231 = vst [vmem:[#allocation141_spill] sm:$0xff] %v9228_v24  ;;  %v12234_v39 = vand.u32 4294901760, %v9088_v61  ;;  %v951_v33 = vand.u32 4294901760, %v950_v21  ;;  %v972_v43 = vsub.f32 %v9188_v1, %v11558_v13  ;;  %v9242_v57 = vand.u32 4294901760, %v523_v34  ;;  %6636 = vmatpush1.bf16.msra.mxu1 %v6635_v14 }
  0xe8   : > { %3781 = vmatmul.mubr.f32.gmra.mrb[12].mxu0 %v12232_v17  ;;  %12233 = vst [vmem:[#allocation142_spill] sm:$0xff] %v9235_v26  ;;  %v9244_v44 = vand.u32 4294901760, %v526_v11  ;;  %v957_v47 = vand.u32 4294901760, %v956_v46  ;;  %v967_v2 = vand.u32 4294901760, %v966_v36  ;;  %v982_v15 = vsub.f32 %v9197_v48, %v11559_v12  ;;  %v530_v12 = vld [vmem:[%s8205_s23 + $0xf8] sm:$0xff] }
  0xe9   : > { %3789 = vmatprep.mubr.f32.mxu0 %v12234_v39  ;;  %12235 = vst [vmem:[#allocation143_spill] sm:$0xff] %v9242_v57  ;;  %v527_v39 = vld [vmem:[%s8205_s23 + $0xe0] sm:$0xff]  ;;  %942 = vmatmul.mubr.f32.gmra.mrb[14].mxu1 %v941_v18  ;;  %v12237_v13 = vand.u32 4294901760, %v9105_v9  ;;  %v9259_v6 = vsub.f32 %v9205_v58, %v11560_v55  ;;  %v9262_v36 = vand.u32 4294901760, %v525_v28  ;;  %v1942_v21 = vand.u32 4294901760, %v8333_v54 }
  0xea   : > { %12236 = vst [vmem:[#allocation144_spill] sm:$0xff] %v9244_v44  ;;  %952 = vmatprep.mubr.f32.mxu1 %v951_v33  ;;  %v12239_v14 = vand.u32 4294901760, %v9142_v41  ;;  %v973_v18 = vand.u32 4294901760, %v972_v43  ;;  %v9272_v17 = vsub.f32 %v526_v11, %v9244_v44  ;;  %v9274_v55 = vand.u32 4294901760, %v528_v8 }
  0xeb   : > { %12238 = vst [vmem:[#allocation145_spill] sm:$0xff] %v9262_v36  ;;  %v9276_v46 = vand.u32 4294901760, %v527_v39  ;;  %v1943_v9 = vsub.f32 %v8333_v54, %v1942_v21  ;;  %v1954_v61 = vand.u32 4294901760, %v8339_v59  ;;  %v1948_v33 = vand.u32 4294901760, %v8341_v60 }
  0xec   : > { %3793 = vmatmul.mubr.f32.gmra.mrb[14].mxu0 %v12237_v13  ;;  %v9269_v13 = vsub.f32 %v523_v34, %v9242_v57  ;;  %12241 = vst [vmem:[#allocation147_spill] sm:$0xff] %v9272_v17  ;;  %12242 = vst [vmem:[#allocation148_spill] sm:$0xff] %v9274_v55  ;;  %v983_v41 = vand.u32 4294901760, %v982_v15  ;;  %v9284_v34 = vand.u32 4294901760, %v530_v12  ;;  %v1960_v11 = vand.u32 4294901760, %v8349_v63  ;;  %v529_v57 = vld [vmem:[%s8205_s23 + $0xf0] sm:$0xff] }
  0xed   : > { %3801 = vmatprep.mubr.f32.mxu0 %v12239_v14  ;;  %12243 = vst [vmem:[#allocation149_spill] sm:$0xff] %v9276_v46  ;;  %v12244_v14 = vand.u32 4294901760, %v9225_v51  ;;  %958 = vmatmul.mubr.f32.gmra.mrb[16].mxu1 %v957_v47  ;;  %v12246_v16 = vand.u32 4294901760, %v9145_v62  ;;  %v9290_v44 = vsub.f32 %v525_v28, %v9262_v36  ;;  %v1944_v4 = vand.u32 4294901760, %v1943_v9 }
  0xee   : > { %12240 = vst [vmem:[#allocation146_spill] sm:$0xff] %v9269_v13  ;;  %12245 = vst [vmem:[#allocation150_spill] sm:$0xff] %v9284_v34  ;;  %v1955_v50 = vsub.f32 %v8339_v59, %v1954_v61  ;;  %v6829_v15 = vpack.c.bf16 %v1954_v61, %v1942_v21  ;;  %968 = vmatprep.mubr.f32.mxu1 %v967_v2  ;;  %v12248_v10 = vand.u32 4294901760, %v9158_v5  ;;  %v9309_v2 = vand.u32 4294901760, %v529_v57 }
  0xef   : > { %v998_v43 = vsub.f32 %v9225_v51, %v12244_v14  ;;  %12247 = vst [vmem:[#allocation151_spill] sm:$0xff] %v9290_v44  ;;  %v1949_v20 = vsub.f32 %v8341_v60, %v1948_v33  ;;  %v1961_v47 = vsub.f32 %v8349_v63, %v1960_v11  ;;  %v9301_v62 = vsub.f32 %v528_v8, %v9274_v55 }
  0xf0   : > { %3805 = vmatmul.mubr.f32.gmra.mrb[16].mxu0 %v12246_v16  ;;  %v6831_v16 = vpack.c.bf16 %v1960_v11, %v1948_v33  ;;  %v9304_v9 = vsub.f32 %v527_v39, %v9276_v46  ;;  %v1956_v61 = vand.u32 4294901760, %v1955_v50  ;;  %6830 = vmatprep.subr.bf16.mxu0 %v6829_v15  ;;  %12252 = vst [vmem:[#allocation155_spill] sm:$0xff] %v9309_v2  ;;  %v12253_v33 = vand.u32 4294901760, %v9188_v1  ;;  %v532_v11 = vld [vmem:[%s8205_s23 + $0x108] sm:$0xff] }
  0xf1   : > { %3813 = vmatprep.mubr.f32.mxu0 %v12248_v10  ;;  %12249 = vst [vmem:[#allocation152_spill] sm:$0xff] %v9301_v62  ;;  %v9307_v10 = vsub.f32 %v530_v12, %v9284_v34  ;;  %v1950_v21 = vand.u32 4294901760, %v1949_v20  ;;  %v1962_v14 = vand.u32 4294901760, %v1961_v47  ;;  %974 = vmatmul.mubr.f32.gmra.mrb[18].mxu1 %v973_v18  ;;  %v989_v8 = vand.u32 4294901760, %v9259_v6 }
  0xf2   : > { %12250 = vst [vmem:[#allocation153_spill] sm:$0xff] %v9304_v9  ;;  %6832 = vmatpush1.bf16.msra.mxu0 %v6831_v16  ;;  %v12254_v39 = vand.u32 4294901760, %v9228_v24  ;;  %v6637_v12 = vpack.c.bf16 %v1956_v61, %v1944_v4  ;;  %984 = vmatprep.mubr.f32.mxu1 %v983_v41  ;;  %v12255_v15 = vand.u32 4294901760, %v9197_v48  ;;  %v999_v20 = vand.u32 4294901760, %v998_v43  ;;  %v534_v43 = vld [vmem:[%s8205_s23 + $0x118] sm:$0xff] }
  0xf3   : > { %12251 = vst [vmem:[#allocation154_spill] sm:$0xff] %v9307_v10  ;;  %v12256_v47 = vand.u32 4294901760, %v9235_v26  ;;  %v11580_v16 = vand.u32 4294901760, %v9290_v44  ;;  %v6639_v28 = vpack.c.bf16 %v1962_v14, %v1950_v21  ;;  %v12257_v6 = vand.u32 4294901760, %v9269_v13 }
  0xf4   : > { %3817 = vmatmul.mubr.f32.gmra.mrb[18].mxu0 %v12253_v33  ;;  %v1004_v50 = vsub.f32 %v9228_v24, %v12254_v39  ;;  %v531_v33 = vld [vmem:[%s8205_s23 + $0x100] sm:$0xff]  ;;  %v12258_v39 = vand.u32 4294901760, %v9272_v17  ;;  %v11581_v4 = vand.u32 4294901760, %v9301_v62  ;;  %6638 = vmatprep.subr.bf16.mxu1 %v6637_v12  ;;  %v9338_v14 = vand.u32 4294901760, %v532_v11 }
  0xf5   : > { %3825 = vmatprep.mubr.f32.mxu0 %v12255_v15  ;;  %v1014_v18 = vsub.f32 %v9235_v26, %v12256_v47  ;;  %v1020_v1 = vsub.f32 %v9269_v13, %v12257_v6  ;;  %v9336_v47 = vsub.f32 %v529_v57, %v9309_v2  ;;  %6640 = vmatpush1.bf16.msra.mxu1 %v6639_v28  ;;  %v12261_v21 = vand.u32 4294901760, %v9205_v58 }
  0xf6   : > { %v1030_v41 = vsub.f32 %v9272_v17, %v12258_v39  ;;  %12260 = vst [vmem:[#allocation157_spill] sm:$0xff] %v9338_v14  ;;  %990 = vmatmul.mubr.f32.gmra.mrb[20].mxu1 %v989_v8  ;;  %v1005_v6 = vand.u32 4294901760, %v1004_v50  ;;  %v9342_v39 = vand.u32 4294901760, %v531_v33  ;;  %v12263_v12 = vand.u32 4294901760, %v9225_v51 }
  0xf7   : > { %12259 = vst [vmem:[#allocation156_spill] sm:$0xff] %v9336_v47  ;;  %1000 = vmatprep.mubr.f32.mxu1 %v999_v20  ;;  %v1015_v15 = vand.u32 4294901760, %v1014_v18  ;;  %v1036_v57 = vsub.f32 %v9290_v44, %v11580_v16  ;;  %v9349_v61 = vand.u32 4294901760, %v534_v43  ;;  %v1021_v28 = vand.u32 4294901760, %v1020_v1 }
  0xf8   : > { %3829 = vmatmul.mubr.f32.gmra.mrb[20].mxu0 %v12261_v21  ;;  %12262 = vst [vmem:[#allocation158_spill] sm:$0xff] %v9342_v39  ;;  %v1031_v8 = vand.u32 4294901760, %v1030_v41  ;;  %v1046_v50 = vsub.f32 %v9301_v62, %v11581_v4  ;;  %v533_v21 = vld [vmem:[%s8205_s23 + $0x110] sm:$0xff]  ;;  %v1966_v20 = vand.u32 4294901760, %v8351_v22  ;;  %v12265_v51 = vand.u32 4294901760, %v9304_v9  ;;  %v536_v4 = vld [vmem:[%s8205_s23 + $0x128] sm:$0xff] }
  0xf9   : > { %3837 = vmatprep.mubr.f32.mxu0 %v12263_v12  ;;  %12264 = vst [vmem:[#allocation159_spill] sm:$0xff] %v9349_v61  ;;  %v12266_v12 = vand.u32 4294901760, %v9307_v10  ;;  %v9368_v41 = vsub.f32 %v532_v11, %v9338_v14  ;;  %v12268_v58 = vand.u32 4294901760, %v9228_v24  ;;  %v9374_v48 = vsub.f32 %v531_v33, %v9342_v39  ;;  %v538_v39 = vld [vmem:[%s8205_s23 + $0x138] sm:$0xff] }
  0xfa   : > { %v9359_v18 = vsub.f32 %v9304_v9, %v12265_v51  ;;  %1006 = vmatmul.mubr.f32.gmra.mrb[22].mxu1 %v1005_v6  ;;  %v535_v51 = vld [vmem:[%s8205_s23 + $0x120] sm:$0xff]  ;;  %v1967_v5 = vsub.f32 %v8351_v22, %v1966_v20  ;;  %v1972_v2 = vand.u32 4294901760, %v8365_v38  ;;  %v12270_v11 = vand.u32 4294901760, %v9235_v26 }
  0xfb   : > { %v9364_v16 = vsub.f32 %v9307_v10, %v12266_v12  ;;  %12267 = vst [vmem:[#allocation160_spill] sm:$0xff] %v9368_v41  ;;  %12269 = vst [vmem:[#allocation161_spill] sm:$0xff] %v9374_v48  ;;  %v1978_v12 = vand.u32 4294901760, %v8363_v37  ;;  %1016 = vmatprep.mubr.f32.mxu1 %v1015_v15  ;;  %v1037_v1 = vand.u32 4294901760, %v1036_v57  ;;  %v9383_v6 = vsub.f32 %v534_v43, %v9349_v61  ;;  %v540_v61 = vld [vmem:[%s8205_s23 + $0x148] sm:$0xff] }
  0xfc   : > { %3841 = vmatmul.mubr.f32.gmra.mrb[22].mxu0 %v12268_v58  ;;  %v9385_v24 = vand.u32 4294901760, %v533_v21  ;;  %v1984_v58 = vand.u32 4294901760, %v8374_v27  ;;  %v9388_v33 = vand.u32 4294901760, %v536_v4  ;;  %v1968_v14 = vand.u32 4294901760, %v1967_v5 }
  0xfd   : > { %3849 = vmatprep.mubr.f32.mxu0 %v12270_v11  ;;  %12271 = vst [vmem:[#allocation162_spill] sm:$0xff] %v9383_v6  ;;  %v1979_v34 = vsub.f32 %v8363_v37, %v1978_v12  ;;  %v6833_v46 = vpack.c.bf16 %v1978_v12, %v1966_v20  ;;  %v9392_v55 = vand.u32 4294901760, %v535_v51  ;;  %v1973_v15 = vsub.f32 %v8365_v38, %v1972_v2 }
  0xfe   : > { %12272 = vst [vmem:[#allocation163_spill] sm:$0xff] %v9385_v24  ;;  %12273 = vst [vmem:[#allocation164_spill] sm:$0xff] %v9388_v33  ;;  %v1985_v57 = vsub.f32 %v8374_v27, %v1984_v58  ;;  %v6835_v43 = vpack.c.bf16 %v1984_v58, %v1972_v2  ;;  %1022 = vmatmul.mubr.f32.gmra.mrb[24].mxu1 %v1021_v28  ;;  %v12275_v11 = vand.u32 4294901760, %v9269_v13  ;;  %v1047_v26 = vand.u32 4294901760, %v1046_v50 }
  0xff   : > { %12274 = vst [vmem:[#allocation165_spill] sm:$0xff] %v9392_v55  ;;  %v11607_v5 = vand.u32 4294901760, %v9374_v48  ;;  %v1980_v20 = vand.u32 4294901760, %v1979_v34  ;;  %1032 = vmatprep.mubr.f32.mxu1 %v1031_v8  ;;  %v12276_v12 = vand.u32 4294901760, %v9272_v17  ;;  %v11606_v36 = vand.u32 4294901760, %v9383_v6  ;;  %6834 = vmatprep.subr.bf16.mxu0 %v6833_v46 }
 0x100   : > { %3853 = vmatmul.mubr.f32.gmra.mrb[24].mxu0 %v12275_v11  ;;  %v9403_v32 = vand.u32 4294901760, %v538_v39  ;;  %v1974_v2 = vand.u32 4294901760, %v1973_v15  ;;  %v1986_v28 = vand.u32 4294901760, %v1985_v57  ;;  %v12278_v58 = vand.u32 4294901760, %v9336_v47  ;;  %v537_v11 = vld [vmem:[%s8205_s23 + $0x130] sm:$0xff]  ;;  %v539_v15 = vld [vmem:[%s8205_s23 + $0x140] sm:$0xff] }
 0x101   : > { %3861 = vmatprep.mubr.f32.mxu0 %v12276_v12  ;;  %v6641_v13 = vpack.c.bf16 %v1980_v20, %v1968_v14  ;;  %v9411_v34 = vsub.f32 %v533_v21, %v9385_v24  ;;  %v9414_v8 = vsub.f32 %v536_v4, %v9388_v33  ;;  %v9417_v12 = vsub.f32 %v535_v51, %v9392_v55  ;;  %v546_v33 = vld [vmem:[%s8205_s23 + $0x178] sm:$0xff] }
 0x102   : > { %12277 = vst [vmem:[#allocation166_spill] sm:$0xff] %v9403_v32  ;;  %v1068_v50 = vsub.f32 %v9336_v47, %v12278_v58  ;;  %v6643_v57 = vpack.c.bf16 %v1986_v28, %v1974_v2  ;;  %6836 = vmatpush1.bf16.msra.mxu0 %v6835_v43  ;;  %1038 = vmatmul.mubr.f32.gmra.mrb[26].mxu1 %v1037_v1  ;;  %v12282_v58 = vand.u32 4294901760, %v9290_v44  ;;  %v1053_v14 = vand.u32 4294901760, %v9359_v18  ;;  %v542_v2 = vld [vmem:[%s8205_s23 + $0x158] sm:$0xff] }
 0x103   : > { %12279 = vst [vmem:[#allocation167_spill] sm:$0xff] %v9411_v34  ;;  %12280 = vst [vmem:[#allocation168_spill] sm:$0xff] %v9414_v8  ;;  %v1063_v46 = vand.u32 4294901760, %v9364_v16  ;;  %v12283_v21 = vand.u32 4294901760, %v9368_v41  ;;  %v1084_v51 = vsub.f32 %v9374_v48, %v11607_v5  ;;  %1048 = vmatprep.mubr.f32.mxu1 %v1047_v26  ;;  %v12284_v20 = vand.u32 4294901760, %v9301_v62  ;;  %6642 = vmatprep.subr.bf16.mxu1 %v6641_v13 }
 0x104   : > { %12281 = vst [vmem:[#allocation169_spill] sm:$0xff] %v9417_v12  ;;  %3865 = vmatmul.mubr.f32.gmra.mrb[26].mxu0 %v12282_v58  ;;  %v9435_v1 = vsub.f32 %v9383_v6, %v11606_v36  ;;  %v9438_v18 = vsub.f32 %v538_v39, %v9403_v32  ;;  %v9440_v16 = vand.u32 4294901760, %v537_v11  ;;  %v9442_v43 = vand.u32 4294901760, %v540_v61  ;;  %6644 = vmatpush1.bf16.msra.mxu1 %v6643_v57 }
 0x105   : > { %v1078_v4 = vsub.f32 %v9368_v41, %v12283_v21  ;;  %3873 = vmatprep.mubr.f32.mxu0 %v12284_v20  ;;  %v9445_v28 = vand.u32 4294901760, %v539_v15  ;;  %v1069_v26 = vand.u32 4294901760, %v1068_v50  ;;  %v11615_v58 = vand.u32 4294901760, %v9411_v34 }
 0x106   : > { %12285 = vst [vmem:[#allocation170_spill] sm:$0xff] %v9438_v18  ;;  %12286 = vst [vmem:[#allocation171_spill] sm:$0xff] %v9440_v16  ;;  %v11620_v21 = vand.u32 4294901760, %v9414_v8  ;;  %1054 = vmatmul.mubr.f32.gmra.mrb[28].mxu1 %v1053_v14  ;;  %v12289_v39 = vand.u32 4294901760, %v9304_v9  ;;  %v1085_v5 = vand.u32 4294901760, %v1084_v51  ;;  %v9452_v62 = vand.u32 4294901760, %v542_v2 }
 0x107   : > { %12287 = vst [vmem:[#allocation172_spill] sm:$0xff] %v9442_v43  ;;  %12288 = vst [vmem:[#allocation173_spill] sm:$0xff] %v9445_v28  ;;  %v1079_v36 = vand.u32 4294901760, %v1078_v4  ;;  %v1990_v44 = vand.u32 4294901760, %v8376_v45  ;;  %1064 = vmatprep.mubr.f32.mxu1 %v1063_v46  ;;  %v12291_v13 = vand.u32 4294901760, %v9307_v10  ;;  %v1095_v50 = vand.u32 4294901760, %v9435_v1 }
 0x108   : > { %3877 = vmatmul.mubr.f32.gmra.mrb[28].mxu0 %v12289_v39  ;;  %12290 = vst [vmem:[#allocation174_spill] sm:$0xff] %v9452_v62  ;;  %v9460_v14 = vsub.f32 %v537_v11, %v9440_v16  ;;  %v9463_v4 = vsub.f32 %v540_v61, %v9442_v43  ;;  %v9466_v51 = vsub.f32 %v539_v15, %v9445_v28  ;;  %v2002_v39 = vand.u32 4294901760, %v8389_v25  ;;  %v541_v15 = vld [vmem:[%s8205_s23 + $0x150] sm:$0xff]  ;;  %v12297_v10 = vld [vmem:[#allocation30_spill] sm:$0xff] }
 0x109   : > { %3885 = vmatprep.mubr.f32.mxu0 %v12291_v13  ;;  %v1991_v46 = vsub.f32 %v8376_v45, %v1990_v44  ;;  %v12295_v13 = vld [vmem:[#allocation28_spill] sm:$0xff]  ;;  %v1100_v1 = vsub.f32 %v9411_v34, %v11615_v58  ;;  %v1110_v11 = vsub.f32 %v9414_v8, %v11620_v21  ;;  %v12296_v61 = vand.u32 4294901760, %v9417_v12  ;;  %v544_v58 = vld [vmem:[%s8205_s23 + $0x168] sm:$0xff]  ;;  %v543_v43 = vld [vmem:[%s8205_s23 + $0x160] sm:$0xff] }
 0x10a   : > { %12292 = vst [vmem:[#allocation175_spill] sm:$0xff] %v9460_v14  ;;  %12293 = vst [vmem:[#allocation176_spill] sm:$0xff] %v9463_v4  ;;  %v1996_v20 = vand.u32 4294901760, %v12295_v13  ;;  %v2008_v9 = vand.u32 4294901760, %v12297_v10  ;;  %1070 = vmatmul.mubr.f32.gmra.mrb[30].mxu1 %v1069_v26  ;;  %v12298_v17 = vand.u32 4294901760, %v9336_v47  ;;  %v9487_v28 = vsub.f32 %v542_v2, %v9452_v62 }
 0x10b   : > { %12294 = vst [vmem:[#allocation177_spill] sm:$0xff] %v9466_v51  ;;  %v9480_v57 = vsub.f32 %v9417_v12, %v12296_v61  ;;  %v1992_v16 = vand.u32 4294901760, %v1991_v46  ;;  %v2003_v21 = vsub.f32 %v8389_v25, %v2002_v39  ;;  %v6837_v32 = vpack.c.bf16 %v2002_v39, %v1990_v44  ;;  %1080 = vmatprep.mubr.f32.mxu1 %v1079_v36 }
 0x10c   : > { %3889 = vmatmul.mubr.f32.gmra.mrb[30].mxu0 %v12298_v17  ;;  %12299 = vst [vmem:[#allocation28_spill] sm:$0xff] %v9487_v28  ;;  %v12300_v61 = vand.u32 4294901760, %v9368_v41  ;;  %v1997_v26 = vsub.f32 %v12295_v13, %v1996_v20  ;;  %v2009_v17 = vsub.f32 %v12297_v10, %v2008_v9  ;;  %v6839_v47 = vpack.c.bf16 %v2008_v9, %v1996_v20 }
 0x10d   : > { %v9499_v46 = vand.u32 4294901760, %v541_v15  ;;  %v2004_v44 = vand.u32 4294901760, %v2003_v21  ;;  %6838 = vmatprep.subr.bf16.mxu0 %v6837_v32  ;;  %v9502_v36 = vand.u32 4294901760, %v544_v58  ;;  %v9504_v39 = vand.u32 4294901760, %v543_v43  ;;  %v545_v21 = vld [vmem:[%s8205_s23 + $0x170] sm:$0xff] }
 0x10e   : > { %3897 = vmatprep.mubr.f32.mxu0 %v12300_v61  ;;  %v1998_v61 = vand.u32 4294901760, %v1997_v26  ;;  %v2010_v55 = vand.u32 4294901760, %v2009_v17  ;;  %6840 = vmatpush1.bf16.msra.mxu0 %v6839_v47  ;;  %v12304_v9 = vand.u32 4294901760, %v9374_v48  ;;  %v1101_v20 = vand.u32 4294901760, %v1100_v1  ;;  %v548_v1 = vld [vmem:[%s8205_s23 + $0x188] sm:$0xff]  ;;  %v12319_v48 = vld [vmem:[#allocation32_spill] sm:$0xff] }
 0x10f   : > { %12301 = vst [vmem:[#allocation30_spill] sm:$0xff] %v9499_v46  ;;  %12302 = vst [vmem:[#allocation178_spill] sm:$0xff] %v9502_v36  ;;  %1086 = vmatmul.mubr.f32.gmra.mrb[32].mxu1 %v1085_v5  ;;  %v1111_v2 = vand.u32 4294901760, %v1110_v11  ;;  %v12305_v62 = vand.u32 4294901760, %v9438_v18  ;;  %v6645_v32 = vpack.c.bf16 %v2004_v44, %v1992_v16  ;;  %v12306_v24 = vand.u32 4294901760, %v9383_v6 }
 0x110   : > { %12303 = vst [vmem:[#allocation179_spill] sm:$0xff] %v9504_v39  ;;  %3901 = vmatmul.mubr.f32.gmra.mrb[32].mxu0 %v12304_v9  ;;  %1096 = vmatprep.mubr.f32.mxu1 %v1095_v50  ;;  %v12307_v26 = vand.u32 4294901760, %v9460_v14  ;;  %v11637_v5 = vand.u32 4294901760, %v9487_v28  ;;  %v9518_v17 = vand.u32 4294901760, %v546_v33  ;;  %v6647_v11 = vpack.c.bf16 %v2010_v55, %v1998_v61 }
 0x111   : > { %v1126_v41 = vsub.f32 %v9438_v18, %v12305_v62  ;;  %3909 = vmatprep.mubr.f32.mxu0 %v12306_v24  ;;  %v12309_v9 = vand.u32 4294901760, %v9463_v4  ;;  %v12310_v16 = vand.u32 4294901760, %v9466_v51  ;;  %v9530_v24 = vsub.f32 %v541_v15, %v9499_v46  ;;  %6646 = vmatprep.subr.bf16.mxu1 %v6645_v32  ;;  %v547_v15 = vld [vmem:[%s8205_s23 + $0x180] sm:$0xff] }
 0x112   : > { %v1132_v47 = vsub.f32 %v9460_v14, %v12307_v26  ;;  %12308 = vst [vmem:[#allocation180_spill] sm:$0xff] %v9518_v17  ;;  %v9533_v44 = vsub.f32 %v544_v58, %v9502_v36  ;;  %v9536_v26 = vsub.f32 %v543_v43, %v9504_v39  ;;  %v9538_v55 = vand.u32 4294901760, %v545_v21  ;;  %6648 = vmatpush1.bf16.msra.mxu1 %v6647_v11  ;;  %v549_v39 = vld [vmem:[%s8205_s23 + $0x190] sm:$0xff] }
 0x113   : > { %v1142_v62 = vsub.f32 %v9463_v4, %v12309_v9  ;;  %v9527_v50 = vsub.f32 %v9466_v51, %v12310_v16  ;;  %12311 = vst [vmem:[#allocation181_spill] sm:$0xff] %v9530_v24  ;;  %1102 = vmatmul.mubr.f32.gmra.mrb[34].mxu1 %v1101_v20  ;;  %v12315_v61 = vand.u32 4294901760, %v9411_v34  ;;  %v1117_v9 = vand.u32 4294901760, %v9480_v57  ;;  %v550_v34 = vld [vmem:[%s8205_s23 + $0x198] sm:$0xff] }
 0x114   : > { %12312 = vst [vmem:[#allocation182_spill] sm:$0xff] %v9533_v44  ;;  %12313 = vst [vmem:[#allocation183_spill] sm:$0xff] %v9536_v26  ;;  %v9543_v16 = vand.u32 4294901760, %v548_v1  ;;  %1112 = vmatprep.mubr.f32.mxu1 %v1111_v2  ;;  %v12317_v58 = vand.u32 4294901760, %v9414_v8  ;;  %v1127_v32 = vand.u32 4294901760, %v1126_v41  ;;  %v1133_v43 = vand.u32 4294901760, %v1132_v47 }
 0x115   : > { %12314 = vst [vmem:[#allocation184_spill] sm:$0xff] %v9538_v55  ;;  %3913 = vmatmul.mubr.f32.gmra.mrb[34].mxu0 %v12315_v61  ;;  %v1158_v6 = vsub.f32 %v9487_v28, %v11637_v5  ;;  %v9552_v20 = vsub.f32 %v546_v33, %v9518_v17  ;;  %v1143_v11 = vand.u32 4294901760, %v1142_v62  ;;  %v1149_v61 = vand.u32 4294901760, %v9527_v50  ;;  %v12324_v5 = vld [vmem:[#allocation33_spill] sm:$0xff]  ;;  %v12325_v8 = vld [vmem:[#allocation34_spill] sm:$0xff] }
 0x116   : > { %12316 = vst [vmem:[#allocation185_spill] sm:$0xff] %v9543_v16  ;;  %3921 = vmatprep.mubr.f32.mxu0 %v12317_v58  ;;  %v2014_v2 = vand.u32 4294901760, %v12319_v48  ;;  %v9561_v47 = vsub.f32 %v545_v21, %v9538_v55  ;;  %v9563_v58 = vand.u32 4294901760, %v547_v15  ;;  %v12322_v33 = vand.u32 4294901760, %v9417_v12  ;;  %v12328_v12 = vld [vmem:[#allocation36_spill] sm:$0xff] }
 0x117   : > { %12318 = vst [vmem:[#allocation186_spill] sm:$0xff] %v9552_v20  ;;  %1118 = vmatmul.mubr.f32.gmra.mrb[36].mxu1 %v1117_v9  ;;  %v9568_v62 = vsub.f32 %v548_v1, %v9543_v16  ;;  %v2026_v57 = vand.u32 4294901760, %v12324_v5  ;;  %v2020_v17 = vand.u32 4294901760, %v12325_v8  ;;  %v12326_v41 = vand.u32 4294901760, %v9438_v18 }
 0x118   : > { %12320 = vst [vmem:[#allocation187_spill] sm:$0xff] %v9561_v47  ;;  %12321 = vst [vmem:[#allocation188_spill] sm:$0xff] %v9563_v58  ;;  %v2015_v50 = vsub.f32 %v12319_v48, %v2014_v2  ;;  %1128 = vmatprep.mubr.f32.mxu1 %v1127_v32  ;;  %v1159_v21 = vand.u32 4294901760, %v1158_v6  ;;  %v9576_v9 = vand.u32 4294901760, %v550_v34  ;;  %v12329_v1 = vand.u32 4294901760, %v9530_v24 }
 0x119   : > { %3925 = vmatmul.mubr.f32.gmra.mrb[36].mxu0 %v12322_v33  ;;  %12323 = vst [vmem:[#allocation189_spill] sm:$0xff] %v9568_v62  ;;  %v2032_v33 = vand.u32 4294901760, %v12328_v12  ;;  %v2027_v32 = vsub.f32 %v12324_v5, %v2026_v57  ;;  %v6841_v46 = vpack.c.bf16 %v2026_v57, %v2014_v2  ;;  %v2021_v55 = vsub.f32 %v12325_v8, %v2020_v17  ;;  %v552_v2 = vld [vmem:[%s8205_s23 + $0x1a8] sm:$0xff]  ;;  %v565_v5 = vld [vmem:[%s8205_s23 + $0x210] sm:$0xff] }
 0x11a   : > { %3933 = vmatprep.mubr.f32.mxu0 %v12326_v41  ;;  %12327 = vst [vmem:[#allocation190_spill] sm:$0xff] %v9576_v9  ;;  %v1164_v16 = vsub.f32 %v9530_v24, %v12329_v1  ;;  %v2016_v36 = vand.u32 4294901760, %v2015_v50  ;;  %v12330_v41 = vand.u32 4294901760, %v9533_v44  ;;  %v12331_v35 = vand.u32 4294901760, %v9460_v14  ;;  %v554_v1 = vld [vmem:[%s8205_s23 + $0x1b8] sm:$0xff] }
 0x11b   : > { %v2033_v18 = vsub.f32 %v12328_v12, %v2032_v33  ;;  %v6843_v7 = vpack.c.bf16 %v2032_v33, %v2020_v17  ;;  %1134 = vmatmul.mubr.f32.gmra.mrb[38].mxu1 %v1133_v43  ;;  %v9594_v57 = vsub.f32 %v547_v15, %v9563_v58  ;;  %v2028_v0 = vand.u32 4294901760, %v2027_v32  ;;  %6842 = vmatprep.subr.bf16.mxu0 %v6841_v46 }
 0x11c   : > { %v1174_v6 = vsub.f32 %v9533_v44, %v12330_v41  ;;  %v551_v41 = vld [vmem:[%s8205_s23 + $0x1a0] sm:$0xff]  ;;  %1144 = vmatprep.mubr.f32.mxu1 %v1143_v11  ;;  %v12333_v12 = vand.u32 4294901760, %v9463_v4  ;;  %v9601_v17 = vsub.f32 %v550_v34, %v9576_v9  ;;  %v9603_v43 = vand.u32 4294901760, %v549_v39  ;;  %v553_v34 = vld [vmem:[%s8205_s23 + $0x1b0] sm:$0xff] }
 0x11d   : > { %3937 = vmatmul.mubr.f32.gmra.mrb[38].mxu0 %v12331_v35  ;;  %12332 = vst [vmem:[#allocation191_spill] sm:$0xff] %v9594_v57  ;;  %v2022_v35 = vand.u32 4294901760, %v2021_v55  ;;  %v2034_v33 = vand.u32 4294901760, %v2033_v18  ;;  %v12336_v50 = vand.u32 4294901760, %v9536_v26  ;;  %v6649_v14 = vpack.c.bf16 %v2028_v0, %v2016_v36 }
 0x11e   : > { %3945 = vmatprep.mubr.f32.mxu0 %v12333_v12  ;;  %12334 = vst [vmem:[#allocation192_spill] sm:$0xff] %v9601_v17  ;;  %12335 = vst [vmem:[#allocation193_spill] sm:$0xff] %v9603_v43  ;;  %v12337_v32 = vand.u32 4294901760, %v9552_v20  ;;  %v9612_v4 = vand.u32 4294901760, %v552_v2  ;;  %v9614_v12 = vand.u32 4294901760, %v551_v41  ;;  %6844 = vmatpush1.bf16.msra.mxu0 %v6843_v7  ;;  %v12340_v18 = vand.u32 4294901760, %v9466_v51 }
 0x11f   : > { %v1180_v15 = vsub.f32 %v9536_v26, %v12336_v50  ;;  %v6651_v9 = vpack.c.bf16 %v2034_v33, %v2022_v35  ;;  %1150 = vmatmul.mubr.f32.gmra.mrb[40].mxu1 %v1149_v61  ;;  %v1165_v55 = vand.u32 4294901760, %v1164_v16  ;;  %v1175_v50 = vand.u32 4294901760, %v1174_v6  ;;  %v556_v35 = vld [vmem:[%s8205_s23 + $0x1c8] sm:$0xff]  ;;  %6650 = vmatprep.subr.bf16.mxu1 %v6649_v14  ;;  %v12356_v51 = vld [vmem:[#allocation38_spill] sm:$0xff] }
 0x120   : > { %v1190_v11 = vsub.f32 %v9552_v20, %v12337_v32  ;;  %12338 = vst [vmem:[#allocation194_spill] sm:$0xff] %v9612_v4  ;;  %12339 = vst [vmem:[#allocation195_spill] sm:$0xff] %v9614_v12  ;;  %v12341_v0 = vand.u32 4294901760, %v9561_v47  ;;  %v11665_v36 = vand.u32 4294901760, %v9594_v57  ;;  %1160 = vmatprep.mubr.f32.mxu1 %v1159_v21  ;;  %v12342_v32 = vand.u32 4294901760, %v9487_v28  ;;  %v558_v28 = vld [vmem:[%s8205_s23 + $0x1d8] sm:$0xff] }
 0x121   : > { %3949 = vmatmul.mubr.f32.gmra.mrb[40].mxu0 %v12340_v18  ;;  %v12343_v58 = vand.u32 4294901760, %v9568_v62  ;;  %v9632_v16 = vsub.f32 %v549_v39, %v9603_v43  ;;  %v9634_v6 = vand.u32 4294901760, %v554_v1  ;;  %v9637_v33 = vand.u32 4294901760, %v553_v34  ;;  %6652 = vmatpush1.bf16.msra.mxu1 %v6651_v9 }
 0x122   : > { %v1196_v46 = vsub.f32 %v9561_v47, %v12341_v0  ;;  %3957 = vmatprep.mubr.f32.mxu0 %v12342_v32  ;;  %v1181_v21 = vand.u32 4294901760, %v1180_v15  ;;  %v1191_v18 = vand.u32 4294901760, %v1190_v11  ;;  %v9640_v0 = vsub.f32 %v552_v2, %v9612_v4  ;;  %v555_v15 = vld [vmem:[%s8205_s23 + $0x1c0] sm:$0xff]  ;;  %v12351_v2 = vld [vmem:[#allocation37_spill] sm:$0xff] }
 0x123   : > { %v9628_v7 = vsub.f32 %v9568_v62, %v12343_v58  ;;  %12344 = vst [vmem:[#allocation196_spill] sm:$0xff] %v9632_v16  ;;  %12345 = vst [vmem:[#allocation197_spill] sm:$0xff] %v9634_v6  ;;  %v9643_v58 = vsub.f32 %v551_v41, %v9614_v12  ;;  %1166 = vmatmul.mubr.f32.gmra.mrb[42].mxu1 %v1165_v55  ;;  %v12349_v39 = vand.u32 4294901760, %v9530_v24  ;;  %v9652_v14 = vand.u32 4294901760, %v556_v35 }
 0x124   : > { %12346 = vst [vmem:[#allocation198_spill] sm:$0xff] %v9637_v33  ;;  %12347 = vst [vmem:[#allocation199_spill] sm:$0xff] %v9640_v0  ;;  %v1197_v32 = vand.u32 4294901760, %v1196_v46  ;;  %v9650_v61 = vsub.f32 %v9594_v57, %v11665_v36  ;;  %v2038_v11 = vand.u32 4294901760, %v12351_v2  ;;  %1176 = vmatprep.mubr.f32.mxu1 %v1175_v50  ;;  %v12352_v41 = vand.u32 4294901760, %v9533_v44 }
 0x125   : > { %12348 = vst [vmem:[#allocation200_spill] sm:$0xff] %v9643_v58  ;;  %3961 = vmatmul.mubr.f32.gmra.mrb[42].mxu0 %v12349_v39  ;;  %12350 = vst [vmem:[#allocation201_spill] sm:$0xff] %v9652_v14  ;;  %v1207_v9 = vand.u32 4294901760, %v9628_v7  ;;  %v12353_v55 = vand.u32 4294901760, %v9601_v17  ;;  %v9664_v36 = vsub.f32 %v554_v1, %v9634_v6  ;;  %v9667_v24 = vsub.f32 %v553_v34, %v9637_v33  ;;  %v12359_v39 = vld [vmem:[#allocation40_spill] sm:$0xff] }
 0x126   : > { %3969 = vmatprep.mubr.f32.mxu0 %v12352_v41  ;;  %v2039_v50 = vsub.f32 %v12351_v2, %v2038_v11  ;;  %v2050_v44 = vand.u32 4294901760, %v12356_v51  ;;  %v12357_v41 = vld [vmem:[#allocation39_spill] sm:$0xff]  ;;  %v2056_v43 = vand.u32 4294901760, %v12359_v39  ;;  %v12360_v1 = vand.u32 4294901760, %v9536_v26 }
 0x127   : > { %v1222_v46 = vsub.f32 %v9601_v17, %v12353_v55  ;;  %12354 = vst [vmem:[#allocation202_spill] sm:$0xff] %v9664_v36  ;;  %12355 = vst [vmem:[#allocation203_spill] sm:$0xff] %v9667_v24  ;;  %v2044_v12 = vand.u32 4294901760, %v12357_v41  ;;  %v9675_v55 = vand.u32 4294901760, %v555_v15  ;;  %1182 = vmatmul.mubr.f32.gmra.mrb[44].mxu1 %v1181_v21  ;;  %v9681_v34 = vsub.f32 %v556_v35, %v9652_v14 }
 0x128   : > { %v2040_v33 = vand.u32 4294901760, %v2039_v50  ;;  %v2051_v6 = vsub.f32 %v12356_v51, %v2050_v44  ;;  %v6845_v2 = vpack.c.bf16 %v2050_v44, %v2038_v11  ;;  %1192 = vmatprep.mubr.f32.mxu1 %v1191_v18  ;;  %v12362_v7 = vand.u32 4294901760, %v9552_v20  ;;  %v557_v11 = vld [vmem:[%s8205_s23 + $0x1d0] sm:$0xff] }
 0x129   : > { %12358 = vst [vmem:[#allocation204_spill] sm:$0xff] %v9675_v55  ;;  %3973 = vmatmul.mubr.f32.gmra.mrb[44].mxu0 %v12360_v1  ;;  %12361 = vst [vmem:[#allocation205_spill] sm:$0xff] %v9681_v34  ;;  %v9686_v4 = vand.u32 4294901760, %v558_v28  ;;  %v2045_v8 = vsub.f32 %v12357_v41, %v2044_v12  ;;  %v2057_v21 = vsub.f32 %v12359_v39, %v2056_v43  ;;  %v1213_v44 = vand.u32 4294901760, %v9650_v61 }
 0x12a   : > { %3981 = vmatprep.mubr.f32.mxu0 %v12362_v7  ;;  %v6847_v26 = vpack.c.bf16 %v2056_v43, %v2044_v12  ;;  %v2052_v1 = vand.u32 4294901760, %v2051_v6  ;;  %6846 = vmatprep.subr.bf16.mxu0 %v6845_v2  ;;  %v9694_v18 = vsub.f32 %v555_v15, %v9675_v55  ;;  %v12365_v43 = vand.u32 4294901760, %v9561_v47  ;;  %v560_v2 = vld [vmem:[%s8205_s23 + $0x1e8] sm:$0xff]  ;;  %v559_v15 = vld [vmem:[%s8205_s23 + $0x1e0] sm:$0xff]  ;;  %v562_v55 = vld [vmem:[%s8205_s23 + $0x1f8] sm:$0xff] }
 0x12b   : > { %12363 = vst [vmem:[#allocation206_spill] sm:$0xff] %v9686_v4  ;;  %v2046_v7 = vand.u32 4294901760, %v2045_v8  ;;  %v2058_v20 = vand.u32 4294901760, %v2057_v21  ;;  %1198 = vmatmul.mubr.f32.gmra.mrb[46].mxu1 %v1197_v32  ;;  %v1223_v12 = vand.u32 4294901760, %v1222_v46  ;;  %v12366_v35 = vand.u32 4294901760, %v9632_v16 }
 0x12c   : > { %12364 = vst [vmem:[#allocation207_spill] sm:$0xff] %v9694_v18  ;;  %6848 = vmatpush1.bf16.msra.mxu0 %v6847_v26  ;;  %v12367_v6 = vand.u32 4294901760, %v9640_v0  ;;  %v6653_v14 = vpack.c.bf16 %v2052_v1, %v2040_v33  ;;  %1208 = vmatprep.mubr.f32.mxu1 %v1207_v9  ;;  %v12368_v8 = vand.u32 4294901760, %v9568_v62  ;;  %v12369_v26 = vand.u32 4294901760, %v9643_v58 }
 0x12d   : > { %3985 = vmatmul.mubr.f32.gmra.mrb[46].mxu0 %v12365_v43  ;;  %v1228_v50 = vsub.f32 %v9632_v16, %v12366_v35  ;;  %v9715_v21 = vsub.f32 %v558_v28, %v9686_v4  ;;  %v6655_v35 = vpack.c.bf16 %v2058_v20, %v2046_v7  ;;  %v12371_v43 = vand.u32 4294901760, %v9664_v36  ;;  %v561_v4 = vld [vmem:[%s8205_s23 + $0x1f0] sm:$0xff] }
 0x12e   : > { %v1238_v61 = vsub.f32 %v9640_v0, %v12367_v6  ;;  %3993 = vmatprep.mubr.f32.mxu0 %v12368_v8  ;;  %v1244_v32 = vsub.f32 %v9643_v58, %v12369_v26  ;;  %v12372_v33 = vand.u32 4294901760, %v9667_v24  ;;  %v9725_v1 = vand.u32 4294901760, %v557_v11  ;;  %6654 = vmatprep.subr.bf16.mxu1 %v6653_v14 }
 0x12f   : > { %12370 = vst [vmem:[#allocation208_spill] sm:$0xff] %v9715_v21  ;;  %v1254_v6 = vsub.f32 %v9664_v36, %v12371_v43  ;;  %v9728_v26 = vand.u32 4294901760, %v560_v2  ;;  %v9730_v28 = vand.u32 4294901760, %v559_v15  ;;  %v9732_v20 = vand.u32 4294901760, %v562_v55  ;;  %6656 = vmatpush1.bf16.msra.mxu1 %v6655_v35 }
 0x130   : > { %v9723_v9 = vsub.f32 %v9667_v24, %v12372_v33  ;;  %12373 = vst [vmem:[#allocation209_spill] sm:$0xff] %v9725_v1  ;;  %1214 = vmatmul.mubr.f32.gmra.mrb[48].mxu1 %v1213_v44  ;;  %v12377_v7 = vand.u32 4294901760, %v9594_v57  ;;  %v1229_v43 = vand.u32 4294901760, %v1228_v50  ;;  %v12378_v33 = vand.u32 4294901760, %v9601_v17  ;;  %v564_v50 = vld [vmem:[%s8205_s23 + $0x208] sm:$0xff] }
 0x131   : > { %12374 = vst [vmem:[#allocation210_spill] sm:$0xff] %v9728_v26  ;;  %12375 = vst [vmem:[#allocation211_spill] sm:$0xff] %v9730_v28  ;;  %1224 = vmatprep.mubr.f32.mxu1 %v1223_v12  ;;  %v1239_v14 = vand.u32 4294901760, %v1238_v61  ;;  %v1245_v46 = vand.u32 4294901760, %v1244_v32  ;;  %v12379_v8 = vand.u32 4294901760, %v9681_v34  ;;  %v1255_v35 = vand.u32 4294901760, %v1254_v6 }
 0x132   : > { %12376 = vst [vmem:[#allocation212_spill] sm:$0xff] %v9732_v20  ;;  %3997 = vmatmul.mubr.f32.gmra.mrb[48].mxu0 %v12377_v7  ;;  %v1261_v44 = vand.u32 4294901760, %v9723_v9  ;;  %v9747_v7 = vsub.f32 %v557_v11, %v9725_v1  ;;  %v12381_v12 = vld [vmem:[#allocation42_spill] sm:$0xff]  ;;  %v12382_v61 = vand.u32 4294901760, %v9694_v18  ;;  %v9763_v6 = vsub.f32 %v562_v55, %v9732_v20  ;;  %v12389_v1 = vld [vmem:[#allocation45_spill] sm:$0xff] }
 0x133   : > { %4005 = vmatprep.mubr.f32.mxu0 %v12378_v33  ;;  %v9741_v62 = vsub.f32 %v9681_v34, %v12379_v8  ;;  %v2062_v17 = vand.u32 4294901760, %v12381_v12  ;;  %v9757_v8 = vsub.f32 %v560_v2, %v9728_v26  ;;  %v9760_v33 = vsub.f32 %v559_v15, %v9730_v28 }
 0x134   : > { %12380 = vst [vmem:[#allocation213_spill] sm:$0xff] %v9747_v7  ;;  %v9754_v32 = vsub.f32 %v9694_v18, %v12382_v61  ;;  %12385 = vst [vmem:[#allocation216_spill] sm:$0xff] %v9763_v6  ;;  %1230 = vmatmul.mubr.f32.gmra.mrb[50].mxu1 %v1229_v43  ;;  %v12386_v11 = vand.u32 4294901760, %v9632_v16  ;;  %v9767_v9 = vand.u32 4294901760, %v561_v4  ;;  %v12388_v61 = vld [vmem:[#allocation43_spill] sm:$0xff]  ;;  %v2068_v2 = vand.u32 4294901760, %v12389_v1 }
 0x135   : > { %12383 = vst [vmem:[#allocation214_spill] sm:$0xff] %v9757_v8  ;;  %12384 = vst [vmem:[#allocation215_spill] sm:$0xff] %v9760_v33  ;;  %v2063_v47 = vsub.f32 %v12381_v12, %v2062_v17  ;;  %v2074_v57 = vand.u32 4294901760, %v12388_v61  ;;  %1240 = vmatprep.mubr.f32.mxu1 %v1239_v14  ;;  %v12390_v26 = vand.u32 4294901760, %v9640_v0  ;;  %v1271_v15 = vand.u32 4294901760, %v9741_v62  ;;  %v563_v12 = vld [vmem:[%s8205_s23 + $0x200] sm:$0xff] }
 0x136   : > { %4009 = vmatmul.mubr.f32.gmra.mrb[50].mxu0 %v12386_v11  ;;  %12387 = vst [vmem:[#allocation217_spill] sm:$0xff] %v9767_v9  ;;  %v12391_v55 = vand.u32 4294901760, %v9715_v21  ;;  %v9778_v16 = vand.u32 4294901760, %v564_v50  ;;  %v12393_v11 = vld [vmem:[#allocation46_spill] sm:$0xff]  ;;  %v2069_v62 = vsub.f32 %v12389_v1, %v2068_v2  ;;  %v12394_v51 = vand.u32 4294901760, %v9643_v58 }
 0x137   : > { %4017 = vmatprep.mubr.f32.mxu0 %v12390_v26  ;;  %v2080_v20 = vand.u32 4294901760, %v12393_v11  ;;  %v2064_v39 = vand.u32 4294901760, %v2063_v47  ;;  %v2075_v14 = vsub.f32 %v12388_v61, %v2074_v57  ;;  %v6849_v41 = vpack.c.bf16 %v2074_v57, %v2062_v17  ;;  %v566_v57 = vld [vmem:[%s8205_s23 + $0x218] sm:$0xff] }
 0x138   : > { %v1286_v43 = vsub.f32 %v9715_v21, %v12391_v55  ;;  %12392 = vst [vmem:[#allocation218_spill] sm:$0xff] %v9778_v16  ;;  %1246 = vmatmul.mubr.f32.gmra.mrb[52].mxu1 %v1245_v46  ;;  %v9792_v47 = vsub.f32 %v561_v4, %v9767_v9  ;;  %v12396_v26 = vand.u32 4294901760, %v9664_v36  ;;  %v9800_v46 = vand.u32 4294901760, %v563_v12 }
 0x139   : > { %v2081_v0 = vsub.f32 %v12393_v11, %v2080_v20  ;;  %v6851_v55 = vpack.c.bf16 %v2080_v20, %v2068_v2  ;;  %v2076_v17 = vand.u32 4294901760, %v2075_v14  ;;  %1256 = vmatprep.mubr.f32.mxu1 %v1255_v35  ;;  %v9798_v20 = vsub.f32 %v564_v50, %v9778_v16  ;;  %6850 = vmatprep.subr.bf16.mxu0 %v6849_v41 }
 0x13a   : > { %4021 = vmatmul.mubr.f32.gmra.mrb[52].mxu0 %v12394_v51  ;;  %12395 = vst [vmem:[#allocation219_spill] sm:$0xff] %v9792_v47  ;;  %12398 = vst [vmem:[#allocation221_spill] sm:$0xff] %v9800_v46  ;;  %v2070_v51 = vand.u32 4294901760, %v2069_v62  ;;  %v1277_v4 = vand.u32 4294901760, %v9754_v32  ;;  %v12399_v14 = vand.u32 4294901760, %v9747_v7  ;;  %v9807_v36 = vand.u32 4294901760, %v566_v57 }
 0x13b   : > { %4029 = vmatprep.mubr.f32.mxu0 %v12396_v26  ;;  %12397 = vst [vmem:[#allocation220_spill] sm:$0xff] %v9798_v20  ;;  %v2082_v2 = vand.u32 4294901760, %v2081_v0  ;;  %v6657_v28 = vpack.c.bf16 %v2076_v17, %v2064_v39  ;;  %v568_v26 = vld [vmem:[%s8205_s23 + $0x228] sm:$0xff]  ;;  %6852 = vmatpush1.bf16.msra.mxu0 %v6851_v55  ;;  %v12401_v62 = vand.u32 4294901760, %v9667_v24  ;;  %v1287_v0 = vand.u32 4294901760, %v1286_v43  ;;  %v567_v55 = vld [vmem:[%s8205_s23 + $0x220] sm:$0xff] }
 0x13c   : > { %v1292_v35 = vsub.f32 %v9747_v7, %v12399_v14  ;;  %12400 = vst [vmem:[#allocation222_spill] sm:$0xff] %v9807_v36  ;;  %1262 = vmatmul.mubr.f32.gmra.mrb[54].mxu1 %v1261_v44  ;;  %v12402_v58 = vand.u32 4294901760, %v9757_v8  ;;  %v12403_v41 = vand.u32 4294901760, %v9760_v33  ;;  %v12404_v17 = vand.u32 4294901760, %v9763_v6  ;;  %v570_v44 = vld [vmem:[%s8205_s23 + $0x238] sm:$0xff] }
 0x13d   : > { %v6659_v50 = vpack.c.bf16 %v2082_v2, %v2070_v51  ;;  %1272 = vmatprep.mubr.f32.mxu1 %v1271_v15  ;;  %v12405_v51 = vand.u32 4294901760, %v9681_v34  ;;  %v9832_v2 = vsub.f32 %v563_v12, %v9800_v46  ;;  %6658 = vmatprep.subr.bf16.mxu1 %v6657_v28  ;;  %v9839_v24 = vsub.f32 %v566_v57, %v9807_v36  ;;  %v12413_v28 = vld [vmem:[#allocation47_spill] sm:$0xff]  ;;  %v12420_v46 = vld [vmem:[#allocation49_spill] sm:$0xff] }
 0x13e   : > { %4033 = vmatmul.mubr.f32.gmra.mrb[54].mxu0 %v12401_v62  ;;  %v1302_v39 = vsub.f32 %v9757_v8, %v12402_v58  ;;  %v9818_v32 = vsub.f32 %v9760_v33, %v12403_v41  ;;  %v9823_v14 = vsub.f32 %v9763_v6, %v12404_v17  ;;  %v9834_v62 = vand.u32 4294901760, %v565_v5 }
 0x13f   : > { %4041 = vmatprep.mubr.f32.mxu0 %v12405_v51  ;;  %12406 = vst [vmem:[#allocation223_spill] sm:$0xff] %v9832_v2  ;;  %v9836_v41 = vand.u32 4294901760, %v568_v26  ;;  %v1293_v17 = vand.u32 4294901760, %v1292_v35  ;;  %12409 = vst [vmem:[#allocation226_spill] sm:$0xff] %v9839_v24  ;;  %v9841_v15 = vand.u32 4294901760, %v567_v55  ;;  %v9843_v51 = vand.u32 4294901760, %v570_v44  ;;  %6660 = vmatpush1.bf16.msra.mxu1 %v6659_v50 }
 0x140   : > { %12407 = vst [vmem:[#allocation224_spill] sm:$0xff] %v9834_v62  ;;  %1278 = vmatmul.mubr.f32.gmra.mrb[56].mxu1 %v1277_v4  ;;  %v12412_v58 = vand.u32 4294901760, %v9694_v18  ;;  %v1303_v12 = vand.u32 4294901760, %v1302_v39  ;;  %v1309_v43 = vand.u32 4294901760, %v9818_v32  ;;  %v1319_v34 = vand.u32 4294901760, %v9823_v14  ;;  %v569_v14 = vld [vmem:[%s8205_s23 + $0x230] sm:$0xff] }
 0x141   : > { %12408 = vst [vmem:[#allocation225_spill] sm:$0xff] %v9836_v41  ;;  %12410 = vst [vmem:[#allocation227_spill] sm:$0xff] %v9841_v15  ;;  %v2086_v35 = vand.u32 4294901760, %v12413_v28  ;;  %1288 = vmatprep.mubr.f32.mxu1 %v1287_v0  ;;  %v12414_v57 = vand.u32 4294901760, %v9715_v21  ;;  %v12415_v36 = vand.u32 4294901760, %v9792_v47  ;;  %v12416_v4 = vand.u32 4294901760, %v9798_v20 }
 0x142   : > { %12411 = vst [vmem:[#allocation228_spill] sm:$0xff] %v9843_v51  ;;  %4045 = vmatmul.mubr.f32.gmra.mrb[56].mxu0 %v12412_v58  ;;  %v9862_v32 = vsub.f32 %v565_v5, %v9834_v62  ;;  %v9866_v0 = vsub.f32 %v568_v26, %v9836_v41  ;;  %v12419_v21 = vld [vmem:[#allocation48_spill] sm:$0xff]  ;;  %v9876_v39 = vsub.f32 %v570_v44, %v9843_v51  ;;  %v572_v5 = vld [vmem:[%s8205_s23 + $0x248] sm:$0xff]  ;;  %v12423_v62 = vld [vmem:[#allocation50_spill] sm:$0xff]  ;;  %v12424_v26 = vand.u32 4294901760, %v9747_v7 }
 0x143   : > { %4053 = vmatprep.mubr.f32.mxu0 %v12414_v57  ;;  %v1324_v50 = vsub.f32 %v9792_v47, %v12415_v36  ;;  %v9858_v58 = vsub.f32 %v9798_v20, %v12416_v4  ;;  %v2087_v57 = vsub.f32 %v12413_v28, %v2086_v35  ;;  %v2098_v18 = vand.u32 4294901760, %v12419_v21 }
 0x144   : > { %12417 = vst [vmem:[#allocation229_spill] sm:$0xff] %v9862_v32  ;;  %12418 = vst [vmem:[#allocation230_spill] sm:$0xff] %v9866_v0  ;;  %v2092_v36 = vand.u32 4294901760, %v12420_v46  ;;  %v9873_v4 = vsub.f32 %v567_v55, %v9841_v15  ;;  %v2104_v9 = vand.u32 4294901760, %v12423_v62  ;;  %1294 = vmatmul.mubr.f32.gmra.mrb[58].mxu1 %v1293_v17  ;;  %v9882_v41 = vand.u32 4294901760, %v569_v14 }
 0x145   : > { %12422 = vst [vmem:[#allocation232_spill] sm:$0xff] %v9876_v39  ;;  %v2088_v28 = vand.u32 4294901760, %v2087_v57  ;;  %v2099_v11 = vsub.f32 %v12419_v21, %v2098_v18  ;;  %v6853_v16 = vpack.c.bf16 %v2098_v18, %v2086_v35  ;;  %1304 = vmatprep.mubr.f32.mxu1 %v1303_v12  ;;  %v12426_v55 = vand.u32 4294901760, %v9757_v8  ;;  %v571_v57 = vld [vmem:[%s8205_s23 + $0x240] sm:$0xff]  ;;  %v574_v35 = vld [vmem:[%s8205_s23 + $0x258] sm:$0xff] }
 0x146   : > { %12421 = vst [vmem:[#allocation231_spill] sm:$0xff] %v9873_v4  ;;  %4057 = vmatmul.mubr.f32.gmra.mrb[58].mxu0 %v12424_v26  ;;  %12425 = vst [vmem:[#allocation233_spill] sm:$0xff] %v9882_v41  ;;  %v2093_v51 = vsub.f32 %v12420_v46, %v2092_v36  ;;  %v2105_v17 = vsub.f32 %v12423_v62, %v2104_v9  ;;  %v6855_v15 = vpack.c.bf16 %v2104_v9, %v2092_v36  ;;  %v577_v62 = vld [vmem:[%s8205_s23 + $0x270] sm:$0xff] }
 0x147   : > { %4065 = vmatprep.mubr.f32.mxu0 %v12426_v55  ;;  %v1325_v7 = vand.u32 4294901760, %v1324_v50  ;;  %v11736_v26 = vand.u32 4294901760, %v9866_v0  ;;  %v9891_v1 = vand.u32 4294901760, %v572_v5  ;;  %v2100_v21 = vand.u32 4294901760, %v2099_v11  ;;  %6854 = vmatprep.subr.bf16.mxu0 %v6853_v16 }
 0x148   : > { %v2094_v55 = vand.u32 4294901760, %v2093_v51  ;;  %v2106_v44 = vand.u32 4294901760, %v2105_v17  ;;  %6856 = vmatpush1.bf16.msra.mxu0 %v6855_v15  ;;  %1310 = vmatmul.mubr.f32.gmra.mrb[60].mxu1 %v1309_v43  ;;  %v12428_v9 = vand.u32 4294901760, %v9760_v33  ;;  %v1335_v50 = vand.u32 4294901760, %v9858_v58 }
 0x149   : > { %12427 = vst [vmem:[#allocation234_spill] sm:$0xff] %v9891_v1  ;;  %v12429_v36 = vand.u32 4294901760, %v9832_v2  ;;  %v12430_v16 = vand.u32 4294901760, %v9839_v24  ;;  %v6661_v12 = vpack.c.bf16 %v2100_v21, %v2088_v28  ;;  %1320 = vmatprep.mubr.f32.mxu1 %v1319_v34  ;;  %v12431_v51 = vand.u32 4294901760, %v9763_v6 }
 0x14a   : > { %4069 = vmatmul.mubr.f32.gmra.mrb[60].mxu0 %v12428_v9  ;;  %v12432_v43 = vand.u32 4294901760, %v9862_v32  ;;  %v9912_v58 = vsub.f32 %v569_v14, %v9882_v41  ;;  %v9914_v17 = vand.u32 4294901760, %v571_v57  ;;  %v6663_v9 = vpack.c.bf16 %v2106_v44, %v2094_v55 }
 0x14b   : > { %v1340_v11 = vsub.f32 %v9832_v2, %v12429_v36  ;;  %v1350_v18 = vsub.f32 %v9839_v24, %v12430_v16  ;;  %4077 = vmatprep.mubr.f32.mxu0 %v12431_v51  ;;  %v1366_v21 = vsub.f32 %v9866_v0, %v11736_v26  ;;  %v9920_v34 = vsub.f32 %v572_v5, %v9891_v1  ;;  %v573_v36 = vld [vmem:[%s8205_s23 + $0x250] sm:$0xff]  ;;  %v576_v26 = vld [vmem:[%s8205_s23 + $0x268] sm:$0xff] }
 0x14c   : > { %v1356_v15 = vsub.f32 %v9862_v32, %v12432_v43  ;;  %12433 = vst [vmem:[#allocation235_spill] sm:$0xff] %v9912_v58  ;;  %12434 = vst [vmem:[#allocation236_spill] sm:$0xff] %v9914_v17  ;;  %v9922_v28 = vand.u32 4294901760, %v574_v35  ;;  %6662 = vmatprep.subr.bf16.mxu1 %v6661_v12  ;;  %v12437_v16 = vand.u32 4294901760, %v9873_v4  ;;  %v12438_v51 = vand.u32 4294901760, %v9876_v39  ;;  %1326 = vmatmul.mubr.f32.gmra.mrb[62].mxu1 %v1325_v7  ;;  %v575_v12 = vld [vmem:[%s8205_s23 + $0x260] sm:$0xff] }
 0x14d   : > { %12435 = vst [vmem:[#allocation237_spill] sm:$0xff] %v9920_v34  ;;  %6664 = vmatpush1.bf16.msra.mxu1 %v6663_v9  ;;  %v12439_v5 = vand.u32 4294901760, %v9792_v47  ;;  %v1341_v55 = vand.u32 4294901760, %v1340_v11  ;;  %v1351_v43 = vand.u32 4294901760, %v1350_v18  ;;  %1336 = vmatprep.mubr.f32.mxu1 %v1335_v50  ;;  %v12440_v6 = vand.u32 4294901760, %v9798_v20  ;;  %v578_v7 = vld [vmem:[%s8205_s23 + $0x278] sm:$0xff] }
 0x14e   : > { %12436 = vst [vmem:[#allocation238_spill] sm:$0xff] %v9922_v28  ;;  %v9928_v14 = vsub.f32 %v9873_v4, %v12437_v16  ;;  %v9933_v44 = vsub.f32 %v9876_v39, %v12438_v51  ;;  %v1357_v16 = vand.u32 4294901760, %v1356_v15  ;;  %v9943_v8 = vsub.f32 %v571_v57, %v9914_v17  ;;  %v12444_v11 = vld [vmem:[#allocation51_spill] sm:$0xff] }
 0x14f   : > { %4081 = vmatmul.mubr.f32.gmra.mrb[62].mxu0 %v12439_v5  ;;  %v9945_v51 = vand.u32 4294901760, %v573_v36  ;;  %v1367_v9 = vand.u32 4294901760, %v1366_v21  ;;  %v9950_v18 = vsub.f32 %v574_v35, %v9922_v28  ;;  %v2110_v50 = vand.u32 4294901760, %v12444_v11  ;;  %v12449_v5 = vld [vmem:[#allocation53_spill] sm:$0xff]  ;;  %v12450_v28 = vld [vmem:[#allocation54_spill] sm:$0xff] }
 0x150   : > { %4089 = vmatprep.mubr.f32.mxu0 %v12440_v6  ;;  %12441 = vst [vmem:[#allocation239_spill] sm:$0xff] %v9943_v8  ;;  %v1373_v20 = vand.u32 4294901760, %v9928_v14  ;;  %v1383_v6 = vand.u32 4294901760, %v9933_v44  ;;  %v9955_v15 = vand.u32 4294901760, %v576_v26  ;;  %v9957_v57 = vand.u32 4294901760, %v575_v12  ;;  %1342 = vmatmul.mubr.f32.gmra.mrb[64].mxu1 %v1341_v55 }
 0x151   : > { %12442 = vst [vmem:[#allocation240_spill] sm:$0xff] %v9945_v51  ;;  %12443 = vst [vmem:[#allocation241_spill] sm:$0xff] %v9950_v18  ;;  %v12447_v33 = vand.u32 4294901760, %v9832_v2  ;;  %v9961_v21 = vand.u32 4294901760, %v578_v7  ;;  %v2111_v35 = vsub.f32 %v12444_v11, %v2110_v50  ;;  %v2122_v47 = vand.u32 4294901760, %v12449_v5  ;;  %1352 = vmatprep.mubr.f32.mxu1 %v1351_v43  ;;  %v12454_v2 = vld [vmem:[#allocation57_spill] sm:$0xff] }
 0x152   : > { %12445 = vst [vmem:[#allocation242_spill] sm:$0xff] %v9955_v15  ;;  %12446 = vst [vmem:[#allocation243_spill] sm:$0xff] %v9957_v57  ;;  %v2116_v17 = vand.u32 4294901760, %v12450_v28  ;;  %v12451_v14 = vand.u32 4294901760, %v9839_v24  ;;  %v12452_v44 = vand.u32 4294901760, %v9912_v58  ;;  %v2128_v41 = vand.u32 4294901760, %v12454_v2 }
 0x153   : > { %4093 = vmatmul.mubr.f32.gmra.mrb[64].mxu0 %v12447_v33  ;;  %12448 = vst [vmem:[#allocation244_spill] sm:$0xff] %v9961_v21  ;;  %v9973_v33 = vsub.f32 %v573_v36, %v9945_v51  ;;  %v2112_v46 = vand.u32 4294901760, %v2111_v35  ;;  %v2123_v43 = vsub.f32 %v12449_v5, %v2122_v47  ;;  %v6857_v24 = vpack.c.bf16 %v2122_v47, %v2110_v50  ;;  %v580_v50 = vld [vmem:[%s8205_s23 + $0x288] sm:$0xff] }
 0x154   : > { %4101 = vmatprep.mubr.f32.mxu0 %v12451_v14  ;;  %v1388_v1 = vsub.f32 %v9912_v58, %v12452_v44  ;;  %v9980_v14 = vsub.f32 %v576_v26, %v9955_v15  ;;  %v2117_v44 = vsub.f32 %v12450_v28, %v2116_v17  ;;  %v2129_v55 = vsub.f32 %v12454_v2, %v2128_v41  ;;  %v12483_v2 = vld [vmem:[#allocation59_spill] sm:$0xff] }
 0x155   : > { %12453 = vst [vmem:[#allocation245_spill] sm:$0xff] %v9973_v33  ;;  %v6859_v36 = vpack.c.bf16 %v2128_v41, %v2116_v17  ;;  %1358 = vmatmul.mubr.f32.gmra.mrb[66].mxu1 %v1357_v16  ;;  %v12456_v51 = vand.u32 4294901760, %v9862_v32  ;;  %v12457_v11 = vand.u32 4294901760, %v9920_v34  ;;  %v9990_v47 = vsub.f32 %v575_v12, %v9957_v57  ;;  %v579_v57 = vld [vmem:[%s8205_s23 + $0x280] sm:$0xff]  ;;  %6858 = vmatprep.subr.bf16.mxu0 %v6857_v24 }
 0x156   : > { %12455 = vst [vmem:[#allocation246_spill] sm:$0xff] %v9980_v14  ;;  %v9993_v26 = vsub.f32 %v578_v7, %v9961_v21  ;;  %v2124_v15 = vand.u32 4294901760, %v2123_v43  ;;  %1368 = vmatprep.mubr.f32.mxu1 %v1367_v9  ;;  %v12460_v41 = vand.u32 4294901760, %v9866_v0  ;;  %v9999_v16 = vand.u32 4294901760, %v577_v62  ;;  %v582_v7 = vld [vmem:[%s8205_s23 + $0x298] sm:$0xff] }
 0x157   : > { %4105 = vmatmul.mubr.f32.gmra.mrb[66].mxu0 %v12456_v51  ;;  %v1398_v35 = vsub.f32 %v9920_v34, %v12457_v11  ;;  %12458 = vst [vmem:[#allocation247_spill] sm:$0xff] %v9990_v47  ;;  %v2118_v51 = vand.u32 4294901760, %v2117_v44  ;;  %v2130_v32 = vand.u32 4294901760, %v2129_v55  ;;  %v12462_v11 = vand.u32 4294901760, %v9943_v8 }
 0x158   : > { %12459 = vst [vmem:[#allocation248_spill] sm:$0xff] %v9993_v26  ;;  %4113 = vmatprep.mubr.f32.mxu0 %v12460_v41  ;;  %12461 = vst [vmem:[#allocation249_spill] sm:$0xff] %v9999_v16  ;;  %v6665_v21 = vpack.c.bf16 %v2124_v15, %v2112_v46  ;;  %v12463_v9 = vand.u32 4294901760, %v9950_v18  ;;  %v10010_v17 = vand.u32 4294901760, %v580_v50  ;;  %6860 = vmatpush1.bf16.msra.mxu0 %v6859_v36  ;;  %v12465_v55 = vand.u32 4294901760, %v9873_v4  ;;  %v581_v15 = vld [vmem:[%s8205_s23 + $0x290] sm:$0xff] }
 0x159   : > { %v1404_v12 = vsub.f32 %v9943_v8, %v12462_v11  ;;  %v6667_v44 = vpack.c.bf16 %v2130_v32, %v2118_v51  ;;  %1374 = vmatmul.mubr.f32.gmra.mrb[68].mxu1 %v1373_v20  ;;  %v1389_v11 = vand.u32 4294901760, %v1388_v1  ;;  %v1399_v0 = vand.u32 4294901760, %v1398_v35  ;;  %v584_v35 = vld [vmem:[%s8205_s23 + $0x2a8] sm:$0xff]  ;;  %v12478_v4 = vld [vmem:[#allocation58_spill] sm:$0xff] }
 0x15a   : > { %v1414_v43 = vsub.f32 %v9950_v18, %v12463_v9  ;;  %12464 = vst [vmem:[#allocation250_spill] sm:$0xff] %v10010_v17  ;;  %1384 = vmatprep.mubr.f32.mxu1 %v1383_v6  ;;  %v12466_v9 = vand.u32 4294901760, %v9876_v39  ;;  %v12467_v41 = vand.u32 4294901760, %v9973_v33  ;;  %v10023_v20 = vsub.f32 %v577_v62, %v9999_v16  ;;  %6666 = vmatprep.subr.bf16.mxu1 %v6665_v21  ;;  %v583_v62 = vld [vmem:[%s8205_s23 + $0x2a0] sm:$0xff] }
 0x15b   : > { %4117 = vmatmul.mubr.f32.gmra.mrb[68].mxu0 %v12465_v55  ;;  %v10025_v36 = vand.u32 4294901760, %v579_v57  ;;  %v10027_v1 = vand.u32 4294901760, %v582_v7  ;;  %v1405_v51 = vand.u32 4294901760, %v1404_v12  ;;  %v12471_v6 = vand.u32 4294901760, %v9980_v14  ;;  %6668 = vmatpush1.bf16.msra.mxu1 %v6667_v44 }
 0x15c   : > { %4125 = vmatprep.mubr.f32.mxu0 %v12466_v9  ;;  %v1420_v32 = vsub.f32 %v9973_v33, %v12467_v41  ;;  %12468 = vst [vmem:[#allocation251_spill] sm:$0xff] %v10023_v20  ;;  %v1415_v55 = vand.u32 4294901760, %v1414_v43  ;;  %v10034_v24 = vsub.f32 %v580_v50, %v10010_v17  ;;  %v10036_v41 = vand.u32 4294901760, %v581_v15 }
 0x15d   : > { %12469 = vst [vmem:[#allocation252_spill] sm:$0xff] %v10025_v36  ;;  %12470 = vst [vmem:[#allocation253_spill] sm:$0xff] %v10027_v1  ;;  %v1430_v9 = vsub.f32 %v9980_v14, %v12471_v6  ;;  %1390 = vmatmul.mubr.f32.gmra.mrb[70].mxu1 %v1389_v11  ;;  %v12474_v46 = vand.u32 4294901760, %v9912_v58  ;;  %v12475_v39 = vand.u32 4294901760, %v9990_v47  ;;  %v12476_v12 = vand.u32 4294901760, %v9993_v26  ;;  %v586_v6 = vld [vmem:[%s8205_s23 + $0x2b8] sm:$0xff] }
 0x15e   : > { %12472 = vst [vmem:[#allocation254_spill] sm:$0xff] %v10034_v24  ;;  %12473 = vst [vmem:[#allocation255_spill] sm:$0xff] %v10036_v41  ;;  %v10051_v50 = vand.u32 4294901760, %v584_v35  ;;  %v2134_v17 = vand.u32 4294901760, %v12478_v4  ;;  %1400 = vmatprep.mubr.f32.mxu1 %v1399_v0  ;;  %v12479_v44 = vand.u32 4294901760, %v9920_v34  ;;  %v1421_v11 = vand.u32 4294901760, %v1420_v32 }
 0x15f   : > { %4129 = vmatmul.mubr.f32.gmra.mrb[70].mxu0 %v12474_v46  ;;  %v10044_v21 = vsub.f32 %v9990_v47, %v12475_v39  ;;  %v10049_v43 = vsub.f32 %v9993_v26, %v12476_v12  ;;  %v10059_v39 = vsub.f32 %v579_v57, %v10025_v36  ;;  %v10062_v58 = vsub.f32 %v582_v7, %v10027_v1  ;;  %v12484_v0 = vld [vmem:[#allocation61_spill] sm:$0xff]  ;;  %v12487_v46 = vld [vmem:[#allocation62_spill] sm:$0xff]  ;;  %v585_v36 = vld [vmem:[%s8205_s23 + $0x2b0] sm:$0xff] }
 0x160   : > { %12477 = vst [vmem:[#allocation256_spill] sm:$0xff] %v10051_v50  ;;  %4137 = vmatprep.mubr.f32.mxu0 %v12479_v44  ;;  %v10064_v12 = vand.u32 4294901760, %v583_v62  ;;  %v2135_v16 = vsub.f32 %v12478_v4, %v2134_v17  ;;  %v2146_v28 = vand.u32 4294901760, %v12483_v2  ;;  %v2140_v5 = vand.u32 4294901760, %v12484_v0 }
 0x161   : > { %12480 = vst [vmem:[#allocation257_spill] sm:$0xff] %v10059_v39  ;;  %12481 = vst [vmem:[#allocation258_spill] sm:$0xff] %v10062_v58  ;;  %v1431_v34 = vand.u32 4294901760, %v1430_v9  ;;  %v10070_v44 = vsub.f32 %v581_v15, %v10036_v41  ;;  %v10072_v32 = vand.u32 4294901760, %v586_v6  ;;  %v2152_v57 = vand.u32 4294901760, %v12487_v46  ;;  %1406 = vmatmul.mubr.f32.gmra.mrb[72].mxu1 %v1405_v51 }
 0x162   : > { %12482 = vst [vmem:[#allocation259_spill] sm:$0xff] %v10064_v12  ;;  %v12488_v7 = vand.u32 4294901760, %v9943_v8  ;;  %v10078_v1 = vsub.f32 %v584_v35, %v10051_v50  ;;  %v2136_v4 = vand.u32 4294901760, %v2135_v16  ;;  %v2147_v61 = vsub.f32 %v12483_v2, %v2146_v28  ;;  %1416 = vmatprep.mubr.f32.mxu1 %v1415_v55 }
 0x163   : > { %12485 = vst [vmem:[#allocation260_spill] sm:$0xff] %v10070_v44  ;;  %12486 = vst [vmem:[#allocation261_spill] sm:$0xff] %v10072_v32  ;;  %v6861_v48 = vpack.c.bf16 %v2146_v28, %v2134_v17  ;;  %v12490_v15 = vand.u32 4294901760, %v9950_v18  ;;  %v1461_v9 = vand.u32 4294901760, %v10034_v24  ;;  %v2141_v41 = vsub.f32 %v12484_v0, %v2140_v5 }
 0x164   : > { %4141 = vmatmul.mubr.f32.gmra.mrb[72].mxu0 %v12488_v7  ;;  %12489 = vst [vmem:[#allocation262_spill] sm:$0xff] %v10078_v1  ;;  %v2153_v51 = vsub.f32 %v12487_v46, %v2152_v57  ;;  %v6863_v8 = vpack.c.bf16 %v2152_v57, %v2140_v5  ;;  %v10090_v16 = vsub.f32 %v583_v62, %v10064_v12  ;;  %v2148_v28 = vand.u32 4294901760, %v2147_v61  ;;  %v12514_v12 = vld [vmem:[#allocation66_spill] sm:$0xff] }
 0x165   : > { %4149 = vmatprep.mubr.f32.mxu0 %v12490_v15  ;;  %6862 = vmatprep.subr.bf16.mxu0 %v6861_v48  ;;  %v10093_v17 = vsub.f32 %v586_v6, %v10072_v32  ;;  %v10095_v55 = vand.u32 4294901760, %v585_v36  ;;  %v2142_v15 = vand.u32 4294901760, %v2141_v41  ;;  %v12494_v5 = vand.u32 4294901760, %v9973_v33  ;;  %v588_v6 = vld [vmem:[%s8205_s23 + $0x2c8] sm:$0xff] }
 0x166   : > { %12491 = vst [vmem:[#allocation263_spill] sm:$0xff] %v10090_v16  ;;  %v2154_v18 = vand.u32 4294901760, %v2153_v51  ;;  %6864 = vmatpush1.bf16.msra.mxu0 %v6863_v8  ;;  %1422 = vmatmul.mubr.f32.gmra.mrb[74].mxu1 %v1421_v11  ;;  %v1437_v57 = vand.u32 4294901760, %v10044_v21  ;;  %v1447_v62 = vand.u32 4294901760, %v10049_v43  ;;  %v12495_v61 = vand.u32 4294901760, %v10023_v20  ;;  %v587_v51 = vld [vmem:[%s8205_s23 + $0x2c0] sm:$0xff] }
 0x167   : > { %12492 = vst [vmem:[#allocation264_spill] sm:$0xff] %v10093_v17  ;;  %12493 = vst [vmem:[#allocation265_spill] sm:$0xff] %v10095_v55  ;;  %v6669_v7 = vpack.c.bf16 %v2148_v28, %v2136_v4  ;;  %1432 = vmatprep.mubr.f32.mxu1 %v1431_v34  ;;  %v12496_v35 = vand.u32 4294901760, %v9980_v14  ;;  %v1462_v8 = vsub.f32 %v10034_v24, %v1461_v9  ;;  %v11789_v41 = vand.u32 4294901760, %v10070_v44  ;;  %v590_v34 = vld [vmem:[%s8205_s23 + $0x2d8] sm:$0xff] }
 0x168   : > { %4153 = vmatmul.mubr.f32.gmra.mrb[74].mxu0 %v12494_v5  ;;  %v1452_v48 = vsub.f32 %v10023_v20, %v12495_v61  ;;  %v6671_v21 = vpack.c.bf16 %v2154_v18, %v2142_v15  ;;  %v12497_v43 = vand.u32 4294901760, %v10059_v39  ;;  %v12498_v61 = vand.u32 4294901760, %v10062_v58 }
 0x169   : > { %4161 = vmatprep.mubr.f32.mxu0 %v12496_v35  ;;  %6670 = vmatprep.subr.bf16.mxu1 %v6669_v7  ;;  %v10120_v28 = vsub.f32 %v585_v36, %v10095_v55  ;;  %v10122_v11 = vand.u32 4294901760, %v588_v6  ;;  %v12501_v18 = vand.u32 4294901760, %v9990_v47  ;;  %v12503_v7 = vand.u32 4294901760, %v9993_v26  ;;  %v592_v47 = vld [vmem:[%s8205_s23 + $0x2e8] sm:$0xff]  ;;  %v12512_v55 = vld [vmem:[#allocation65_spill] sm:$0xff] }
 0x16a   : > { %v1468_v5 = vsub.f32 %v10059_v39, %v12497_v43  ;;  %v1478_v4 = vsub.f32 %v10062_v58, %v12498_v61  ;;  %6672 = vmatpush1.bf16.msra.mxu1 %v6671_v21  ;;  %v1453_v15 = vand.u32 4294901760, %v1452_v48  ;;  %v10126_v43 = vand.u32 4294901760, %v587_v51  ;;  %v12505_v48 = vld [vmem:[#allocation63_spill] sm:$0xff] }
 0x16b   : > { %12499 = vst [vmem:[#allocation266_spill] sm:$0xff] %v10120_v28  ;;  %12500 = vst [vmem:[#allocation267_spill] sm:$0xff] %v10122_v11  ;;  %1438 = vmatmul.mubr.f32.gmra.mrb[76].mxu1 %v1437_v57  ;;  %v1463_v61 = vand.u32 4294901760, %v1462_v8  ;;  %v1484_v36 = vsub.f32 %v10070_v44, %v11789_v41  ;;  %v12504_v21 = vand.u32 4294901760, %v10078_v1  ;;  %v2158_v24 = vand.u32 4294901760, %v12505_v48 }
 0x16c   : > { %4165 = vmatmul.mubr.f32.gmra.mrb[76].mxu0 %v12501_v18  ;;  %12502 = vst [vmem:[#allocation268_spill] sm:$0xff] %v10126_v43  ;;  %1448 = vmatprep.mubr.f32.mxu1 %v1447_v62  ;;  %v1469_v35 = vand.u32 4294901760, %v1468_v5  ;;  %v1479_v18 = vand.u32 4294901760, %v1478_v4  ;;  %v12506_v62 = vand.u32 4294901760, %v10090_v16  ;;  %v12507_v8 = vand.u32 4294901760, %v10093_v17  ;;  %v589_v5 = vld [vmem:[%s8205_s23 + $0x2d0] sm:$0xff] }
 0x16d   : > { %4173 = vmatprep.mubr.f32.mxu0 %v12503_v7  ;;  %v1494_v57 = vsub.f32 %v10078_v1, %v12504_v21  ;;  %v10150_v21 = vsub.f32 %v588_v6, %v10122_v11  ;;  %v12509_v4 = vand.u32 4294901760, %v10023_v20  ;;  %v2159_v14 = vsub.f32 %v12505_v48, %v2158_v24 }
 0x16e   : > { %v10141_v26 = vsub.f32 %v10090_v16, %v12506_v62  ;;  %v10146_v7 = vsub.f32 %v10093_v17, %v12507_v8  ;;  %v10156_v62 = vsub.f32 %v587_v51, %v10126_v43  ;;  %v12511_v8 = vld [vmem:[#allocation64_spill] sm:$0xff]  ;;  %v2164_v32 = vand.u32 4294901760, %v12512_v55  ;;  %v594_v51 = vld [vmem:[%s8205_s23 + $0x2f8] sm:$0xff] }
 0x16f   : > { %12508 = vst [vmem:[#allocation269_spill] sm:$0xff] %v10150_v21  ;;  %1454 = vmatmul.mubr.f32.gmra.mrb[78].mxu1 %v1453_v15  ;;  %v2170_v33 = vand.u32 4294901760, %v12511_v8  ;;  %v1485_v6 = vand.u32 4294901760, %v1484_v36  ;;  %v1495_v41 = vand.u32 4294901760, %v1494_v57  ;;  %v10162_v11 = vand.u32 4294901760, %v590_v34  ;;  %v591_v15 = vld [vmem:[%s8205_s23 + $0x2e0] sm:$0xff] }
 0x170   : > { %4177 = vmatmul.mubr.f32.gmra.mrb[78].mxu0 %v12509_v4  ;;  %12510 = vst [vmem:[#allocation270_spill] sm:$0xff] %v10156_v62  ;;  %1464 = vmatprep.mubr.f32.mxu1 %v1463_v61  ;;  %v2176_v20 = vand.u32 4294901760, %v12514_v12  ;;  %v10166_v4 = vand.u32 4294901760, %v589_v5  ;;  %v2160_v43 = vand.u32 4294901760, %v2159_v14  ;;  %v10170_v46 = vand.u32 4294901760, %v592_v47  ;;  %v593_v57 = vld [vmem:[%s8205_s23 + $0x2f0] sm:$0xff] }
 0x171   : > { %4185 = vmatprep.mubr.f32.mxu0 %v1461_v9  ;;  %12513 = vst [vmem:[#allocation64_spill] sm:$0xff] %v10162_v11  ;;  %v2171_v50 = vsub.f32 %v12511_v8, %v2170_v33  ;;  %v6865_v48 = vpack.c.bf16 %v2170_v33, %v2158_v24  ;;  %v2165_v0 = vsub.f32 %v12512_v55, %v2164_v32  ;;  %v12517_v36 = vand.u32 4294901760, %v10059_v39  ;;  %v596_v39 = vld [vmem:[%s8205_s23 + $0x308] sm:$0xff] }
 0x172   : > { %12515 = vst [vmem:[#allocation271_spill] sm:$0xff] %v10166_v4  ;;  %12516 = vst [vmem:[#allocation272_spill] sm:$0xff] %v10170_v46  ;;  %v2177_v9 = vsub.f32 %v12514_v12, %v2176_v20  ;;  %v6867_v61 = vpack.c.bf16 %v2176_v20, %v2164_v32  ;;  %v10178_v2 = vand.u32 4294901760, %v591_v15  ;;  %v12519_v24 = vand.u32 4294901760, %v10062_v58 }
 0x173   : > { %1470 = vmatmul.mubr.f32.gmra.mrb[80].mxu1 %v1469_v35  ;;  %v2172_v33 = vand.u32 4294901760, %v2171_v50  ;;  %v10183_v12 = vsub.f32 %v590_v34, %v10162_v11  ;;  %v10185_v20 = vand.u32 4294901760, %v594_v51  ;;  %v2166_v32 = vand.u32 4294901760, %v2165_v0  ;;  %6866 = vmatprep.subr.bf16.mxu0 %v6865_v48  ;;  %v599_v11 = vld [vmem:[%s8205_s23 + $0x320] sm:$0xff] }
 0x174   : > { %4189 = vmatmul.mubr.f32.gmra.mrb[80].mxu0 %v12517_v36  ;;  %12518 = vst [vmem:[#allocation273_spill] sm:$0xff] %v10178_v2  ;;  %1480 = vmatprep.mubr.f32.mxu1 %v1479_v18  ;;  %v2178_v35 = vand.u32 4294901760, %v2177_v9  ;;  %v1501_v36 = vand.u32 4294901760, %v10141_v26  ;;  %v12522_v55 = vand.u32 4294901760, %v10120_v28  ;;  %v10194_v18 = vsub.f32 %v589_v5, %v10166_v4 }
 0x175   : > { %4197 = vmatprep.mubr.f32.mxu0 %v12519_v24  ;;  %12520 = vst [vmem:[#allocation274_spill] sm:$0xff] %v10183_v12  ;;  %12521 = vst [vmem:[#allocation275_spill] sm:$0xff] %v10185_v20  ;;  %v6673_v14 = vpack.c.bf16 %v2172_v33, %v2160_v43  ;;  %v10197_v34 = vsub.f32 %v592_v47, %v10170_v46  ;;  %v595_v24 = vld [vmem:[%s8205_s23 + $0x300] sm:$0xff]  ;;  %6868 = vmatpush1.bf16.msra.mxu0 %v6867_v61  ;;  %v12525_v26 = vand.u32 4294901760, %v10070_v44 }
 0x176   : > { %v1516_v50 = vsub.f32 %v10120_v28, %v12522_v55  ;;  %12523 = vst [vmem:[#allocation276_spill] sm:$0xff] %v10194_v18  ;;  %v6675_v58 = vpack.c.bf16 %v2178_v35, %v2166_v32  ;;  %v1511_v0 = vand.u32 4294901760, %v10146_v7  ;;  %v12526_v43 = vand.u32 4294901760, %v10150_v21 }
 0x177   : > { %12524 = vst [vmem:[#allocation277_spill] sm:$0xff] %v10197_v34  ;;  %1486 = vmatmul.mubr.f32.gmra.mrb[82].mxu1 %v1485_v6  ;;  %v12527_v55 = vand.u32 4294901760, %v10156_v62  ;;  %v10210_v47 = vsub.f32 %v591_v15, %v10178_v2  ;;  %v12529_v9 = vand.u32 4294901760, %v10078_v1  ;;  %v10216_v7 = vsub.f32 %v594_v51, %v10185_v20  ;;  %6674 = vmatprep.subr.bf16.mxu1 %v6673_v14  ;;  %v12535_v6 = vld [vmem:[#allocation67_spill] sm:$0xff] }
 0x178   : > { %4201 = vmatmul.mubr.f32.gmra.mrb[82].mxu0 %v12525_v26  ;;  %v1526_v48 = vsub.f32 %v10150_v21, %v12526_v43  ;;  %1496 = vmatprep.mubr.f32.mxu1 %v1495_v41  ;;  %v10218_v61 = vand.u32 4294901760, %v593_v57  ;;  %v10220_v33 = vand.u32 4294901760, %v596_v39  ;;  %v10222_v32 = vand.u32 4294901760, %v595_v24 }
 0x179   : > { %v1532_v5 = vsub.f32 %v10156_v62, %v12527_v55  ;;  %12528 = vst [vmem:[#allocation278_spill] sm:$0xff] %v10210_v47  ;;  %4209 = vmatprep.mubr.f32.mxu0 %v12529_v9  ;;  %12530 = vst [vmem:[#allocation279_spill] sm:$0xff] %v10216_v7  ;;  %v1517_v35 = vand.u32 4294901760, %v1516_v50  ;;  %v11822_v15 = vand.u32 4294901760, %v10194_v18  ;;  %6676 = vmatpush1.bf16.msra.mxu1 %v6675_v58  ;;  %v12534_v26 = vand.u32 4294901760, %v10090_v16  ;;  %v598_v9 = vld [vmem:[%s8205_s23 + $0x318] sm:$0xff] }
 0x17a   : > { %12531 = vst [vmem:[#allocation280_spill] sm:$0xff] %v10218_v61  ;;  %12532 = vst [vmem:[#allocation281_spill] sm:$0xff] %v10220_v33  ;;  %v1527_v43 = vand.u32 4294901760, %v1526_v48  ;;  %v2182_v1 = vand.u32 4294901760, %v12535_v6  ;;  %v12536_v14 = vand.u32 4294901760, %v10093_v17  ;;  %v12537_v50 = vand.u32 4294901760, %v10183_v12 }
 0x17b   : > { %12533 = vst [vmem:[#allocation282_spill] sm:$0xff] %v10222_v32  ;;  %1502 = vmatmul.mubr.f32.gmra.mrb[84].mxu1 %v1501_v36  ;;  %v1533_v51 = vand.u32 4294901760, %v1532_v5  ;;  %v10241_v48 = vsub.f32 %v596_v39, %v10220_v33  ;;  %v10244_v5 = vsub.f32 %v595_v24, %v10222_v32  ;;  %v12541_v55 = vld [vmem:[#allocation71_spill] sm:$0xff]  ;;  %v10255_v39 = vand.u32 4294901760, %v598_v9  ;;  %v12544_v17 = vld [vmem:[#allocation72_spill] sm:$0xff] }
 0x17c   : > { %4213 = vmatmul.mubr.f32.gmra.mrb[84].mxu0 %v12534_v26  ;;  %1512 = vmatprep.mubr.f32.mxu1 %v1511_v0  ;;  %v1542_v58 = vsub.f32 %v10183_v12, %v12537_v50  ;;  %v10238_v26 = vsub.f32 %v593_v57, %v10218_v61  ;;  %v2183_v0 = vsub.f32 %v12535_v6, %v2182_v1  ;;  %v2188_v41 = vand.u32 4294901760, %v12541_v55  ;;  %v597_v33 = vld [vmem:[%s8205_s23 + $0x310] sm:$0xff] }
 0x17d   : > { %4221 = vmatprep.mubr.f32.mxu0 %v12536_v14  ;;  %12539 = vst [vmem:[#allocation283_spill] sm:$0xff] %v10241_v48  ;;  %12540 = vst [vmem:[#allocation284_spill] sm:$0xff] %v10244_v5  ;;  %v2194_v14 = vand.u32 4294901760, %v8726_v49  ;;  %v1548_v50 = vsub.f32 %v10194_v18, %v11822_v15  ;;  %v12542_v57 = vand.u32 4294901760, %v10197_v34  ;;  %v2200_v24 = vand.u32 4294901760, %v12544_v17 }
 0x17e   : > { %12538 = vst [vmem:[#allocation67_spill] sm:$0xff] %v10238_v26  ;;  %12543 = vst [vmem:[#allocation71_spill] sm:$0xff] %v10255_v39  ;;  %v12545_v16 = vand.u32 4294901760, %v10120_v28  ;;  %v12546_v44 = vand.u32 4294901760, %v10210_v47  ;;  %v2184_v15 = vand.u32 4294901760, %v2183_v0  ;;  %v1543_v2 = vand.u32 4294901760, %v1542_v58 }
 0x17f   : > { %v1558_v36 = vsub.f32 %v10197_v34, %v12542_v57  ;;  %1518 = vmatmul.mubr.f32.gmra.mrb[86].mxu1 %v1517_v35  ;;  %v2195_v61 = vsub.f32 %v8726_v49, %v2194_v14  ;;  %v6869_v20 = vpack.c.bf16 %v2194_v14, %v2182_v1  ;;  %v12547_v57 = vand.u32 4294901760, %v10150_v21  ;;  %v600_v35 = vld [vmem:[%s8205_s23 + $0x328] sm:$0xff]  ;;  %v602_v49 = vld [vmem:[%s8205_s23 + $0x338] sm:$0xff] }
 0x180   : > { %4225 = vmatmul.mubr.f32.gmra.mrb[86].mxu0 %v12545_v16  ;;  %v1564_v32 = vsub.f32 %v10210_v47, %v12546_v44  ;;  %1528 = vmatprep.mubr.f32.mxu1 %v1527_v43  ;;  %v2189_v28 = vsub.f32 %v12541_v55, %v2188_v41  ;;  %v2201_v16 = vsub.f32 %v12544_v17, %v2200_v24  ;;  %v11837_v4 = vand.u32 4294901760, %v10238_v26 }
 0x181   : > { %4233 = vmatprep.mubr.f32.mxu0 %v12547_v57  ;;  %v6871_v46 = vpack.c.bf16 %v2200_v24, %v2188_v41  ;;  %v2196_v1 = vand.u32 4294901760, %v2195_v61  ;;  %6870 = vmatprep.subr.bf16.mxu0 %v6869_v20  ;;  %v10276_v43 = vsub.f32 %v598_v9, %v10255_v39  ;;  %v10278_v58 = vand.u32 4294901760, %v597_v33 }
 0x182   : > { %v2190_v14 = vand.u32 4294901760, %v2189_v28  ;;  %v2202_v57 = vand.u32 4294901760, %v2201_v16  ;;  %v12550_v41 = vand.u32 4294901760, %v10156_v62  ;;  %v1549_v24 = vand.u32 4294901760, %v1548_v50  ;;  %v12569_v62 = vld [vmem:[#allocation76_spill] sm:$0xff] }
 0x183   : > { %12548 = vst [vmem:[#allocation72_spill] sm:$0xff] %v10276_v43  ;;  %12549 = vst [vmem:[#allocation285_spill] sm:$0xff] %v10278_v58  ;;  %6872 = vmatpush1.bf16.msra.mxu0 %v6871_v46  ;;  %1534 = vmatmul.mubr.f32.gmra.mrb[88].mxu1 %v1533_v51  ;;  %v12551_v44 = vand.u32 4294901760, %v10216_v7  ;;  %v10285_v61 = vand.u32 4294901760, %v600_v35  ;;  %v6677_v20 = vpack.c.bf16 %v2196_v1, %v2184_v15  ;;  %v12553_v9 = vand.u32 4294901760, %v10183_v12  ;;  %v12568_v12 = vld [vmem:[#allocation74_spill] sm:$0xff] }
 0x184   : > { %4237 = vmatmul.mubr.f32.gmra.mrb[88].mxu0 %v12550_v41  ;;  %1544 = vmatprep.mubr.f32.mxu1 %v1543_v2  ;;  %v1559_v28 = vand.u32 4294901760, %v1558_v36  ;;  %v10289_v16 = vand.u32 4294901760, %v599_v11  ;;  %v10291_v46 = vand.u32 4294901760, %v602_v49  ;;  %v6679_v51 = vpack.c.bf16 %v2202_v57, %v2190_v14  ;;  %v601_v14 = vld [vmem:[%s8205_s23 + $0x330] sm:$0xff] }
 0x185   : > { %v1574_v0 = vsub.f32 %v10216_v7, %v12551_v44  ;;  %12552 = vst [vmem:[#allocation286_spill] sm:$0xff] %v10285_v61  ;;  %4245 = vmatprep.mubr.f32.mxu0 %v12553_v9  ;;  %v1580_v50 = vsub.f32 %v10238_v26, %v11837_v4  ;;  %6678 = vmatprep.subr.bf16.mxu1 %v6677_v20  ;;  %v12556_v44 = vand.u32 4294901760, %v10241_v48  ;;  %v12557_v2 = vand.u32 4294901760, %v10244_v5 }
 0x186   : > { %12554 = vst [vmem:[#allocation287_spill] sm:$0xff] %v10289_v16  ;;  %12555 = vst [vmem:[#allocation288_spill] sm:$0xff] %v10291_v46  ;;  %v10306_v1 = vsub.f32 %v597_v33, %v10278_v58  ;;  %6680 = vmatpush1.bf16.msra.mxu1 %v6679_v51  ;;  %v12559_v57 = vand.u32 4294901760, %v10194_v18  ;;  %v1565_v20 = vand.u32 4294901760, %v1564_v32  ;;  %v10312_v9 = vsub.f32 %v600_v35, %v10285_v61  ;;  %v12565_v32 = vld [vmem:[#allocation73_spill] sm:$0xff] }
 0x187   : > { %v1590_v41 = vsub.f32 %v10241_v48, %v12556_v44  ;;  %v10302_v15 = vsub.f32 %v10244_v5, %v12557_v2  ;;  %1550 = vmatmul.mubr.f32.gmra.mrb[90].mxu1 %v1549_v24  ;;  %v12561_v44 = vand.u32 4294901760, %v10197_v34  ;;  %v1575_v2 = vand.u32 4294901760, %v1574_v0 }
 0x188   : > { %12558 = vst [vmem:[#allocation289_spill] sm:$0xff] %v10306_v1  ;;  %4249 = vmatmul.mubr.f32.gmra.mrb[90].mxu0 %v12559_v57  ;;  %12560 = vst [vmem:[#allocation290_spill] sm:$0xff] %v10312_v9  ;;  %1560 = vmatprep.mubr.f32.mxu1 %v1559_v28  ;;  %v10317_v4 = vsub.f32 %v599_v11, %v10289_v16  ;;  %v10320_v33 = vsub.f32 %v602_v49, %v10291_v46  ;;  %v1581_v24 = vand.u32 4294901760, %v1580_v50  ;;  %v604_v57 = vld [vmem:[%s8205_s23 + $0x348] sm:$0xff]  ;;  %v603_v50 = vld [vmem:[%s8205_s23 + $0x340] sm:$0xff] }
 0x189   : > { %4257 = vmatprep.mubr.f32.mxu0 %v12561_v44  ;;  %v10322_v51 = vand.u32 4294901760, %v601_v14  ;;  %v2206_v36 = vand.u32 4294901760, %v12565_v32  ;;  %v1591_v35 = vand.u32 4294901760, %v1590_v41  ;;  %v1597_v28 = vand.u32 4294901760, %v10302_v15  ;;  %v606_v46 = vld [vmem:[%s8205_s23 + $0x358] sm:$0xff] }
 0x18a   : > { %12562 = vst [vmem:[#allocation291_spill] sm:$0xff] %v10317_v4  ;;  %12563 = vst [vmem:[#allocation292_spill] sm:$0xff] %v10320_v33  ;;  %v12566_v34 = vand.u32 4294901760, %v10276_v43  ;;  %v12567_v49 = vand.u32 4294901760, %v10210_v47  ;;  %v2218_v41 = vand.u32 4294901760, %v12568_v12  ;;  %v2212_v15 = vand.u32 4294901760, %v12569_v62 }
 0x18b   : > { %12564 = vst [vmem:[#allocation293_spill] sm:$0xff] %v10322_v51  ;;  %1566 = vmatmul.mubr.f32.gmra.mrb[92].mxu1 %v1565_v20  ;;  %v2207_v18 = vsub.f32 %v12565_v32, %v2206_v36  ;;  %v12570_v21 = vand.u32 4294901760, %v10216_v7  ;;  %v10342_v11 = vand.u32 4294901760, %v604_v57  ;;  %v10346_v0 = vsub.f32 %v601_v14, %v10322_v51 }
 0x18c   : > { %v1606_v44 = vsub.f32 %v10276_v43, %v12566_v34  ;;  %4261 = vmatmul.mubr.f32.gmra.mrb[92].mxu0 %v12567_v49  ;;  %1576 = vmatprep.mubr.f32.mxu1 %v1575_v2  ;;  %v12572_v49 = vld [vmem:[#allocation78_spill] sm:$0xff]  ;;  %v2219_v61 = vsub.f32 %v12568_v12, %v2218_v41  ;;  %v6873_v2 = vpack.c.bf16 %v2218_v41, %v2206_v36  ;;  %v10350_v58 = vand.u32 4294901760, %v603_v50 }
 0x18d   : > { %4269 = vmatprep.mubr.f32.mxu0 %v12570_v21  ;;  %12571 = vst [vmem:[#allocation73_spill] sm:$0xff] %v10342_v11  ;;  %v2224_v47 = vand.u32 4294901760, %v12572_v49  ;;  %12573 = vst [vmem:[#allocation74_spill] sm:$0xff] %v10346_v0  ;;  %v2208_v16 = vand.u32 4294901760, %v2207_v18  ;;  %v2213_v21 = vsub.f32 %v12569_v62, %v2212_v15  ;;  %v12575_v7 = vand.u32 4294901760, %v10238_v26 }
 0x18e   : > { %12574 = vst [vmem:[#allocation78_spill] sm:$0xff] %v10350_v58  ;;  %v1607_v14 = vand.u32 4294901760, %v1606_v44  ;;  %v12576_v51 = vand.u32 4294901760, %v10306_v1  ;;  %v12577_v39 = vand.u32 4294901760, %v10312_v9  ;;  %v2220_v41 = vand.u32 4294901760, %v2219_v61  ;;  %6874 = vmatprep.subr.bf16.mxu0 %v6873_v2 }
 0x18f   : > { %v2225_v20 = vsub.f32 %v12572_v49, %v2224_v47  ;;  %v6875_v34 = vpack.c.bf16 %v2224_v47, %v2212_v15  ;;  %1582 = vmatmul.mubr.f32.gmra.mrb[94].mxu1 %v1581_v24  ;;  %v12578_v62 = vand.u32 4294901760, %v10241_v48  ;;  %v10365_v47 = vsub.f32 %v604_v57, %v10342_v11 }
 0x190   : > { %4273 = vmatmul.mubr.f32.gmra.mrb[94].mxu0 %v12575_v7  ;;  %v1612_v18 = vsub.f32 %v10306_v1, %v12576_v51  ;;  %v1622_v36 = vsub.f32 %v10312_v9, %v12577_v39  ;;  %1592 = vmatprep.mubr.f32.mxu1 %v1591_v35  ;;  %v10367_v24 = vand.u32 4294901760, %v606_v46  ;;  %v605_v7 = vld [vmem:[%s8205_s23 + $0x350] sm:$0xff]  ;;  %v2214_v44 = vand.u32 4294901760, %v2213_v21  ;;  %v608_v51 = vld [vmem:[%s8205_s23 + $0x368] sm:$0xff] }
 0x191   : > { %4281 = vmatprep.mubr.f32.mxu0 %v12578_v62  ;;  %12579 = vst [vmem:[#allocation294_spill] sm:$0xff] %v10365_v47  ;;  %v2226_v15 = vand.u32 4294901760, %v2225_v20  ;;  %v6681_v26 = vpack.c.bf16 %v2220_v41, %v2208_v16  ;;  %v12581_v39 = vand.u32 4294901760, %v10317_v4  ;;  %v12582_v35 = vand.u32 4294901760, %v10320_v33  ;;  %6876 = vmatpush1.bf16.msra.mxu0 %v6875_v34  ;;  %v607_v41 = vld [vmem:[%s8205_s23 + $0x360] sm:$0xff] }
 0x192   : > { %12580 = vst [vmem:[#allocation295_spill] sm:$0xff] %v10367_v24  ;;  %v12583_v48 = vand.u32 4294901760, %v10244_v5  ;;  %v1613_v21 = vand.u32 4294901760, %v1612_v18  ;;  %v1643_v20 = vand.u32 4294901760, %v10346_v0  ;;  %v10381_v16 = vsub.f32 %v603_v50, %v10350_v58  ;;  %v12589_v18 = vld [vmem:[#allocation80_spill] sm:$0xff]  ;;  %v12590_v50 = vld [vmem:[#allocation81_spill] sm:$0xff] }
 0x193   : > { %v1628_v61 = vsub.f32 %v10317_v4, %v12581_v39  ;;  %v1638_v62 = vsub.f32 %v10320_v33, %v12582_v35  ;;  %v6683_v57 = vpack.c.bf16 %v2226_v15, %v2214_v44  ;;  %1598 = vmatmul.mubr.f32.gmra.mrb[96].mxu1 %v1597_v28  ;;  %v10383_v2 = vand.u32 4294901760, %v605_v7  ;;  %v610_v39 = vld [vmem:[%s8205_s23 + $0x378] sm:$0xff]  ;;  %6682 = vmatprep.subr.bf16.mxu1 %v6681_v26  ;;  %v12591_v35 = vld [vmem:[#allocation18_spill] sm:$0xff] }
 0x194   : > { %4285 = vmatmul.mubr.f32.gmra.mrb[96].mxu0 %v12583_v48  ;;  %12584 = vst [vmem:[#allocation296_spill] sm:$0xff] %v10381_v16  ;;  %1608 = vmatprep.mubr.f32.mxu1 %v1607_v14  ;;  %v12586_v11 = vand.u32 4294901760, %v10276_v43  ;;  %v1623_v44 = vand.u32 4294901760, %v1622_v36  ;;  %v1653_v28 = vand.u32 4294901760, %v10365_v47  ;;  %v10391_v34 = vsub.f32 %v606_v46, %v10367_v24 }
 0x195   : > { %12585 = vst [vmem:[#allocation297_spill] sm:$0xff] %v10383_v2  ;;  %v10393_v48 = vand.u32 4294901760, %v608_v51  ;;  %v6685_v15 = vpack.c.bf16 %v12590_v50, %v12589_v18  ;;  %6878 = vmatprep.subr.bf16.mxu0 %v12591_v35  ;;  %v10398_v5 = vand.u32 4294901760, %v607_v41  ;;  %v10400_v14 = vand.u32 4294901760, %v610_v39  ;;  %6684 = vmatpush1.bf16.msra.mxu1 %v6683_v57 }
 0x196   : > { %4293 = vmatprep.mubr.f32.mxu0 %v12586_v11  ;;  %12587 = vst [vmem:[#allocation298_spill] sm:$0xff] %v10391_v34  ;;  %v12594_v11 = vand.u32 4294901760, %v10306_v1  ;;  %v1629_v46 = vand.u32 4294901760, %v1628_v61  ;;  %v1644_v36 = vsub.f32 %v10346_v0, %v1643_v20  ;;  %v1659_v26 = vand.u32 4294901760, %v10381_v16  ;;  %v609_v61 = vld [vmem:[%s8205_s23 + $0x370] sm:$0xff] }
 0x197   : > { %12588 = vst [vmem:[#allocation299_spill] sm:$0xff] %v10393_v48  ;;  %12592 = vst [vmem:[#allocation80_spill] sm:$0xff] %v10398_v5  ;;  %1614 = vmatmul.mubr.f32.gmra.mrb[98].mxu1 %v1613_v21  ;;  %v10407_v18 = vsub.f32 %v605_v7, %v10383_v2  ;;  %v12596_v50 = vand.u32 4294901760, %v10312_v9  ;;  %v1639_v35 = vand.u32 4294901760, %v1638_v62  ;;  %v1654_v43 = vsub.f32 %v10365_v47, %v1653_v28 }
 0x198   : > { %12593 = vst [vmem:[#allocation81_spill] sm:$0xff] %v10400_v14  ;;  %4297 = vmatmul.mubr.f32.gmra.mrb[98].mxu0 %v12594_v11  ;;  %1624 = vmatprep.mubr.f32.mxu1 %v1623_v44  ;;  %v1669_v57 = vand.u32 4294901760, %v10391_v34  ;;  %v10414_v21 = vsub.f32 %v608_v51, %v10393_v48  ;;  %v612_v11 = vld [vmem:[%s8205_s23 + $0x388] sm:$0xff]  ;;  %v10419_v7 = vsub.f32 %v607_v41, %v10398_v5  ;;  %v12600_v62 = vand.u32 4294901760, %v10317_v4  ;;  %v611_v4 = vld [vmem:[%s8205_s23 + $0x380] sm:$0xff] }
 0x199   : > { %12595 = vst [vmem:[#allocation18_spill] sm:$0xff] %v10407_v18  ;;  %4305 = vmatprep.mubr.f32.mxu0 %v12596_v50  ;;  %6686 = vmatprep.subr.bf16.mxu1 %v6685_v15  ;;  %v10422_v44 = vsub.f32 %v610_v39, %v10400_v14  ;;  %v1645_v50 = vand.u32 4294901760, %v1644_v36  ;;  %v1660_v47 = vsub.f32 %v10381_v16, %v1659_v26  ;;  %v1675_v51 = vand.u32 4294901760, %v10407_v18  ;;  %v614_v36 = vld [vmem:[%s8205_s23 + $0x398] sm:$0xff] }
 0x19a   : > { %12597 = vst [vmem:[#allocation300_spill] sm:$0xff] %v10414_v21  ;;  %12598 = vst [vmem:[#allocation301_spill] sm:$0xff] %v10419_v7  ;;  %v10428_v0 = vand.u32 4294901760, %v609_v61  ;;  %v12602_v15 = vand.u32 4294901760, %v10320_v33  ;;  %v1655_v41 = vand.u32 4294901760, %v1654_v43  ;;  %v1670_v9 = vsub.f32 %v10391_v34, %v1669_v57 }
 0x19b   : > { %12599 = vst [vmem:[#allocation302_spill] sm:$0xff] %v10422_v44  ;;  %1630 = vmatmul.mubr.f32.gmra.mrb[100].mxu1 %v1629_v46  ;;  %v1685_v39 = vand.u32 4294901760, %v10414_v21  ;;  %v10434_v46 = vand.u32 4294901760, %v612_v11  ;;  %v1701_v16 = vand.u32 4294901760, %v10422_v44  ;;  %v10444_v34 = vand.u32 4294901760, %v611_v4 }
 0x19c   : > { %4309 = vmatmul.mubr.f32.gmra.mrb[100].mxu0 %v12600_v62  ;;  %12601 = vst [vmem:[#allocation303_spill] sm:$0xff] %v10428_v0  ;;  %1640 = vmatprep.mubr.f32.mxu1 %v1639_v35  ;;  %v1691_v62 = vand.u32 4294901760, %v10419_v7  ;;  %v1661_v35 = vand.u32 4294901760, %v1660_v47  ;;  %v10442_v43 = vsub.f32 %v609_v61, %v10428_v0  ;;  %v1671_v33 = vand.u32 4294901760, %v1670_v9  ;;  %v616_v47 = vld [vmem:[%s8205_s23 + $0x3a8] sm:$0xff] }
 0x19d   : > { %4317 = vmatprep.mubr.f32.mxu0 %v12602_v15  ;;  %12603 = vst [vmem:[#allocation304_spill] sm:$0xff] %v10434_v46  ;;  %v1676_v15 = vsub.f32 %v10407_v18, %v1675_v51  ;;  %12605 = vst [vmem:[#allocation306_spill] sm:$0xff] %v10444_v34  ;;  %v1686_v1 = vsub.f32 %v10414_v21, %v1685_v39  ;;  %v10448_v14 = vsub.f32 %v612_v11, %v10434_v46  ;;  %v615_v11 = vld [vmem:[%s8205_s23 + $0x3a0] sm:$0xff] }
 0x19e   : > { %12604 = vst [vmem:[#allocation305_spill] sm:$0xff] %v10442_v43  ;;  %v10450_v5 = vand.u32 4294901760, %v614_v36  ;;  %v1702_v61 = vsub.f32 %v10422_v44, %v1701_v16  ;;  %v10458_v9 = vsub.f32 %v611_v4, %v10444_v34  ;;  %v10470_v44 = vand.u32 4294901760, %v615_v11 }
 0x19f   : > { %1646 = vmatmul.mubr.f32.gmra.mrb[102].mxu1 %v1645_v50  ;;  %12606 = vst [vmem:[#allocation307_spill] sm:$0xff] %v10448_v14  ;;  %v1692_v50 = vsub.f32 %v10419_v7, %v1691_v62  ;;  %v1687_v18 = vand.u32 4294901760, %v1686_v1  ;;  %v1717_v46 = vand.u32 4294901760, %v10448_v14 }
 0x1a0   : > { %4321 = vmatmul.mubr.f32.gmra.mrb[102].mxu0 %v1643_v20  ;;  %1656 = vmatprep.mubr.f32.mxu1 %v1655_v41  ;;  %12607 = vst [vmem:[#allocation308_spill] sm:$0xff] %v10450_v5  ;;  %v613_v20 = vld [vmem:[%s8205_s23 + $0x390] sm:$0xff]  ;;  %v1677_v41 = vand.u32 4294901760, %v1676_v15  ;;  %12608 = vst [vmem:[#allocation309_spill] sm:$0xff] %v10458_v9  ;;  %v10465_v7 = vsub.f32 %v614_v36, %v10450_v5  ;;  %v1703_v5 = vand.u32 4294901760, %v1702_v61 }
 0x1a1   : > { %4329 = vmatprep.mubr.f32.mxu0 %v1653_v28  ;;  %v1707_v28 = vand.u32 4294901760, %v10442_v43  ;;  %v10460_v21 = vand.u32 4294901760, %v613_v20  ;;  %v1693_v15 = vand.u32 4294901760, %v1692_v50  ;;  %12612 = vst [vmem:[#allocation313_spill] sm:$0xff] %v10470_v44  ;;  %v617_v36 = vld [vmem:[%s8205_s23 + $0x3b0] sm:$0xff]  ;;  %v1718_v34 = vsub.f32 %v10448_v14, %v1717_v46 }
 0x1a2   : > { %12610 = vst [vmem:[#allocation311_spill] sm:$0xff] %v10465_v7  ;;  %v1733_v50 = vand.u32 4294901760, %v10465_v7 }
 0x1a3   : > { %1662 = vmatmul.mubr.f32.gmra.mrb[104].mxu1 %v1661_v35  ;;  %12609 = vst [vmem:[#allocation310_spill] sm:$0xff] %v10460_v21  ;;  %v10467_v35 = vand.u32 4294901760, %v616_v47  ;;  %v1708_v4 = vsub.f32 %v10442_v43, %v1707_v28  ;;  %v10475_v1 = vsub.f32 %v613_v20, %v10460_v21  ;;  %v10487_v43 = vsub.f32 %v615_v11, %v10470_v44  ;;  %v619_v21 = vld [vmem:[%s8205_s23 + $0x3c0] sm:$0xff] }
 0x1a4   : > { %4333 = vmatmul.mubr.f32.gmra.mrb[104].mxu0 %v1659_v26  ;;  %1672 = vmatprep.mubr.f32.mxu1 %v1671_v33  ;;  %v618_v26 = vld [vmem:[%s8205_s23 + $0x3b8] sm:$0xff]  ;;  %v1723_v33 = vand.u32 4294901760, %v10458_v9  ;;  %v10489_v20 = vand.u32 4294901760, %v617_v36 }
 0x1a5   : > { %4341 = vmatprep.mubr.f32.mxu0 %v1669_v57  ;;  %12611 = vst [vmem:[#allocation312_spill] sm:$0xff] %v10467_v35  ;;  %12613 = vst [vmem:[#allocation314_spill] sm:$0xff] %v10475_v1  ;;  %v10477_v57 = vand.u32 4294901760, %v618_v26  ;;  %v1739_v61 = vand.u32 4294901760, %v10475_v1 }
 0x1a6   : > { %12616 = vst [vmem:[#allocation317_spill] sm:$0xff] %v10487_v43 }
 0x1a7   : > { %1678 = vmatmul.mubr.f32.gmra.mrb[106].mxu1 %v1677_v41  ;;  %12614 = vst [vmem:[#allocation315_spill] sm:$0xff] %v10477_v57  ;;  %v10483_v41 = vsub.f32 %v616_v47, %v10467_v35  ;;  %v10494_v14 = vsub.f32 %v618_v26, %v10477_v57  ;;  %v1719_v47 = vand.u32 4294901760, %v1718_v34  ;;  %v1734_v35 = vsub.f32 %v10465_v7, %v1733_v50 }
 0x1a8   : > { %4345 = vmatmul.mubr.f32.gmra.mrb[106].mxu0 %v1675_v51  ;;  %1688 = vmatprep.mubr.f32.mxu1 %v1687_v18  ;;  %v620_v51 = vld [vmem:[%s8205_s23 + $0x3c8] sm:$0xff]  ;;  %v1709_v18 = vand.u32 4294901760, %v1708_v4  ;;  %v10504_v4 = vsub.f32 %v617_v36, %v10489_v20  ;;  %v10508_v26 = vand.u32 4294901760, %v619_v21  ;;  %v621_v36 = vld [vmem:[%s8205_s23 + $0x3d0] sm:$0xff] }
 0x1a9   : > { %4353 = vmatprep.mubr.f32.mxu0 %v1685_v39  ;;  %12615 = vst [vmem:[#allocation316_spill] sm:$0xff] %v10483_v41  ;;  %v1724_v39 = vsub.f32 %v10458_v9, %v1723_v33  ;;  %12617 = vst [vmem:[#allocation318_spill] sm:$0xff] %v10494_v14  ;;  %v1749_v11 = vand.u32 4294901760, %v10483_v41  ;;  %v10498_v44 = vand.u32 4294901760, %v620_v51  ;;  %v1765_v34 = vand.u32 4294901760, %v10494_v14 }
 0x1aa   : > { %12619 = vst [vmem:[#allocation320_spill] sm:$0xff] %v10504_v4  ;;  %v1735_v7 = vand.u32 4294901760, %v1734_v35  ;;  %v10522_v35 = vsub.f32 %v619_v21, %v10508_v26 }
 0x1ab   : > { %1694 = vmatmul.mubr.f32.gmra.mrb[108].mxu1 %v1693_v15  ;;  %12618 = vst [vmem:[#allocation319_spill] sm:$0xff] %v10498_v44  ;;  %v1755_v15 = vand.u32 4294901760, %v10487_v43  ;;  %v1750_v9 = vsub.f32 %v10483_v41, %v1749_v11  ;;  %v10512_v57 = vsub.f32 %v620_v51, %v10498_v44  ;;  %v10524_v51 = vand.u32 4294901760, %v621_v36 }
 0x1ac   : > { %4357 = vmatmul.mubr.f32.gmra.mrb[108].mxu0 %v1691_v62  ;;  %1704 = vmatprep.mubr.f32.mxu1 %v1703_v5  ;;  %v622_v62 = vld [vmem:[%s8205_s23 + $0x3d8] sm:$0xff]  ;;  %v1725_v5 = vand.u32 4294901760, %v1724_v39  ;;  %v1771_v39 = vand.u32 4294901760, %v10504_v4  ;;  %12622 = vst [vmem:[#allocation323_spill] sm:$0xff] %v10522_v35 }
 0x1ad   : > { %4365 = vmatprep.mubr.f32.mxu0 %v1701_v16  ;;  %v1740_v16 = vsub.f32 %v10475_v1, %v1739_v61  ;;  %12620 = vst [vmem:[#allocation321_spill] sm:$0xff] %v10512_v57  ;;  %v10514_v0 = vand.u32 4294901760, %v622_v62  ;;  %12623 = vst [vmem:[#allocation324_spill] sm:$0xff] %v10524_v51  ;;  %v1751_v41 = vand.u32 4294901760, %v1750_v9  ;;  %v1781_v1 = vand.u32 4294901760, %v10512_v57 }
 0x1ae   : > { %v10537_v9 = vsub.f32 %v621_v36, %v10524_v51 }
 0x1af   : > { %1710 = vmatmul.mubr.f32.gmra.mrb[110].mxu1 %v1709_v18  ;;  %12621 = vst [vmem:[#allocation322_spill] sm:$0xff] %v10514_v0  ;;  %v1756_v18 = vsub.f32 %v10487_v43, %v1755_v15  ;;  %v10528_v44 = vsub.f32 %v622_v62, %v10514_v0  ;;  %v1782_v62 = vsub.f32 %v10512_v57, %v1781_v1 }
 0x1b0   : > { %4369 = vmatmul.mubr.f32.gmra.mrb[110].mxu0 %v1707_v28  ;;  %1720 = vmatprep.mubr.f32.mxu1 %v1719_v47  ;;  %v624_v28 = vld [vmem:[%s8205_s23 + $0x3e8] sm:$0xff]  ;;  %v1741_v47 = vand.u32 4294901760, %v1740_v16  ;;  %12626 = vst [vmem:[#allocation327_spill] sm:$0xff] %v10537_v9 }
 0x1b1   : > { %4377 = vmatprep.mubr.f32.mxu0 %v1717_v46  ;;  %v1766_v46 = vsub.f32 %v10494_v14, %v1765_v34  ;;  %12624 = vst [vmem:[#allocation325_spill] sm:$0xff] %v10528_v44  ;;  %v10530_v43 = vand.u32 4294901760, %v624_v28  ;;  %v1757_v16 = vand.u32 4294901760, %v1756_v18  ;;  %v1772_v14 = vsub.f32 %v10504_v4, %v1771_v39 }
 0x1b2   : > { %v1797_v0 = vand.u32 4294901760, %v10528_v44  ;;  %v1783_v57 = vand.u32 4294901760, %v1782_v62 }
 0x1b3   : > { %1726 = vmatmul.mubr.f32.gmra.mrb[112].mxu1 %v1725_v5  ;;  %12625 = vst [vmem:[#allocation326_spill] sm:$0xff] %v10530_v43  ;;  %v623_v5 = vld [vmem:[%s8205_s23 + $0x3e0] sm:$0xff]  ;;  %v1767_v21 = vand.u32 4294901760, %v1766_v46  ;;  %v10544_v18 = vsub.f32 %v624_v28, %v10530_v43  ;;  %v1803_v46 = vand.u32 4294901760, %v10537_v9 }
 0x1b4   : > { %4381 = vmatmul.mubr.f32.gmra.mrb[112].mxu0 %v1723_v33  ;;  %1736 = vmatprep.mubr.f32.mxu1 %v1735_v7  ;;  %v626_v33 = vld [vmem:[%s8205_s23 + $0x3f8] sm:$0xff]  ;;  %v1787_v7 = vand.u32 4294901760, %v10522_v35  ;;  %v1798_v28 = vsub.f32 %v10528_v44, %v1797_v0 }
 0x1b5   : > { %4389 = vmatprep.mubr.f32.mxu0 %v1733_v50  ;;  %v10539_v50 = vand.u32 4294901760, %v623_v5  ;;  %12628 = vst [vmem:[#allocation329_spill] sm:$0xff] %v10544_v18  ;;  %v10546_v4 = vand.u32 4294901760, %v626_v33  ;;  %v1813_v43 = vand.u32 4294901760, %v10544_v18 }
 0x1b6   : > { %v1788_v36 = vsub.f32 %v10522_v35, %v1787_v7 }
 0x1b7   : > { %1742 = vmatmul.mubr.f32.gmra.mrb[114].mxu1 %v1741_v47  ;;  %12627 = vst [vmem:[#allocation328_spill] sm:$0xff] %v10539_v50  ;;  %12629 = vst [vmem:[#allocation330_spill] sm:$0xff] %v10546_v4  ;;  %v1773_v47 = vand.u32 4294901760, %v1772_v14  ;;  %v10559_v14 = vsub.f32 %v626_v33, %v10546_v4 }
 0x1b8   : > { %4393 = vmatmul.mubr.f32.gmra.mrb[114].mxu0 %v1739_v61  ;;  %1752 = vmatprep.mubr.f32.mxu1 %v1751_v41  ;;  %v625_v61 = vld [vmem:[%s8205_s23 + $0x3f0] sm:$0xff]  ;;  %v10552_v41 = vsub.f32 %v623_v5, %v10539_v50  ;;  %s11314_s23 = scalar_lea.hbm %s13015_s8, %s6551_s19 }
 0x1b9   : > { %4401 = vmatprep.mubr.f32.mxu0 %v1749_v11  ;;  %v10554_v11 = vand.u32 4294901760, %v625_v61  ;;  %12632 = vst [vmem:[#allocation333_spill] sm:$0xff] %v10559_v14  ;;  %v1829_v62 = vand.u32 4294901760, %v10559_v14 }
 0x1ba   : > { %12630 = vst [vmem:[#allocation331_spill] sm:$0xff] %v10552_v41  ;;  %v1819_v5 = vand.u32 4294901760, %v10552_v41 }
 0x1bb   : > { %1758 = vmatmul.mubr.f32.gmra.mrb[116].mxu1 %v1757_v16  ;;  %12631 = vst [vmem:[#allocation332_spill] sm:$0xff] %v10554_v11  ;;  %v1804_v16 = vsub.f32 %v10537_v9, %v1803_v46  ;;  %v10564_v35 = vsub.f32 %v625_v61, %v10554_v11  ;;  %v1830_v61 = vsub.f32 %v10559_v14, %v1829_v62  ;;  %v12727_v14 = vld [vmem:[#allocation163_spill] sm:$0xff]  ;;  %v12736_v9 = vld [vmem:[#allocation66_spill] sm:$0xff] }
 0x1bc   : > { %4405 = vmatmul.mubr.f32.gmra.mrb[116].mxu0 %v1755_v15  ;;  %1768 = vmatprep.mubr.f32.mxu1 %v1767_v21  ;;  %v1789_v15 = vand.u32 4294901760, %v1788_v36  ;;  %v1814_v21 = vsub.f32 %v10544_v18, %v1813_v43  ;;  %v12735_v18 = vld [vmem:[#allocation65_spill] sm:$0xff] }
 0x1bd   : > { %4413 = vmatprep.mubr.f32.mxu0 %v1765_v34  ;;  %12633 = vst [vmem:[#allocation334_spill] sm:$0xff] %v10564_v35  ;;  %v1799_v34 = vand.u32 4294901760, %v1798_v28  ;;  %v1805_v33 = vand.u32 4294901760, %v1804_v16  ;;  %v1831_v28 = vand.u32 4294901760, %v1830_v61  ;;  %v12636_v16 = vld [vmem:[#allocation84_spill] sm:$0xff]  ;;  %v6739_v44 = vpack.c.bf16 %v12736_v9, %v12735_v18 }
 0x1be   : > { %v1815_v36 = vand.u32 4294901760, %v1814_v21  ;;  %v12638_v21 = vld [vmem:[#allocation86_spill] sm:$0xff]  ;;  %v12644_v61 = vld [vmem:[#allocation20_spill] sm:$0xff] }
 0x1bf   : > { %1774 = vmatmul.mubr.f32.gmra.mrb[118].mxu1 %v1773_v47  ;;  %v1835_v47 = vand.u32 4294901760, %v10564_v35  ;;  %v12742_v9 = vld [vmem:[#allocation184_spill] sm:$0xff] }
 0x1c0   : > { %4417 = vmatmul.mubr.f32.gmra.mrb[118].mxu0 %v1771_v39  ;;  %1784 = vmatprep.mubr.f32.mxu1 %v1783_v57  ;;  %v1820_v39 = vsub.f32 %v10552_v41, %v1819_v5  ;;  %v12729_v41 = vld [vmem:[#allocation165_spill] sm:$0xff]  ;;  %v12744_v18 = vld [vmem:[#allocation188_spill] sm:$0xff] }
 0x1c1   : > { %4425 = vmatprep.mubr.f32.mxu0 %v1781_v1  ;;  %v1836_v57 = vsub.f32 %v10564_v35, %v1835_v47  ;;  %v12726_v35 = vld [vmem:[#allocation159_spill] sm:$0xff] }
 0x1c2   : > { %v1821_v1 = vand.u32 4294901760, %v1820_v39  ;;  %v12639_v39 = vld [vmem:[#allocation91_spill] sm:$0xff] }
 0x1c3   : > { %1790 = vmatmul.mubr.f32.gmra.mrb[120].mxu1 %v1789_v15  ;;  %v12634_v15 = vld [vmem:[#allocation75_spill] sm:$0xff] }
 0x1c4   : > { %4429 = vmatmul.mubr.f32.gmra.mrb[120].mxu0 %v1787_v7  ;;  %1800 = vmatprep.mubr.f32.mxu1 %v1799_v34  ;;  %v1837_v7 = vand.u32 4294901760, %v1836_v57  ;;  %v12637_v34 = vld [vmem:[#allocation85_spill] sm:$0xff]  ;;  %v12645_v57 = vld [vmem:[#allocation96_spill] sm:$0xff] }
 0x1c5   : > { %4437 = vmatprep.mubr.f32.mxu0 %v1797_v0  ;;  %v12635_v0 = vld [vmem:[#allocation83_spill] sm:$0xff] }
 0x1c7   : > { %1806 = vmatmul.mubr.f32.gmra.mrb[122].mxu1 %v1805_v33  ;;  %v6689_v33 = vpack.c.bf16 %v12638_v21, %v12637_v34  ;;  %v12651_v34 = vld [vmem:[#allocation23_spill] sm:$0xff] }
 0x1c8   : > { %4441 = vmatmul.mubr.f32.gmra.mrb[122].mxu0 %v1803_v46  ;;  %1816 = vmatprep.mubr.f32.mxu1 %v1815_v36  ;;  %v6687_v46 = vpack.c.bf16 %v12636_v16, %v12635_v0  ;;  %v6695_v0 = vpack.c.bf16 %v8872_v31, %v8867_v23  ;;  %v12648_v16 = vld [vmem:[#allocation22_spill] sm:$0xff]  ;;  %v6699_v23 = vpack.c.bf16 %v8331_v53, %v8329_v52  ;;  %v12652_v31 = vld [vmem:[#allocation24_spill] sm:$0xff]  ;;  %v12654_v21 = vld [vmem:[#allocation111_spill] sm:$0xff] }
 0x1c9   : > { %4449 = vmatprep.mubr.f32.mxu0 %v1813_v43  ;;  %v12640_v43 = vld [vmem:[#allocation19_spill] sm:$0xff]  ;;  %v6703_v52 = vpack.c.bf16 %v8349_v63, %v8341_v60  ;;  %v12656_v53 = vld [vmem:[#allocation26_spill] sm:$0xff]  ;;  %v6707_v60 = vpack.c.bf16 %v8374_v27, %v8365_v38  ;;  %v12659_v63 = vld [vmem:[#allocation29_spill] sm:$0xff]  ;;  %v6711_v27 = vpack.c.bf16 %v12297_v10, %v12295_v13 }
 0x1ca   : > { %v12661_v38 = vld [vmem:[#allocation35_spill] sm:$0xff]  ;;  %v12669_v13 = vld [vmem:[#allocation44_spill] sm:$0xff] }
 0x1cb   : > { %1822 = vmatmul.mubr.f32.gmra.mrb[124].mxu1 %v1821_v1  ;;  %v6693_v1 = vpack.c.bf16 %v8862_v3, %v8853_v56  ;;  %v6697_v56 = vpack.c.bf16 %v8321_v42, %v8316_v40  ;;  %v12649_v3 = vld [vmem:[#allocation99_spill] sm:$0xff]  ;;  %v6701_v40 = vpack.c.bf16 %v8339_v59, %v8333_v54  ;;  %v12653_v42 = vld [vmem:[#allocation110_spill] sm:$0xff]  ;;  %v6705_v54 = vpack.c.bf16 %v8363_v37, %v8351_v22  ;;  %v12657_v59 = vld [vmem:[#allocation112_spill] sm:$0xff] }
 0x1cc   : > { %4453 = vmatmul.mubr.f32.gmra.mrb[124].mxu0 %v1819_v5  ;;  %1832 = vmatprep.mubr.f32.mxu1 %v1831_v28  ;;  %v12641_v5 = vld [vmem:[#allocation92_spill] sm:$0xff]  ;;  %v12646_v28 = vld [vmem:[#allocation97_spill] sm:$0xff]  ;;  %v6709_v22 = vpack.c.bf16 %v8389_v25, %v8376_v45  ;;  %v12660_v37 = vld [vmem:[#allocation31_spill] sm:$0xff] }
 0x1cd   : > { %4461 = vmatprep.mubr.f32.mxu0 %v1829_v62  ;;  %v12642_v62 = vld [vmem:[#allocation87_spill] sm:$0xff]  ;;  %v12664_v45 = vld [vmem:[#allocation116_spill] sm:$0xff] }
 0x1cf   : > { %1838 = vmatmul.mubr.f32.gmra.mrb[126].mxu1 %v1837_v7  ;;  %v12647_v7 = vld [vmem:[#allocation21_spill] sm:$0xff] }
 0x1d0   : > { %4465 = vmatmul.mubr.f32.gmra.mrb[126].mxu0 %v1835_v47  ;;  %2229 = vmatprep.mubr.f32.mxu1 %v12634_v15  ;;  %v12643_v47 = vld [vmem:[#allocation88_spill] sm:$0xff] }
 0x1d1   : > { %4728 = vmatprep.mubr.f32.mxu0 %v12634_v15  ;;  %v6691_v36 = vpack.c.bf16 %v12643_v47, %v12642_v62  ;;  %v12662_v62 = vld [vmem:[#allocation32_spill] sm:$0xff]  ;;  %v12663_v47 = vld [vmem:[#allocation33_spill] sm:$0xff] }
 0x1d2   : > { %v6713_v25 = vpack.c.bf16 %v12663_v47, %v12662_v62  ;;  %v12685_v47 = vld [vmem:[#allocation60_spill] sm:$0xff] }
 0x1d3   : > { %2231 = vmatmul.mubr.f32.vlgmr.msra.gmra.mrb[0].mxu1 %v12639_v39 }
 0x1d4   : > { %4730 = vmatmul.mubr.f32.vlgmr.msra.gmra.mrb[0].mxu0 %v12639_v39  ;;  %6688 = vmatpush1.bf16.msra.mxu1 %v6687_v46  ;;  %v12650_v46 = vld [vmem:[#allocation105_spill] sm:$0xff] }
 0x1d5   : > { %6880 = vmatpush1.bf16.msra.mxu0 %v12640_v43  ;;  %2237 = vmatprep.mubr.f32.mxu1 %v12641_v5  ;;  %v12658_v43 = vld [vmem:[#allocation27_spill] sm:$0xff] }
 0x1d6   : > { %4736 = vmatprep.mubr.f32.mxu0 %v12641_v5  ;;  %6690 = vmatprep.subr.bf16.mxu1 %v6689_v33  ;;  %v12655_v33 = vld [vmem:[#allocation25_spill] sm:$0xff] }
 0x1d7   : > { %6882 = vmatprep.subr.bf16.mxu0 %v12644_v61  ;;  %2239 = vmatmul.mubr.f32.gmra.mrb[2].mxu1 %v12645_v57  ;;  %v12666_v61 = vld [vmem:[#allocation41_spill] sm:$0xff] }
 0x1d8   : > { %4738 = vmatmul.mubr.f32.gmra.mrb[2].mxu0 %v12645_v57  ;;  %2245 = vmatprep.mubr.f32.mxu1 %v12646_v28 }
 0x1d9   : > { %4744 = vmatprep.mubr.f32.mxu0 %v12646_v28  ;;  %6692 = vmatpush1.bf16.msra.mxu1 %v6691_v36  ;;  %v12665_v36 = vld [vmem:[#allocation117_spill] sm:$0xff] }
 0x1da   : > { %6884 = vmatpush1.bf16.msra.mxu0 %v12647_v7  ;;  %6694 = vmatprep.subr.bf16.mxu1 %v6693_v1  ;;  %v12667_v1 = vld [vmem:[#allocation34_spill] sm:$0xff]  ;;  %v12668_v7 = vld [vmem:[#allocation36_spill] sm:$0xff] }
 0x1db   : > { %6886 = vmatprep.subr.bf16.mxu0 %v12648_v16  ;;  %2247 = vmatmul.mubr.f32.gmra.mrb[4].mxu1 %v12649_v3  ;;  %v6715_v10 = vpack.c.bf16 %v12668_v7, %v12667_v1  ;;  %v12671_v16 = vld [vmem:[#allocation38_spill] sm:$0xff]  ;;  %v12688_v7 = vld [vmem:[#allocation131_spill] sm:$0xff] }
 0x1dc   : > { %4746 = vmatmul.mubr.f32.gmra.mrb[4].mxu0 %v12649_v3  ;;  %2253 = vmatprep.mubr.f32.mxu1 %v12650_v46 }
 0x1dd   : > { %4752 = vmatprep.mubr.f32.mxu0 %v12650_v46  ;;  %6696 = vmatpush1.bf16.msra.mxu1 %v6695_v0  ;;  %v12670_v0 = vld [vmem:[#allocation37_spill] sm:$0xff] }
 0x1de   : > { %6888 = vmatpush1.bf16.msra.mxu0 %v12651_v34  ;;  %6698 = vmatprep.subr.bf16.mxu1 %v6697_v56  ;;  %v6717_v56 = vpack.c.bf16 %v12671_v16, %v12670_v0  ;;  %v12672_v34 = vld [vmem:[#allocation121_spill] sm:$0xff]  ;;  %v12692_v16 = vld [vmem:[#allocation50_spill] sm:$0xff] }
 0x1df   : > { %6890 = vmatprep.subr.bf16.mxu0 %v12652_v31  ;;  %2255 = vmatmul.mubr.f32.gmra.mrb[6].mxu1 %v12653_v42  ;;  %v12674_v31 = vld [vmem:[#allocation52_spill] sm:$0xff]  ;;  %v12691_v0 = vld [vmem:[#allocation49_spill] sm:$0xff] }
 0x1e0   : > { %4754 = vmatmul.mubr.f32.gmra.mrb[6].mxu0 %v12653_v42  ;;  %2261 = vmatprep.mubr.f32.mxu1 %v12654_v21 }
 0x1e1   : > { %4760 = vmatprep.mubr.f32.mxu0 %v12654_v21  ;;  %6700 = vmatpush1.bf16.msra.mxu1 %v6699_v23  ;;  %v12673_v23 = vld [vmem:[#allocation125_spill] sm:$0xff] }
 0x1e2   : > { %6892 = vmatpush1.bf16.msra.mxu0 %v12655_v33  ;;  %6702 = vmatprep.subr.bf16.mxu1 %v6701_v40  ;;  %v12675_v40 = vld [vmem:[#allocation39_spill] sm:$0xff]  ;;  %v12676_v33 = vld [vmem:[#allocation40_spill] sm:$0xff] }
 0x1e3   : > { %6894 = vmatprep.subr.bf16.mxu0 %v12656_v53  ;;  %2263 = vmatmul.mubr.f32.gmra.mrb[8].mxu1 %v12657_v59  ;;  %v12677_v53 = vld [vmem:[#allocation55_spill] sm:$0xff] }
 0x1e4   : > { %4762 = vmatmul.mubr.f32.gmra.mrb[8].mxu0 %v12657_v59  ;;  %2269 = vmatprep.mubr.f32.mxu1 %v9034_v29 }
 0x1e5   : > { %4768 = vmatprep.mubr.f32.mxu0 %v9034_v29  ;;  %6704 = vmatpush1.bf16.msra.mxu1 %v6703_v52  ;;  %v6719_v52 = vpack.c.bf16 %v12676_v33, %v12675_v40  ;;  %v12694_v40 = vld [vmem:[#allocation133_spill] sm:$0xff]  ;;  %v12695_v33 = vld [vmem:[#allocation134_spill] sm:$0xff] }
 0x1e6   : > { %6896 = vmatpush1.bf16.msra.mxu0 %v12658_v43  ;;  %6706 = vmatprep.subr.bf16.mxu1 %v6705_v54  ;;  %v12678_v54 = vld [vmem:[#allocation42_spill] sm:$0xff]  ;;  %v12679_v43 = vld [vmem:[#allocation43_spill] sm:$0xff] }
 0x1e7   : > { %6898 = vmatprep.subr.bf16.mxu0 %v12659_v63  ;;  %2271 = vmatmul.mubr.f32.gmra.mrb[10].mxu1 %v9042_v30  ;;  %v12680_v63 = vld [vmem:[#allocation126_spill] sm:$0xff] }
 0x1e8   : > { %4770 = vmatmul.mubr.f32.gmra.mrb[10].mxu0 %v9042_v30  ;;  %2277 = vmatprep.mubr.f32.mxu1 %v9044_v19 }
 0x1e9   : > { %4776 = vmatprep.mubr.f32.mxu0 %v9044_v19  ;;  %6708 = vmatpush1.bf16.msra.mxu1 %v6707_v60  ;;  %v6721_v60 = vpack.c.bf16 %v12679_v43, %v12678_v54  ;;  %v12698_v54 = vld [vmem:[#allocation136_spill] sm:$0xff]  ;;  %v12699_v43 = vld [vmem:[#allocation139_spill] sm:$0xff] }
 0x1ea   : > { %6900 = vmatpush1.bf16.msra.mxu0 %v12660_v37  ;;  %6710 = vmatprep.subr.bf16.mxu1 %v6709_v22  ;;  %v12681_v22 = vld [vmem:[#allocation127_spill] sm:$0xff]  ;;  %v12682_v37 = vld [vmem:[#allocation56_spill] sm:$0xff] }
 0x1eb   : > { %6902 = vmatprep.subr.bf16.mxu0 %v12661_v38  ;;  %2279 = vmatmul.mubr.f32.gmra.mrb[12].mxu1 %v12664_v45  ;;  %v12684_v38 = vld [vmem:[#allocation46_spill] sm:$0xff] }
 0x1ec   : > { %4778 = vmatmul.mubr.f32.gmra.mrb[12].mxu0 %v12664_v45  ;;  %2285 = vmatprep.mubr.f32.mxu1 %v12665_v36 }
 0x1ed   : > { %4784 = vmatprep.mubr.f32.mxu0 %v12665_v36  ;;  %6712 = vmatpush1.bf16.msra.mxu1 %v6711_v27  ;;  %v12683_v27 = vld [vmem:[#allocation45_spill] sm:$0xff] }
 0x1ee   : > { %6904 = vmatpush1.bf16.msra.mxu0 %v12666_v61  ;;  %6714 = vmatprep.subr.bf16.mxu1 %v6713_v25  ;;  %v6723_v62 = vpack.c.bf16 %v12684_v38, %v12683_v27  ;;  %v12686_v25 = vld [vmem:[#allocation47_spill] sm:$0xff]  ;;  %v12687_v61 = vld [vmem:[#allocation48_spill] sm:$0xff] }
 0x1ef   : > { %6906 = vmatprep.subr.bf16.mxu0 %v12669_v13  ;;  %2287 = vmatmul.mubr.f32.gmra.mrb[14].mxu1 %v12672_v34  ;;  %v6725_v1 = vpack.c.bf16 %v12687_v61, %v12686_v25  ;;  %v12690_v13 = vld [vmem:[#allocation68_spill] sm:$0xff]  ;;  %v12702_v27 = vld [vmem:[#allocation143_spill] sm:$0xff]  ;;  %v12705_v25 = vld [vmem:[#allocation54_spill] sm:$0xff] }
 0x1f0   : > { %4786 = vmatmul.mubr.f32.gmra.mrb[14].mxu0 %v12672_v34  ;;  %2293 = vmatprep.mubr.f32.mxu1 %v12673_v23  ;;  %v12703_v38 = vld [vmem:[#allocation51_spill] sm:$0xff]  ;;  %v12706_v61 = vld [vmem:[#allocation57_spill] sm:$0xff] }
 0x1f1   : > { %4792 = vmatprep.mubr.f32.mxu0 %v12673_v23  ;;  %6716 = vmatpush1.bf16.msra.mxu1 %v6715_v10  ;;  %v12689_v10 = vld [vmem:[#allocation132_spill] sm:$0xff] }
 0x1f2   : > { %6908 = vmatpush1.bf16.msra.mxu0 %v12674_v31  ;;  %6718 = vmatprep.subr.bf16.mxu1 %v6717_v56  ;;  %v6727_v56 = vpack.c.bf16 %v12692_v16, %v12691_v0  ;;  %v12693_v31 = vld [vmem:[#allocation69_spill] sm:$0xff]  ;;  %v12709_v16 = vld [vmem:[#allocation94_spill] sm:$0xff] }
 0x1f3   : > { %6910 = vmatprep.subr.bf16.mxu0 %v12677_v53  ;;  %2295 = vmatmul.mubr.f32.gmra.mrb[16].mxu1 %v12680_v63  ;;  %v12697_v53 = vld [vmem:[#allocation82_spill] sm:$0xff]  ;;  %v12708_v0 = vld [vmem:[#allocation93_spill] sm:$0xff] }
 0x1f4   : > { %4794 = vmatmul.mubr.f32.gmra.mrb[16].mxu0 %v12680_v63  ;;  %2301 = vmatprep.mubr.f32.mxu1 %v12681_v22 }
 0x1f5   : > { %4800 = vmatprep.mubr.f32.mxu0 %v12681_v22  ;;  %6720 = vmatpush1.bf16.msra.mxu1 %v6719_v52  ;;  %v12696_v52 = vld [vmem:[#allocation77_spill] sm:$0xff] }
 0x1f6   : > { %6912 = vmatpush1.bf16.msra.mxu0 %v12682_v37  ;;  %6722 = vmatprep.subr.bf16.mxu1 %v6721_v60  ;;  %v12700_v60 = vld [vmem:[#allocation89_spill] sm:$0xff]  ;;  %v12701_v37 = vld [vmem:[#allocation90_spill] sm:$0xff] }
 0x1f7   : > { %6914 = vmatprep.subr.bf16.mxu0 %v12685_v47  ;;  %2303 = vmatmul.mubr.f32.gmra.mrb[18].mxu1 %v12688_v7 }
 0x1f8   : > { %4802 = vmatmul.mubr.f32.gmra.mrb[18].mxu0 %v12688_v7  ;;  %2309 = vmatprep.mubr.f32.mxu1 %v12689_v10 }
 0x1f9   : > { %4808 = vmatprep.mubr.f32.mxu0 %v12689_v10  ;;  %6724 = vmatpush1.bf16.msra.mxu1 %v6723_v62  ;;  %v12704_v62 = vld [vmem:[#allocation53_spill] sm:$0xff] }
 0x1fa   : > { %6916 = vmatpush1.bf16.msra.mxu0 %v12690_v13  ;;  %6726 = vmatprep.subr.bf16.mxu1 %v6725_v1  ;;  %v6729_v47 = vpack.c.bf16 %v12704_v62, %v12703_v38  ;;  %v6731_v1 = vpack.c.bf16 %v12706_v61, %v12705_v25  ;;  %v12707_v13 = vld [vmem:[#allocation144_spill] sm:$0xff]  ;;  %v12716_v38 = vld [vmem:[#allocation102_spill] sm:$0xff]  ;;  %v12717_v62 = vld [vmem:[#allocation103_spill] sm:$0xff] }
 0x1fb   : > { %6918 = vmatprep.subr.bf16.mxu0 %v12693_v31  ;;  %2311 = vmatmul.mubr.f32.gmra.mrb[20].mxu1 %v12694_v40  ;;  %v12711_v31 = vld [vmem:[#allocation148_spill] sm:$0xff]  ;;  %v12719_v25 = vld [vmem:[#allocation157_spill] sm:$0xff] }
 0x1fc   : > { %4810 = vmatmul.mubr.f32.gmra.mrb[20].mxu0 %v12694_v40  ;;  %2317 = vmatprep.mubr.f32.mxu1 %v12695_v33  ;;  %v12720_v61 = vld [vmem:[#allocation104_spill] sm:$0xff] }
 0x1fd   : > { %4816 = vmatprep.mubr.f32.mxu0 %v12695_v33  ;;  %6728 = vmatpush1.bf16.msra.mxu1 %v6727_v56  ;;  %v12710_v56 = vld [vmem:[#allocation145_spill] sm:$0xff] }
 0x1fe   : > { %6920 = vmatpush1.bf16.msra.mxu0 %v12696_v52  ;;  %6730 = vmatprep.subr.bf16.mxu1 %v6729_v47  ;;  %v12712_v52 = vld [vmem:[#allocation95_spill] sm:$0xff] }
 0x1ff   : > { %6922 = vmatprep.subr.bf16.mxu0 %v12697_v53  ;;  %2319 = vmatmul.mubr.f32.gmra.mrb[22].mxu1 %v12698_v54  ;;  %v12713_v53 = vld [vmem:[#allocation100_spill] sm:$0xff]  ;;  %v12718_v47 = vld [vmem:[#allocation155_spill] sm:$0xff] }
 0x200   : > { %4818 = vmatmul.mubr.f32.gmra.mrb[22].mxu0 %v12698_v54  ;;  %2325 = vmatprep.mubr.f32.mxu1 %v12699_v43 }
 0x201   : > { %4824 = vmatprep.mubr.f32.mxu0 %v12699_v43  ;;  %6732 = vmatpush1.bf16.msra.mxu1 %v6731_v1  ;;  %v12721_v1 = vld [vmem:[#allocation158_spill] sm:$0xff] }
 0x202   : > { %6924 = vmatpush1.bf16.msra.mxu0 %v12700_v60  ;;  %v12714_v60 = vld [vmem:[#allocation149_spill] sm:$0xff] }
 0x203   : > { %6926 = vmatprep.subr.bf16.mxu0 %v12701_v37  ;;  %2327 = vmatmul.mubr.f32.gmra.mrb[24].mxu1 %v12702_v27  ;;  %v12715_v37 = vld [vmem:[#allocation150_spill] sm:$0xff] }
 0x204   : > { %4826 = vmatmul.mubr.f32.gmra.mrb[24].mxu0 %v12702_v27  ;;  %2333 = vmatprep.mubr.f32.mxu1 %v12707_v13 }
 0x205   : > { %4832 = vmatprep.mubr.f32.mxu0 %v12707_v13 }
 0x206   : > { %6928 = vmatpush1.bf16.msra.mxu0 %v12708_v0  ;;  %v12722_v0 = vld [vmem:[#allocation58_spill] sm:$0xff] }
 0x207   : > { %6930 = vmatprep.subr.bf16.mxu0 %v12709_v16  ;;  %2335 = vmatmul.mubr.f32.gmra.mrb[26].mxu1 %v12710_v56  ;;  %v12723_v16 = vld [vmem:[#allocation59_spill] sm:$0xff] }
 0x208   : > { %4834 = vmatmul.mubr.f32.gmra.mrb[26].mxu0 %v12710_v56  ;;  %2341 = vmatprep.mubr.f32.mxu1 %v12711_v31 }
 0x209   : > { %4840 = vmatprep.mubr.f32.mxu0 %v12711_v31 }
 0x20a   : > { %6932 = vmatpush1.bf16.msra.mxu0 %v12712_v52  ;;  %v6733_v52 = vpack.c.bf16 %v12723_v16, %v12722_v0  ;;  %v12730_v0 = vld [vmem:[#allocation166_spill] sm:$0xff]  ;;  %v12731_v16 = vld [vmem:[#allocation171_spill] sm:$0xff] }
 0x20b   : > { %6934 = vmatprep.subr.bf16.mxu0 %v12713_v53  ;;  %2343 = vmatmul.mubr.f32.gmra.mrb[28].mxu1 %v12714_v60  ;;  %v12724_v53 = vld [vmem:[#allocation61_spill] sm:$0xff] }
 0x20c   : > { %4842 = vmatmul.mubr.f32.gmra.mrb[28].mxu0 %v12714_v60  ;;  %2349 = vmatprep.mubr.f32.mxu1 %v12715_v37 }
 0x20d   : > { %4848 = vmatprep.mubr.f32.mxu0 %v12715_v37  ;;  %6734 = vmatprep.subr.bf16.mxu1 %v6733_v52  ;;  %v12732_v52 = vld [vmem:[#allocation172_spill] sm:$0xff] }
 0x20e   : > { %6936 = vmatpush1.bf16.msra.mxu0 %v12716_v38  ;;  %v12725_v38 = vld [vmem:[#allocation62_spill] sm:$0xff] }
 0x20f   : > { %6938 = vmatprep.subr.bf16.mxu0 %v12717_v62  ;;  %2351 = vmatmul.mubr.f32.gmra.mrb[30].mxu1 %v12718_v47  ;;  %v6735_v62 = vpack.c.bf16 %v12725_v38, %v12724_v53  ;;  %v12733_v53 = vld [vmem:[#allocation173_spill] sm:$0xff]  ;;  %v12734_v38 = vld [vmem:[#allocation63_spill] sm:$0xff] }
 0x210   : > { %4850 = vmatmul.mubr.f32.gmra.mrb[30].mxu0 %v12718_v47  ;;  %2357 = vmatprep.mubr.f32.mxu1 %v12719_v25 }
 0x211   : > { %4856 = vmatprep.mubr.f32.mxu0 %v12719_v25  ;;  %6736 = vmatpush1.bf16.msra.mxu1 %v6735_v62  ;;  %v6737_v62 = vpack.c.bf16 %v12511_v8, %v12734_v38  ;;  %v12741_v8 = vld [vmem:[#allocation180_spill] sm:$0xff]  ;;  %v12745_v38 = vld [vmem:[#allocation70_spill] sm:$0xff] }
 0x212   : > { %6940 = vmatpush1.bf16.msra.mxu0 %v12720_v61  ;;  %v12728_v61 = vld [vmem:[#allocation164_spill] sm:$0xff] }
 0x213   : > { %2359 = vmatmul.mubr.f32.gmra.mrb[32].mxu1 %v12721_v1  ;;  %6738 = vmatprep.subr.bf16.mxu1 %v6737_v62  ;;  %v6741_v62 = vpack.c.bf16 %v12745_v38, %v12535_v6  ;;  %v12750_v6 = vld [vmem:[#allocation197_spill] sm:$0xff]  ;;  %v6745_v38 = vpack.c.bf16 %v12568_v12, %v12565_v32  ;;  %v12759_v12 = vld [vmem:[#allocation212_spill] sm:$0xff] }
 0x214   : > { %4858 = vmatmul.mubr.f32.gmra.mrb[32].mxu0 %v12721_v1  ;;  %2365 = vmatprep.mubr.f32.mxu1 %v12726_v35  ;;  %v12760_v32 = vld [vmem:[#allocation217_spill] sm:$0xff] }
 0x215   : > { %4864 = vmatprep.mubr.f32.mxu0 %v12726_v35  ;;  %6740 = vmatpush1.bf16.msra.mxu1 %v6739_v44  ;;  %v12743_v44 = vld [vmem:[#allocation185_spill] sm:$0xff] }
 0x216   : > { %6742 = vmatprep.subr.bf16.mxu1 %v6741_v62  ;;  %v12754_v62 = vld [vmem:[#allocation76_spill] sm:$0xff] }
 0x217   : > { %2367 = vmatmul.mubr.f32.gmra.mrb[34].mxu1 %v12727_v14 }
 0x218   : > { %4866 = vmatmul.mubr.f32.gmra.mrb[34].mxu0 %v12727_v14  ;;  %2373 = vmatprep.mubr.f32.mxu1 %v12728_v61 }
 0x219   : > { %4872 = vmatprep.mubr.f32.mxu0 %v12728_v61 }
 0x21b   : > { %2375 = vmatmul.mubr.f32.gmra.mrb[36].mxu1 %v12729_v41 }
 0x21c   : > { %4874 = vmatmul.mubr.f32.gmra.mrb[36].mxu0 %v12729_v41  ;;  %2381 = vmatprep.mubr.f32.mxu1 %v12730_v0  ;;  %v12737_v41 = vld [vmem:[#allocation174_spill] sm:$0xff] }
 0x21d   : > { %4880 = vmatprep.mubr.f32.mxu0 %v12730_v0 }
 0x21f   : > { %2383 = vmatmul.mubr.f32.gmra.mrb[38].mxu1 %v12731_v16 }
 0x220   : > { %4882 = vmatmul.mubr.f32.gmra.mrb[38].mxu0 %v12731_v16  ;;  %2389 = vmatprep.mubr.f32.mxu1 %v12732_v52  ;;  %v12738_v16 = vld [vmem:[#allocation30_spill] sm:$0xff] }
 0x221   : > { %4888 = vmatprep.mubr.f32.mxu0 %v12732_v52  ;;  %v12739_v52 = vld [vmem:[#allocation178_spill] sm:$0xff] }
 0x223   : > { %2391 = vmatmul.mubr.f32.gmra.mrb[40].mxu1 %v12733_v53 }
 0x224   : > { %4890 = vmatmul.mubr.f32.gmra.mrb[40].mxu0 %v12733_v53  ;;  %2397 = vmatprep.mubr.f32.mxu1 %v12737_v41  ;;  %v12740_v53 = vld [vmem:[#allocation179_spill] sm:$0xff] }
 0x225   : > { %4896 = vmatprep.mubr.f32.mxu0 %v12737_v41 }
 0x227   : > { %2399 = vmatmul.mubr.f32.gmra.mrb[42].mxu1 %v12738_v16 }
 0x228   : > { %4898 = vmatmul.mubr.f32.gmra.mrb[42].mxu0 %v12738_v16  ;;  %2405 = vmatprep.mubr.f32.mxu1 %v12739_v52 }
 0x229   : > { %4904 = vmatprep.mubr.f32.mxu0 %v12739_v52  ;;  %v12746_v52 = vld [vmem:[#allocation190_spill] sm:$0xff] }
 0x22b   : > { %2407 = vmatmul.mubr.f32.gmra.mrb[44].mxu1 %v12740_v53 }
 0x22c   : > { %4906 = vmatmul.mubr.f32.gmra.mrb[44].mxu0 %v12740_v53  ;;  %2413 = vmatprep.mubr.f32.mxu1 %v12741_v8  ;;  %v6743_v53 = vpack.c.bf16 %v12544_v17, %v12541_v55  ;;  %v12751_v17 = vld [vmem:[#allocation198_spill] sm:$0xff]  ;;  %v12752_v55 = vld [vmem:[#allocation201_spill] sm:$0xff] }
 0x22d   : > { %4912 = vmatprep.mubr.f32.mxu0 %v12741_v8 }
 0x22e   : > { %6744 = vmatpush1.bf16.msra.mxu1 %v6743_v53  ;;  %v12753_v53 = vld [vmem:[#allocation204_spill] sm:$0xff] }
 0x22f   : > { %2415 = vmatmul.mubr.f32.gmra.mrb[46].mxu1 %v12742_v9  ;;  %6746 = vmatprep.subr.bf16.mxu1 %v6745_v38  ;;  %v12763_v38 = vld [vmem:[#allocation222_spill] sm:$0xff] }
 0x230   : > { %4914 = vmatmul.mubr.f32.gmra.mrb[46].mxu0 %v12742_v9  ;;  %2421 = vmatprep.mubr.f32.mxu1 %v12743_v44  ;;  %v12747_v9 = vld [vmem:[#allocation193_spill] sm:$0xff] }
 0x231   : > { %4920 = vmatprep.mubr.f32.mxu0 %v12743_v44  ;;  %v12748_v44 = vld [vmem:[#allocation194_spill] sm:$0xff] }
 0x233   : > { %2423 = vmatmul.mubr.f32.gmra.mrb[48].mxu1 %v12744_v18 }
 0x234   : > { %4922 = vmatmul.mubr.f32.gmra.mrb[48].mxu0 %v12744_v18  ;;  %2429 = vmatprep.mubr.f32.mxu1 %v12746_v52  ;;  %v12749_v18 = vld [vmem:[#allocation195_spill] sm:$0xff] }
 0x235   : > { %4928 = vmatprep.mubr.f32.mxu0 %v12746_v52 }
 0x237   : > { %2431 = vmatmul.mubr.f32.gmra.mrb[50].mxu1 %v12747_v9 }
 0x238   : > { %4930 = vmatmul.mubr.f32.gmra.mrb[50].mxu0 %v12747_v9  ;;  %2437 = vmatprep.mubr.f32.mxu1 %v12748_v44 }
 0x239   : > { %4936 = vmatprep.mubr.f32.mxu0 %v12748_v44  ;;  %v12755_v44 = vld [vmem:[#allocation206_spill] sm:$0xff] }
 0x23b   : > { %2439 = vmatmul.mubr.f32.gmra.mrb[52].mxu1 %v12749_v18 }
 0x23c   : > { %4938 = vmatmul.mubr.f32.gmra.mrb[52].mxu0 %v12749_v18  ;;  %2445 = vmatprep.mubr.f32.mxu1 %v12750_v6  ;;  %v6747_v18 = vpack.c.bf16 %v12572_v49, %v12754_v62  ;;  %v12761_v49 = vld [vmem:[#allocation218_spill] sm:$0xff]  ;;  %v12764_v62 = vld [vmem:[#allocation224_spill] sm:$0xff] }
 0x23d   : > { %4944 = vmatprep.mubr.f32.mxu0 %v12750_v6 }
 0x23e   : > { %6748 = vmatpush1.bf16.msra.mxu1 %v6747_v18  ;;  %v12762_v18 = vld [vmem:[#allocation221_spill] sm:$0xff] }
 0x23f   : > { %2447 = vmatmul.mubr.f32.gmra.mrb[54].mxu1 %v12751_v17 }
 0x240   : > { %4946 = vmatmul.mubr.f32.gmra.mrb[54].mxu0 %v12751_v17  ;;  %2453 = vmatprep.mubr.f32.mxu1 %v12752_v55  ;;  %v12756_v17 = vld [vmem:[#allocation209_spill] sm:$0xff] }
 0x241   : > { %4952 = vmatprep.mubr.f32.mxu0 %v12752_v55  ;;  %v12757_v55 = vld [vmem:[#allocation210_spill] sm:$0xff] }
 0x243   : > { %2455 = vmatmul.mubr.f32.gmra.mrb[56].mxu1 %v12753_v53 }
 0x244   : > { %4954 = vmatmul.mubr.f32.gmra.mrb[56].mxu0 %v12753_v53  ;;  %2461 = vmatprep.mubr.f32.mxu1 %v12755_v44  ;;  %v12758_v53 = vld [vmem:[#allocation211_spill] sm:$0xff] }
 0x245   : > { %4960 = vmatprep.mubr.f32.mxu0 %v12755_v44 }
 0x247   : > { %2463 = vmatmul.mubr.f32.gmra.mrb[58].mxu1 %v12756_v17 }
 0x248   : > { %4962 = vmatmul.mubr.f32.gmra.mrb[58].mxu0 %v12756_v17  ;;  %2469 = vmatprep.mubr.f32.mxu1 %v12757_v55 }
 0x249   : > { %4968 = vmatprep.mubr.f32.mxu0 %v12757_v55 }
 0x24b   : > { %2471 = vmatmul.mubr.f32.gmra.mrb[60].mxu1 %v12758_v53 }
 0x24c   : > { %4970 = vmatmul.mubr.f32.gmra.mrb[60].mxu0 %v12758_v53  ;;  %2477 = vmatprep.mubr.f32.mxu1 %v12759_v12 }
 0x24d   : > { %4976 = vmatprep.mubr.f32.mxu0 %v12759_v12  ;;  %v12765_v12 = vld [vmem:[#allocation225_spill] sm:$0xff] }
 0x24f   : > { %2479 = vmatmul.mubr.f32.gmra.mrb[62].mxu1 %v12760_v32 }
 0x250   : > { %4978 = vmatmul.mubr.f32.gmra.mrb[62].mxu0 %v12760_v32  ;;  %2485 = vmatprep.mubr.f32.mxu1 %v12761_v49  ;;  %v12766_v32 = vld [vmem:[#allocation227_spill] sm:$0xff] }
 0x251   : > { %4984 = vmatprep.mubr.f32.mxu0 %v12761_v49  ;;  %v12767_v49 = vld [vmem:[#allocation228_spill] sm:$0xff] }
 0x253   : > { %2487 = vmatmul.mubr.f32.gmra.mrb[64].mxu1 %v12762_v18 }
 0x254   : > { %4986 = vmatmul.mubr.f32.gmra.mrb[64].mxu0 %v12762_v18  ;;  %2493 = vmatprep.mubr.f32.mxu1 %v12763_v38  ;;  %v12768_v18 = vld [vmem:[#allocation233_spill] sm:$0xff] }
 0x255   : > { %4992 = vmatprep.mubr.f32.mxu0 %v12763_v38  ;;  %v12769_v38 = vld [vmem:[#allocation234_spill] sm:$0xff] }
 0x257   : > { %2495 = vmatmul.mubr.f32.gmra.mrb[66].mxu1 %v12764_v62 }
 0x258   : > { %4994 = vmatmul.mubr.f32.gmra.mrb[66].mxu0 %v12764_v62  ;;  %2501 = vmatprep.mubr.f32.mxu1 %v12765_v12  ;;  %v12770_v62 = vld [vmem:[#allocation236_spill] sm:$0xff] }
 0x259   : > { %5000 = vmatprep.mubr.f32.mxu0 %v12765_v12  ;;  %v12771_v12 = vld [vmem:[#allocation238_spill] sm:$0xff] }
 0x25b   : > { %2503 = vmatmul.mubr.f32.gmra.mrb[68].mxu1 %v12766_v32 }
 0x25c   : > { %5002 = vmatmul.mubr.f32.gmra.mrb[68].mxu0 %v12766_v32  ;;  %2509 = vmatprep.mubr.f32.mxu1 %v12767_v49  ;;  %v12772_v32 = vld [vmem:[#allocation240_spill] sm:$0xff] }
 0x25d   : > { %5008 = vmatprep.mubr.f32.mxu0 %v12767_v49  ;;  %v12773_v49 = vld [vmem:[#allocation242_spill] sm:$0xff] }
 0x25f   : > { %2511 = vmatmul.mubr.f32.gmra.mrb[70].mxu1 %v12768_v18 }
 0x260   : > { %5010 = vmatmul.mubr.f32.gmra.mrb[70].mxu0 %v12768_v18  ;;  %2517 = vmatprep.mubr.f32.mxu1 %v12769_v38  ;;  %v12774_v18 = vld [vmem:[#allocation243_spill] sm:$0xff] }
 0x261   : > { %5016 = vmatprep.mubr.f32.mxu0 %v12769_v38  ;;  %v12775_v38 = vld [vmem:[#allocation244_spill] sm:$0xff] }
 0x263   : > { %2519 = vmatmul.mubr.f32.gmra.mrb[72].mxu1 %v12770_v62 }
 0x264   : > { %5018 = vmatmul.mubr.f32.gmra.mrb[72].mxu0 %v12770_v62  ;;  %2525 = vmatprep.mubr.f32.mxu1 %v12771_v12  ;;  %v12776_v62 = vld [vmem:[#allocation249_spill] sm:$0xff] }
 0x265   : > { %5024 = vmatprep.mubr.f32.mxu0 %v12771_v12  ;;  %v12777_v12 = vld [vmem:[#allocation250_spill] sm:$0xff] }
 0x267   : > { %2527 = vmatmul.mubr.f32.gmra.mrb[74].mxu1 %v12772_v32 }
 0x268   : > { %5026 = vmatmul.mubr.f32.gmra.mrb[74].mxu0 %v12772_v32  ;;  %2533 = vmatprep.mubr.f32.mxu1 %v12773_v49  ;;  %v12778_v32 = vld [vmem:[#allocation252_spill] sm:$0xff] }
 0x269   : > { %5032 = vmatprep.mubr.f32.mxu0 %v12773_v49  ;;  %v12779_v49 = vld [vmem:[#allocation253_spill] sm:$0xff] }
 0x26b   : > { %2535 = vmatmul.mubr.f32.gmra.mrb[76].mxu1 %v12774_v18 }
 0x26c   : > { %5034 = vmatmul.mubr.f32.gmra.mrb[76].mxu0 %v12774_v18  ;;  %2541 = vmatprep.mubr.f32.mxu1 %v12775_v38  ;;  %v12780_v18 = vld [vmem:[#allocation255_spill] sm:$0xff] }
 0x26d   : > { %5040 = vmatprep.mubr.f32.mxu0 %v12775_v38  ;;  %v12781_v38 = vld [vmem:[#allocation256_spill] sm:$0xff] }
 0x26f   : > { %2543 = vmatmul.mubr.f32.gmra.mrb[78].mxu1 %v12776_v62 }
 0x270   : > { %5042 = vmatmul.mubr.f32.gmra.mrb[78].mxu0 %v12776_v62  ;;  %2549 = vmatprep.mubr.f32.mxu1 %v12777_v12  ;;  %v12782_v62 = vld [vmem:[#allocation259_spill] sm:$0xff] }
 0x271   : > { %5048 = vmatprep.mubr.f32.mxu0 %v12777_v12  ;;  %v12783_v12 = vld [vmem:[#allocation261_spill] sm:$0xff] }
 0x273   : > { %2551 = vmatmul.mubr.f32.gmra.mrb[80].mxu1 %v12778_v32 }
 0x274   : > { %5050 = vmatmul.mubr.f32.gmra.mrb[80].mxu0 %v12778_v32  ;;  %2557 = vmatprep.mubr.f32.mxu1 %v12779_v49  ;;  %v12784_v32 = vld [vmem:[#allocation265_spill] sm:$0xff] }
 0x275   : > { %5056 = vmatprep.mubr.f32.mxu0 %v12779_v49  ;;  %v12785_v49 = vld [vmem:[#allocation267_spill] sm:$0xff] }
 0x277   : > { %2559 = vmatmul.mubr.f32.gmra.mrb[82].mxu1 %v12780_v18 }
 0x278   : > { %5058 = vmatmul.mubr.f32.gmra.mrb[82].mxu0 %v12780_v18  ;;  %2565 = vmatprep.mubr.f32.mxu1 %v12781_v38  ;;  %v12786_v18 = vld [vmem:[#allocation268_spill] sm:$0xff] }
 0x279   : > { %5064 = vmatprep.mubr.f32.mxu0 %v12781_v38  ;;  %v12787_v38 = vld [vmem:[#allocation64_spill] sm:$0xff] }
 0x27b   : > { %2567 = vmatmul.mubr.f32.gmra.mrb[84].mxu1 %v12782_v62 }
 0x27c   : > { %5066 = vmatmul.mubr.f32.gmra.mrb[84].mxu0 %v12782_v62  ;;  %2573 = vmatprep.mubr.f32.mxu1 %v12783_v12  ;;  %v12788_v62 = vld [vmem:[#allocation271_spill] sm:$0xff] }
 0x27d   : > { %5072 = vmatprep.mubr.f32.mxu0 %v12783_v12  ;;  %v12789_v12 = vld [vmem:[#allocation272_spill] sm:$0xff] }
 0x27f   : > { %2575 = vmatmul.mubr.f32.gmra.mrb[86].mxu1 %v12784_v32 }
 0x280   : > { %5074 = vmatmul.mubr.f32.gmra.mrb[86].mxu0 %v12784_v32  ;;  %2581 = vmatprep.mubr.f32.mxu1 %v12785_v49  ;;  %v12790_v32 = vld [vmem:[#allocation273_spill] sm:$0xff] }
 0x281   : > { %5080 = vmatprep.mubr.f32.mxu0 %v12785_v49  ;;  %v12791_v49 = vld [vmem:[#allocation275_spill] sm:$0xff] }
 0x283   : > { %2583 = vmatmul.mubr.f32.gmra.mrb[88].mxu1 %v12786_v18 }
 0x284   : > { %5082 = vmatmul.mubr.f32.gmra.mrb[88].mxu0 %v12786_v18  ;;  %2589 = vmatprep.mubr.f32.mxu1 %v12787_v38  ;;  %v12792_v18 = vld [vmem:[#allocation280_spill] sm:$0xff] }
 0x285   : > { %5088 = vmatprep.mubr.f32.mxu0 %v12787_v38  ;;  %v12793_v38 = vld [vmem:[#allocation281_spill] sm:$0xff] }
 0x287   : > { %2591 = vmatmul.mubr.f32.gmra.mrb[90].mxu1 %v12788_v62 }
 0x288   : > { %5090 = vmatmul.mubr.f32.gmra.mrb[90].mxu0 %v12788_v62  ;;  %2597 = vmatprep.mubr.f32.mxu1 %v12789_v12  ;;  %v12794_v62 = vld [vmem:[#allocation282_spill] sm:$0xff] }
 0x289   : > { %5096 = vmatprep.mubr.f32.mxu0 %v12789_v12  ;;  %v12795_v12 = vld [vmem:[#allocation71_spill] sm:$0xff] }
 0x28b   : > { %2599 = vmatmul.mubr.f32.gmra.mrb[92].mxu1 %v12790_v32 }
 0x28c   : > { %5098 = vmatmul.mubr.f32.gmra.mrb[92].mxu0 %v12790_v32  ;;  %2605 = vmatprep.mubr.f32.mxu1 %v12791_v49  ;;  %v12796_v32 = vld [vmem:[#allocation285_spill] sm:$0xff] }
 0x28d   : > { %5104 = vmatprep.mubr.f32.mxu0 %v12791_v49  ;;  %v12797_v49 = vld [vmem:[#allocation286_spill] sm:$0xff] }
 0x28f   : > { %2607 = vmatmul.mubr.f32.gmra.mrb[94].mxu1 %v12792_v18 }
 0x290   : > { %5106 = vmatmul.mubr.f32.gmra.mrb[94].mxu0 %v12792_v18  ;;  %2613 = vmatprep.mubr.f32.mxu1 %v12793_v38  ;;  %v12798_v18 = vld [vmem:[#allocation287_spill] sm:$0xff] }
 0x291   : > { %5112 = vmatprep.mubr.f32.mxu0 %v12793_v38  ;;  %v12799_v38 = vld [vmem:[#allocation288_spill] sm:$0xff] }
 0x293   : > { %2615 = vmatmul.mubr.f32.gmra.mrb[96].mxu1 %v12794_v62 }
 0x294   : > { %5114 = vmatmul.mubr.f32.gmra.mrb[96].mxu0 %v12794_v62  ;;  %2621 = vmatprep.mubr.f32.mxu1 %v12795_v12  ;;  %v12800_v62 = vld [vmem:[#allocation293_spill] sm:$0xff] }
 0x295   : > { %5120 = vmatprep.mubr.f32.mxu0 %v12795_v12  ;;  %v12801_v12 = vld [vmem:[#allocation73_spill] sm:$0xff] }
 0x297   : > { %2623 = vmatmul.mubr.f32.gmra.mrb[98].mxu1 %v12796_v32 }
 0x298   : > { %5122 = vmatmul.mubr.f32.gmra.mrb[98].mxu0 %v12796_v32  ;;  %2629 = vmatprep.mubr.f32.mxu1 %v12797_v49 }
 0x299   : > { %5128 = vmatprep.mubr.f32.mxu0 %v12797_v49 }
 0x29b   : > { %2631 = vmatmul.mubr.f32.gmra.mrb[100].mxu1 %v12798_v18 }
 0x29c   : > { %5130 = vmatmul.mubr.f32.gmra.mrb[100].mxu0 %v12798_v18  ;;  %2637 = vmatprep.mubr.f32.mxu1 %v12799_v38 }
 0x29d   : > { %5136 = vmatprep.mubr.f32.mxu0 %v12799_v38 }
 0x29f   : > { %2639 = vmatmul.mubr.f32.gmra.mrb[102].mxu1 %v12800_v62 }
 0x2a0   : > { %5138 = vmatmul.mubr.f32.gmra.mrb[102].mxu0 %v12800_v62  ;;  %2645 = vmatprep.mubr.f32.mxu1 %v12801_v12  ;;  %v12802_v62 = vld [vmem:[#allocation80_spill] sm:$0xff] }
 0x2a1   : > { %5144 = vmatprep.mubr.f32.mxu0 %v12801_v12  ;;  %v12803_v12 = vld [vmem:[#allocation81_spill] sm:$0xff] }
 0x2a3   : > { %2647 = vmatmul.mubr.f32.gmra.mrb[104].mxu1 %v10350_v58 }
 0x2a4   : > { %5146 = vmatmul.mubr.f32.gmra.mrb[104].mxu0 %v10350_v58  ;;  %2653 = vmatprep.mubr.f32.mxu1 %v10367_v24  ;;  %v12804_v58 = vld [vmem:[#allocation303_spill] sm:$0xff] }
 0x2a5   : > { %5152 = vmatprep.mubr.f32.mxu0 %v10367_v24  ;;  %v12805_v24 = vld [vmem:[#allocation304_spill] sm:$0xff] }
 0x2a7   : > { %2655 = vmatmul.mubr.f32.gmra.mrb[106].mxu1 %v10383_v2 }
 0x2a8   : > { %5154 = vmatmul.mubr.f32.gmra.mrb[106].mxu0 %v10383_v2  ;;  %2661 = vmatprep.mubr.f32.mxu1 %v10393_v48  ;;  %v12806_v2 = vld [vmem:[#allocation306_spill] sm:$0xff] }
 0x2a9   : > { %5160 = vmatprep.mubr.f32.mxu0 %v10393_v48  ;;  %v12807_v48 = vld [vmem:[#allocation308_spill] sm:$0xff] }
 0x2ab   : > { %2663 = vmatmul.mubr.f32.gmra.mrb[108].mxu1 %v12802_v62 }
 0x2ac   : > { %5162 = vmatmul.mubr.f32.gmra.mrb[108].mxu0 %v12802_v62  ;;  %2669 = vmatprep.mubr.f32.mxu1 %v12803_v12  ;;  %v12808_v62 = vld [vmem:[#allocation310_spill] sm:$0xff] }
 0x2ad   : > { %5168 = vmatprep.mubr.f32.mxu0 %v12803_v12  ;;  %v12809_v12 = vld [vmem:[#allocation312_spill] sm:$0xff] }
 0x2af   : > { %2671 = vmatmul.mubr.f32.gmra.mrb[110].mxu1 %v12804_v58 }
 0x2b0   : > { %5170 = vmatmul.mubr.f32.gmra.mrb[110].mxu0 %v12804_v58  ;;  %2677 = vmatprep.mubr.f32.mxu1 %v12805_v24  ;;  %v12810_v58 = vld [vmem:[#allocation313_spill] sm:$0xff] }
 0x2b1   : > { %5176 = vmatprep.mubr.f32.mxu0 %v12805_v24  ;;  %v12811_v24 = vld [vmem:[#allocation315_spill] sm:$0xff] }
 0x2b3   : > { %2679 = vmatmul.mubr.f32.gmra.mrb[112].mxu1 %v12806_v2 }
 0x2b4   : > { %5178 = vmatmul.mubr.f32.gmra.mrb[112].mxu0 %v12806_v2  ;;  %2685 = vmatprep.mubr.f32.mxu1 %v12807_v48 }
 0x2b5   : > { %5184 = vmatprep.mubr.f32.mxu0 %v12807_v48  ;;  %v12812_v48 = vld [vmem:[#allocation319_spill] sm:$0xff] }
 0x2b7   : > { %2687 = vmatmul.mubr.f32.gmra.mrb[114].mxu1 %v12808_v62 }
 0x2b8   : > { %5186 = vmatmul.mubr.f32.gmra.mrb[114].mxu0 %v12808_v62  ;;  %2693 = vmatprep.mubr.f32.mxu1 %v12809_v12 }
 0x2b9   : > { %5192 = vmatprep.mubr.f32.mxu0 %v12809_v12  ;;  %v12813_v12 = vld [vmem:[#allocation322_spill] sm:$0xff] }
 0x2bb   : > { %2695 = vmatmul.mubr.f32.gmra.mrb[116].mxu1 %v12810_v58 }
 0x2bc   : > { %5194 = vmatmul.mubr.f32.gmra.mrb[116].mxu0 %v12810_v58  ;;  %2701 = vmatprep.mubr.f32.mxu1 %v12811_v24 }
 0x2bd   : > { %5200 = vmatprep.mubr.f32.mxu0 %v12811_v24  ;;  %v12814_v24 = vld [vmem:[#allocation326_spill] sm:$0xff] }
 0x2bf   : > { %2703 = vmatmul.mubr.f32.gmra.mrb[118].mxu1 %v10489_v20 }
 0x2c0   : > { %5202 = vmatmul.mubr.f32.gmra.mrb[118].mxu0 %v10489_v20  ;;  %2709 = vmatprep.mubr.f32.mxu1 %v12812_v48 }
 0x2c1   : > { %5208 = vmatprep.mubr.f32.mxu0 %v12812_v48 }
 0x2c3   : > { %2711 = vmatmul.mubr.f32.gmra.mrb[120].mxu1 %v10508_v26 }
 0x2c4   : > { %5210 = vmatmul.mubr.f32.gmra.mrb[120].mxu0 %v10508_v26  ;;  %2717 = vmatprep.mubr.f32.mxu1 %v12813_v12 }
 0x2c5   : > { %5216 = vmatprep.mubr.f32.mxu0 %v12813_v12  ;;  %v12815_v12 = vld [vmem:[#allocation79_spill] sm:$0xff] }
 0x2c7   : > { %2719 = vmatmul.mubr.f32.gmra.mrb[122].mxu1 %v10524_v51 }
 0x2c8   : > { %5218 = vmatmul.mubr.f32.gmra.mrb[122].mxu0 %v10524_v51  ;;  %2725 = vmatprep.mubr.f32.mxu1 %v12814_v24  ;;  %v12816_v51 = vld [vmem:[#allocation98_spill] sm:$0xff] }
 0x2c9   : > { %5224 = vmatprep.mubr.f32.mxu0 %v12814_v24  ;;  %v12817_v24 = vld [vmem:[#allocation101_spill] sm:$0xff] }
 0x2cb   : > { %2727 = vmatmul.mubr.f32.gmra.mrb[124].mxu1 %v10539_v50 }
 0x2cc   : > { %5226 = vmatmul.mubr.f32.gmra.mrb[124].mxu0 %v10539_v50  ;;  %2733 = vmatprep.mubr.f32.mxu1 %v10546_v4  ;;  %v12818_v50 = vld [vmem:[#allocation106_spill] sm:$0xff] }
 0x2cd   : > { %5232 = vmatprep.mubr.f32.mxu0 %v10546_v4  ;;  %v12819_v4 = vld [vmem:[#allocation107_spill] sm:$0xff] }
 0x2cf   : > { %2735 = vmatmul.mubr.f32.gmra.mrb[126].mxu1 %v10554_v11 }
 0x2d0   : > { %5234 = vmatmul.mubr.f32.gmra.mrb[126].mxu0 %v10554_v11  ;;  %2935 = vmatprep.mubr.f32.mxu1 %v12815_v12  ;;  %v12820_v11 = vld [vmem:[#allocation108_spill] sm:$0xff]  ;;  %v12864_v12 = vld [vmem:[#allocation178_spill] sm:$0xff] }
 0x2d1   : > { %5369 = vmatprep.mubr.f32.mxu0 %v12634_v15  ;;  %v12821_v15 = vld [vmem:[#allocation109_spill] sm:$0xff] }
 0x2d3   : > { %2938 = vmatmul.mubr.f32.vlgmr.msra.gmra.mrb[0].mxu1 %v12816_v51  ;;  %v12822_v51 = vld [vmem:[#allocation113_spill] sm:$0xff] }
 0x2d4   : > { %5371 = vmatmul.mubr.f32.vlgmr.msra.gmra.mrb[0].mxu0 %v12639_v39  ;;  %2945 = vmatprep.mubr.f32.mxu1 %v12817_v24  ;;  %v12823_v24 = vld [vmem:[#allocation114_spill] sm:$0xff]  ;;  %v12827_v39 = vld [vmem:[#allocation120_spill] sm:$0xff] }
 0x2d5   : > { %5377 = vmatprep.mubr.f32.mxu0 %v12641_v5  ;;  %v12828_v5 = vld [vmem:[#allocation122_spill] sm:$0xff] }
 0x2d7   : > { %2948 = vmatmul.mubr.f32.gmra.mrb[2].mxu1 %v12818_v50  ;;  %v12824_v50 = vld [vmem:[#allocation115_spill] sm:$0xff] }
 0x2d8   : > { %5379 = vmatmul.mubr.f32.gmra.mrb[2].mxu0 %v12645_v57  ;;  %2955 = vmatprep.mubr.f32.mxu1 %v12819_v4  ;;  %v12825_v4 = vld [vmem:[#allocation118_spill] sm:$0xff]  ;;  %v12829_v57 = vld [vmem:[#allocation123_spill] sm:$0xff] }
 0x2d9   : > { %5385 = vmatprep.mubr.f32.mxu0 %v12646_v28  ;;  %v12830_v28 = vld [vmem:[#allocation124_spill] sm:$0xff] }
 0x2db   : > { %2958 = vmatmul.mubr.f32.gmra.mrb[4].mxu1 %v12820_v11  ;;  %v12826_v11 = vld [vmem:[#allocation119_spill] sm:$0xff] }
 0x2dc   : > { %5387 = vmatmul.mubr.f32.gmra.mrb[4].mxu0 %v12649_v3  ;;  %2965 = vmatprep.mubr.f32.mxu1 %v12821_v15  ;;  %v12834_v3 = vld [vmem:[#allocation135_spill] sm:$0xff] }
 0x2dd   : > { %5393 = vmatprep.mubr.f32.mxu0 %v12650_v46  ;;  %v12835_v46 = vld [vmem:[#allocation137_spill] sm:$0xff]  ;;  %v12865_v15 = vld [vmem:[#allocation183_spill] sm:$0xff] }
 0x2df   : > { %2968 = vmatmul.mubr.f32.gmra.mrb[6].mxu1 %v12822_v51  ;;  %v12866_v51 = vld [vmem:[#allocation179_spill] sm:$0xff] }
 0x2e0   : > { %5395 = vmatmul.mubr.f32.gmra.mrb[6].mxu0 %v12653_v42  ;;  %2975 = vmatprep.mubr.f32.mxu1 %v12823_v24  ;;  %v12836_v42 = vld [vmem:[#allocation138_spill] sm:$0xff] }
 0x2e1   : > { %5401 = vmatprep.mubr.f32.mxu0 %v12654_v21  ;;  %v12837_v21 = vld [vmem:[#allocation140_spill] sm:$0xff]  ;;  %v12867_v24 = vld [vmem:[#allocation186_spill] sm:$0xff] }
 0x2e3   : > { %2978 = vmatmul.mubr.f32.gmra.mrb[8].mxu1 %v12824_v50  ;;  %v12868_v50 = vld [vmem:[#allocation187_spill] sm:$0xff] }
 0x2e4   : > { %5403 = vmatmul.mubr.f32.gmra.mrb[8].mxu0 %v12657_v59  ;;  %2985 = vmatprep.mubr.f32.mxu1 %v12825_v4  ;;  %v12838_v59 = vld [vmem:[#allocation141_spill] sm:$0xff]  ;;  %v12869_v4 = vld [vmem:[#allocation184_spill] sm:$0xff] }
 0x2e5   : > { %5409 = vmatprep.mubr.f32.mxu0 %v9034_v29  ;;  %v12831_v29 = vld [vmem:[#allocation128_spill] sm:$0xff] }
 0x2e7   : > { %2988 = vmatmul.mubr.f32.gmra.mrb[10].mxu1 %v12826_v11  ;;  %v12871_v11 = vld [vmem:[#allocation185_spill] sm:$0xff] }
 0x2e8   : > { %5411 = vmatmul.mubr.f32.gmra.mrb[10].mxu0 %v9042_v30  ;;  %2995 = vmatprep.mubr.f32.mxu1 %v12827_v39  ;;  %v12832_v30 = vld [vmem:[#allocation129_spill] sm:$0xff]  ;;  %v12873_v39 = vld [vmem:[#allocation188_spill] sm:$0xff] }
 0x2e9   : > { %5417 = vmatprep.mubr.f32.mxu0 %v9044_v19  ;;  %v12833_v19 = vld [vmem:[#allocation130_spill] sm:$0xff] }
 0x2eb   : > { %2998 = vmatmul.mubr.f32.gmra.mrb[12].mxu1 %v12828_v5  ;;  %v12874_v5 = vld [vmem:[#allocation192_spill] sm:$0xff] }
 0x2ec   : > { %5419 = vmatmul.mubr.f32.gmra.mrb[12].mxu0 %v12664_v45  ;;  %3005 = vmatprep.mubr.f32.mxu1 %v12829_v57  ;;  %v12839_v45 = vld [vmem:[#allocation142_spill] sm:$0xff]  ;;  %v12875_v57 = vld [vmem:[#allocation196_spill] sm:$0xff] }
 0x2ed   : > { %5425 = vmatprep.mubr.f32.mxu0 %v12665_v36  ;;  %v12840_v36 = vld [vmem:[#allocation146_spill] sm:$0xff] }
 0x2ef   : > { %3008 = vmatmul.mubr.f32.gmra.mrb[14].mxu1 %v12830_v28  ;;  %v12877_v28 = vld [vmem:[#allocation194_spill] sm:$0xff] }
 0x2f0   : > { %5427 = vmatmul.mubr.f32.gmra.mrb[14].mxu0 %v12672_v34  ;;  %3015 = vmatprep.mubr.f32.mxu1 %v12831_v29  ;;  %v12841_v34 = vld [vmem:[#allocation147_spill] sm:$0xff]  ;;  %v12878_v29 = vld [vmem:[#allocation200_spill] sm:$0xff] }
 0x2f1   : > { %5433 = vmatprep.mubr.f32.mxu0 %v12673_v23  ;;  %v12842_v23 = vld [vmem:[#allocation151_spill] sm:$0xff] }
 0x2f3   : > { %3018 = vmatmul.mubr.f32.gmra.mrb[16].mxu1 %v12832_v30  ;;  %v12879_v30 = vld [vmem:[#allocation195_spill] sm:$0xff] }
 0x2f4   : > { %5435 = vmatmul.mubr.f32.gmra.mrb[16].mxu0 %v12680_v63  ;;  %3025 = vmatprep.mubr.f32.mxu1 %v12833_v19  ;;  %v12843_v63 = vld [vmem:[#allocation152_spill] sm:$0xff]  ;;  %v12880_v19 = vld [vmem:[#allocation202_spill] sm:$0xff] }
 0x2f5   : > { %5441 = vmatprep.mubr.f32.mxu0 %v12681_v22  ;;  %v12844_v22 = vld [vmem:[#allocation153_spill] sm:$0xff] }
 0x2f7   : > { %3028 = vmatmul.mubr.f32.gmra.mrb[18].mxu1 %v12834_v3  ;;  %v12881_v3 = vld [vmem:[#allocation203_spill] sm:$0xff] }
 0x2f8   : > { %5443 = vmatmul.mubr.f32.gmra.mrb[18].mxu0 %v12688_v7  ;;  %3035 = vmatprep.mubr.f32.mxu1 %v12835_v46  ;;  %v12845_v7 = vld [vmem:[#allocation154_spill] sm:$0xff] }
 0x2f9   : > { %5449 = vmatprep.mubr.f32.mxu0 %v12689_v10  ;;  %v12846_v10 = vld [vmem:[#allocation156_spill] sm:$0xff]  ;;  %v12882_v46 = vld [vmem:[#allocation198_spill] sm:$0xff] }
 0x2fb   : > { %3038 = vmatmul.mubr.f32.gmra.mrb[20].mxu1 %v12836_v42  ;;  %v12884_v42 = vld [vmem:[#allocation201_spill] sm:$0xff] }
 0x2fc   : > { %5451 = vmatmul.mubr.f32.gmra.mrb[20].mxu0 %v12694_v40  ;;  %3045 = vmatprep.mubr.f32.mxu1 %v12837_v21  ;;  %v12847_v40 = vld [vmem:[#allocation160_spill] sm:$0xff] }
 0x2fd   : > { %5457 = vmatprep.mubr.f32.mxu0 %v12695_v33  ;;  %v12848_v33 = vld [vmem:[#allocation161_spill] sm:$0xff]  ;;  %v12886_v21 = vld [vmem:[#allocation204_spill] sm:$0xff] }
 0x2ff   : > { %3048 = vmatmul.mubr.f32.gmra.mrb[22].mxu1 %v12838_v59  ;;  %v12887_v59 = vld [vmem:[#allocation208_spill] sm:$0xff] }
 0x300   : > { %5459 = vmatmul.mubr.f32.gmra.mrb[22].mxu0 %v12698_v54  ;;  %3055 = vmatprep.mubr.f32.mxu1 %v12839_v45  ;;  %v12849_v54 = vld [vmem:[#allocation162_spill] sm:$0xff]  ;;  %v12888_v45 = vld [vmem:[#allocation213_spill] sm:$0xff] }
 0x301   : > { %5465 = vmatprep.mubr.f32.mxu0 %v12699_v43  ;;  %v12850_v43 = vld [vmem:[#allocation167_spill] sm:$0xff] }
 0x303   : > { %3058 = vmatmul.mubr.f32.gmra.mrb[24].mxu1 %v12840_v36  ;;  %v12890_v36 = vld [vmem:[#allocation215_spill] sm:$0xff] }
 0x304   : > { %5467 = vmatmul.mubr.f32.gmra.mrb[24].mxu0 %v12702_v27  ;;  %3065 = vmatprep.mubr.f32.mxu1 %v12841_v34  ;;  %v12851_v27 = vld [vmem:[#allocation168_spill] sm:$0xff] }
 0x305   : > { %5473 = vmatprep.mubr.f32.mxu0 %v12707_v13  ;;  %v12852_v13 = vld [vmem:[#allocation169_spill] sm:$0xff]  ;;  %v12891_v34 = vld [vmem:[#allocation216_spill] sm:$0xff] }
 0x307   : > { %3068 = vmatmul.mubr.f32.gmra.mrb[26].mxu1 %v12842_v23  ;;  %v12892_v23 = vld [vmem:[#allocation212_spill] sm:$0xff] }
 0x308   : > { %5475 = vmatmul.mubr.f32.gmra.mrb[26].mxu0 %v12710_v56  ;;  %3075 = vmatprep.mubr.f32.mxu1 %v12843_v63  ;;  %v12853_v56 = vld [vmem:[#allocation165_spill] sm:$0xff]  ;;  %v12893_v63 = vld [vmem:[#allocation219_spill] sm:$0xff] }
 0x309   : > { %5481 = vmatprep.mubr.f32.mxu0 %v12711_v31  ;;  %v12854_v31 = vld [vmem:[#allocation170_spill] sm:$0xff] }
 0x30b   : > { %3078 = vmatmul.mubr.f32.gmra.mrb[28].mxu1 %v12844_v22  ;;  %v12894_v22 = vld [vmem:[#allocation217_spill] sm:$0xff] }
 0x30c   : > { %5483 = vmatmul.mubr.f32.gmra.mrb[28].mxu0 %v12714_v60  ;;  %3085 = vmatprep.mubr.f32.mxu1 %v12845_v7  ;;  %v12855_v60 = vld [vmem:[#allocation175_spill] sm:$0xff]  ;;  %v12896_v7 = vld [vmem:[#allocation218_spill] sm:$0xff] }
 0x30d   : > { %5489 = vmatprep.mubr.f32.mxu0 %v12715_v37  ;;  %v12856_v37 = vld [vmem:[#allocation171_spill] sm:$0xff] }
 0x30f   : > { %3088 = vmatmul.mubr.f32.gmra.mrb[30].mxu1 %v12846_v10  ;;  %v12898_v10 = vld [vmem:[#allocation221_spill] sm:$0xff] }
 0x310   : > { %5491 = vmatmul.mubr.f32.gmra.mrb[30].mxu0 %v12718_v47  ;;  %3095 = vmatprep.mubr.f32.mxu1 %v12847_v40  ;;  %v12858_v47 = vld [vmem:[#allocation172_spill] sm:$0xff]  ;;  %v12900_v40 = vld [vmem:[#allocation222_spill] sm:$0xff] }
 0x311   : > { %5497 = vmatprep.mubr.f32.mxu0 %v12719_v25  ;;  %v12860_v25 = vld [vmem:[#allocation173_spill] sm:$0xff] }
 0x313   : > { %3098 = vmatmul.mubr.f32.gmra.mrb[32].mxu1 %v12848_v33  ;;  %v12902_v33 = vld [vmem:[#allocation224_spill] sm:$0xff] }
 0x314   : > { %5499 = vmatmul.mubr.f32.gmra.mrb[32].mxu0 %v12721_v1  ;;  %3105 = vmatprep.mubr.f32.mxu1 %v12849_v54  ;;  %v12861_v1 = vld [vmem:[#allocation28_spill] sm:$0xff]  ;;  %v12903_v54 = vld [vmem:[#allocation230_spill] sm:$0xff] }
 0x315   : > { %5505 = vmatprep.mubr.f32.mxu0 %v12726_v35  ;;  %v12857_v35 = vld [vmem:[#allocation176_spill] sm:$0xff] }
 0x317   : > { %3108 = vmatmul.mubr.f32.gmra.mrb[34].mxu1 %v12850_v43  ;;  %v12904_v43 = vld [vmem:[#allocation225_spill] sm:$0xff] }
 0x318   : > { %5507 = vmatmul.mubr.f32.gmra.mrb[34].mxu0 %v12727_v14  ;;  %3115 = vmatprep.mubr.f32.mxu1 %v12851_v27  ;;  %v12859_v14 = vld [vmem:[#allocation177_spill] sm:$0xff]  ;;  %v12905_v27 = vld [vmem:[#allocation231_spill] sm:$0xff] }
 0x319   : > { %5513 = vmatprep.mubr.f32.mxu0 %v12728_v61  ;;  %v12862_v61 = vld [vmem:[#allocation181_spill] sm:$0xff] }
 0x31b   : > { %3118 = vmatmul.mubr.f32.gmra.mrb[36].mxu1 %v12852_v13  ;;  %v12906_v13 = vld [vmem:[#allocation227_spill] sm:$0xff] }
 0x31c   : > { %5515 = vmatmul.mubr.f32.gmra.mrb[36].mxu0 %v12853_v56  ;;  %3125 = vmatprep.mubr.f32.mxu1 %v12854_v31  ;;  %v12907_v56 = vld [vmem:[#allocation232_spill] sm:$0xff] }
 0x31d   : > { %5521 = vmatprep.mubr.f32.mxu0 %v12730_v0  ;;  %v12863_v0 = vld [vmem:[#allocation182_spill] sm:$0xff]  ;;  %v12908_v31 = vld [vmem:[#allocation228_spill] sm:$0xff] }
 0x31f   : > { %3128 = vmatmul.mubr.f32.gmra.mrb[38].mxu1 %v12855_v60  ;;  %v12909_v60 = vld [vmem:[#allocation235_spill] sm:$0xff] }
 0x320   : > { %5523 = vmatmul.mubr.f32.gmra.mrb[38].mxu0 %v12856_v37  ;;  %3135 = vmatprep.mubr.f32.mxu1 %v12857_v35  ;;  %v12910_v37 = vld [vmem:[#allocation233_spill] sm:$0xff] }
 0x321   : > { %5529 = vmatprep.mubr.f32.mxu0 %v12858_v47  ;;  %v12911_v35 = vld [vmem:[#allocation237_spill] sm:$0xff]  ;;  %v12912_v47 = vld [vmem:[#allocation234_spill] sm:$0xff] }
 0x323   : > { %3138 = vmatmul.mubr.f32.gmra.mrb[40].mxu1 %v12859_v14  ;;  %v12913_v14 = vld [vmem:[#allocation239_spill] sm:$0xff] }
 0x324   : > { %5531 = vmatmul.mubr.f32.gmra.mrb[40].mxu0 %v12860_v25  ;;  %3145 = vmatprep.mubr.f32.mxu1 %v12861_v1  ;;  %v12914_v25 = vld [vmem:[#allocation236_spill] sm:$0xff]  ;;  %v12915_v1 = vld [vmem:[#allocation241_spill] sm:$0xff] }
 0x325   : > { %5537 = vmatprep.mubr.f32.mxu0 %v12737_v41  ;;  %v12870_v41 = vld [vmem:[#allocation189_spill] sm:$0xff] }
 0x327   : > { %3148 = vmatmul.mubr.f32.gmra.mrb[42].mxu1 %v12862_v61  ;;  %v12916_v61 = vld [vmem:[#allocation238_spill] sm:$0xff] }
 0x328   : > { %5539 = vmatmul.mubr.f32.gmra.mrb[42].mxu0 %v12738_v16  ;;  %3155 = vmatprep.mubr.f32.mxu1 %v12863_v0  ;;  %v12872_v16 = vld [vmem:[#allocation191_spill] sm:$0xff]  ;;  %v12917_v0 = vld [vmem:[#allocation245_spill] sm:$0xff] }
 0x329   : > { %5545 = vmatprep.mubr.f32.mxu0 %v12864_v12  ;;  %v12918_v12 = vld [vmem:[#allocation240_spill] sm:$0xff] }
 0x32b   : > { %3158 = vmatmul.mubr.f32.gmra.mrb[44].mxu1 %v12865_v15  ;;  %v12919_v15 = vld [vmem:[#allocation246_spill] sm:$0xff] }
 0x32c   : > { %5547 = vmatmul.mubr.f32.gmra.mrb[44].mxu0 %v12866_v51  ;;  %3165 = vmatprep.mubr.f32.mxu1 %v12867_v24  ;;  %v12920_v51 = vld [vmem:[#allocation242_spill] sm:$0xff]  ;;  %v12921_v24 = vld [vmem:[#allocation247_spill] sm:$0xff] }
 0x32d   : > { %5553 = vmatprep.mubr.f32.mxu0 %v12741_v8  ;;  %v12876_v8 = vld [vmem:[#allocation199_spill] sm:$0xff] }
 0x32f   : > { %3168 = vmatmul.mubr.f32.gmra.mrb[46].mxu1 %v12868_v50  ;;  %v12922_v50 = vld [vmem:[#allocation243_spill] sm:$0xff] }
 0x330   : > { %5555 = vmatmul.mubr.f32.gmra.mrb[46].mxu0 %v12869_v4  ;;  %3175 = vmatprep.mubr.f32.mxu1 %v12870_v41  ;;  %v12923_v4 = vld [vmem:[#allocation248_spill] sm:$0xff] }
 0x331   : > { %5561 = vmatprep.mubr.f32.mxu0 %v12871_v11  ;;  %v12924_v41 = vld [vmem:[#allocation244_spill] sm:$0xff]  ;;  %v12925_v11 = vld [vmem:[#allocation251_spill] sm:$0xff] }
 0x333   : > { %3178 = vmatmul.mubr.f32.gmra.mrb[48].mxu1 %v12872_v16  ;;  %v12926_v16 = vld [vmem:[#allocation249_spill] sm:$0xff] }
 0x334   : > { %5563 = vmatmul.mubr.f32.gmra.mrb[48].mxu0 %v12873_v39  ;;  %3185 = vmatprep.mubr.f32.mxu1 %v12874_v5  ;;  %v12927_v39 = vld [vmem:[#allocation254_spill] sm:$0xff] }
 0x335   : > { %5569 = vmatprep.mubr.f32.mxu0 %v12746_v52  ;;  %v12883_v52 = vld [vmem:[#allocation205_spill] sm:$0xff]  ;;  %v12928_v5 = vld [vmem:[#allocation250_spill] sm:$0xff] }
 0x337   : > { %3188 = vmatmul.mubr.f32.gmra.mrb[50].mxu1 %v12875_v57  ;;  %v12929_v57 = vld [vmem:[#allocation257_spill] sm:$0xff] }
 0x338   : > { %5571 = vmatmul.mubr.f32.gmra.mrb[50].mxu0 %v12747_v9  ;;  %3195 = vmatprep.mubr.f32.mxu1 %v12876_v8  ;;  %v12885_v9 = vld [vmem:[#allocation207_spill] sm:$0xff]  ;;  %v12930_v8 = vld [vmem:[#allocation252_spill] sm:$0xff] }
 0x339   : > { %5577 = vmatprep.mubr.f32.mxu0 %v12877_v28  ;;  %v12931_v28 = vld [vmem:[#allocation258_spill] sm:$0xff] }
 0x33b   : > { %3198 = vmatmul.mubr.f32.gmra.mrb[52].mxu1 %v12878_v29  ;;  %v12932_v29 = vld [vmem:[#allocation253_spill] sm:$0xff] }
 0x33c   : > { %5579 = vmatmul.mubr.f32.gmra.mrb[52].mxu0 %v12879_v30  ;;  %3205 = vmatprep.mubr.f32.mxu1 %v12880_v19  ;;  %v12933_v30 = vld [vmem:[#allocation260_spill] sm:$0xff]  ;;  %v12934_v19 = vld [vmem:[#allocation255_spill] sm:$0xff] }
 0x33d   : > { %5585 = vmatprep.mubr.f32.mxu0 %v12750_v6  ;;  %v12889_v6 = vld [vmem:[#allocation214_spill] sm:$0xff] }
 0x33f   : > { %3208 = vmatmul.mubr.f32.gmra.mrb[54].mxu1 %v12881_v3  ;;  %v12935_v3 = vld [vmem:[#allocation262_spill] sm:$0xff] }
 0x340   : > { %5587 = vmatmul.mubr.f32.gmra.mrb[54].mxu0 %v12882_v46  ;;  %3215 = vmatprep.mubr.f32.mxu1 %v12883_v52  ;;  %v12936_v46 = vld [vmem:[#allocation256_spill] sm:$0xff]  ;;  %v12937_v52 = vld [vmem:[#allocation263_spill] sm:$0xff] }
 0x341   : > { %5593 = vmatprep.mubr.f32.mxu0 %v12884_v42  ;;  %v12938_v42 = vld [vmem:[#allocation259_spill] sm:$0xff] }
 0x343   : > { %3218 = vmatmul.mubr.f32.gmra.mrb[56].mxu1 %v12885_v9  ;;  %v12939_v9 = vld [vmem:[#allocation264_spill] sm:$0xff] }
 0x344   : > { %5595 = vmatmul.mubr.f32.gmra.mrb[56].mxu0 %v12886_v21  ;;  %3225 = vmatprep.mubr.f32.mxu1 %v12887_v59  ;;  %v12940_v21 = vld [vmem:[#allocation261_spill] sm:$0xff]  ;;  %v12941_v59 = vld [vmem:[#allocation266_spill] sm:$0xff] }
 0x345   : > { %5601 = vmatprep.mubr.f32.mxu0 %v12755_v44  ;;  %v12895_v44 = vld [vmem:[#allocation220_spill] sm:$0xff] }
 0x347   : > { %3228 = vmatmul.mubr.f32.gmra.mrb[58].mxu1 %v12888_v45  ;;  %v12942_v45 = vld [vmem:[#allocation265_spill] sm:$0xff] }
 0x348   : > { %5603 = vmatmul.mubr.f32.gmra.mrb[58].mxu0 %v12756_v17  ;;  %3235 = vmatprep.mubr.f32.mxu1 %v12889_v6  ;;  %v12897_v17 = vld [vmem:[#allocation223_spill] sm:$0xff]  ;;  %v12943_v6 = vld [vmem:[#allocation269_spill] sm:$0xff] }
 0x349   : > { %5609 = vmatprep.mubr.f32.mxu0 %v12757_v55  ;;  %v12899_v55 = vld [vmem:[#allocation226_spill] sm:$0xff] }
 0x34b   : > { %3238 = vmatmul.mubr.f32.gmra.mrb[60].mxu1 %v12890_v36  ;;  %v12944_v36 = vld [vmem:[#allocation267_spill] sm:$0xff] }
 0x34c   : > { %5611 = vmatmul.mubr.f32.gmra.mrb[60].mxu0 %v12758_v53  ;;  %3245 = vmatprep.mubr.f32.mxu1 %v12891_v34  ;;  %v12901_v53 = vld [vmem:[#allocation229_spill] sm:$0xff]  ;;  %v12945_v34 = vld [vmem:[#allocation270_spill] sm:$0xff] }
 0x34d   : > { %5617 = vmatprep.mubr.f32.mxu0 %v12892_v23  ;;  %v12946_v23 = vld [vmem:[#allocation268_spill] sm:$0xff] }
 0x34f   : > { %3248 = vmatmul.mubr.f32.gmra.mrb[62].mxu1 %v12893_v63  ;;  %v12947_v63 = vld [vmem:[#allocation274_spill] sm:$0xff] }
 0x350   : > { %5619 = vmatmul.mubr.f32.gmra.mrb[62].mxu0 %v12894_v22  ;;  %3255 = vmatprep.mubr.f32.mxu1 %v12895_v44  ;;  %v12948_v22 = vld [vmem:[#allocation64_spill] sm:$0xff] }
 0x351   : > { %5625 = vmatprep.mubr.f32.mxu0 %v12896_v7  ;;  %v12949_v44 = vld [vmem:[#allocation276_spill] sm:$0xff]  ;;  %v12950_v7 = vld [vmem:[#allocation271_spill] sm:$0xff] }
 0x353   : > { %3258 = vmatmul.mubr.f32.gmra.mrb[64].mxu1 %v12897_v17  ;;  %v12951_v17 = vld [vmem:[#allocation277_spill] sm:$0xff] }
 0x354   : > { %5627 = vmatmul.mubr.f32.gmra.mrb[64].mxu0 %v12898_v10  ;;  %3265 = vmatprep.mubr.f32.mxu1 %v12899_v55  ;;  %v12952_v10 = vld [vmem:[#allocation272_spill] sm:$0xff]  ;;  %v12953_v55 = vld [vmem:[#allocation278_spill] sm:$0xff] }
 0x355   : > { %5633 = vmatprep.mubr.f32.mxu0 %v12900_v40  ;;  %v12954_v40 = vld [vmem:[#allocation273_spill] sm:$0xff] }
 0x357   : > { %3268 = vmatmul.mubr.f32.gmra.mrb[66].mxu1 %v12901_v53  ;;  %v12955_v53 = vld [vmem:[#allocation279_spill] sm:$0xff] }
 0x358   : > { %5635 = vmatmul.mubr.f32.gmra.mrb[66].mxu0 %v12902_v33  ;;  %3275 = vmatprep.mubr.f32.mxu1 %v12903_v54  ;;  %v12956_v33 = vld [vmem:[#allocation275_spill] sm:$0xff] }
 0x359   : > { %5641 = vmatprep.mubr.f32.mxu0 %v12904_v43  ;;  %v12957_v54 = vld [vmem:[#allocation67_spill] sm:$0xff]  ;;  %v12958_v43 = vld [vmem:[#allocation280_spill] sm:$0xff] }
 0x35b   : > { %3278 = vmatmul.mubr.f32.gmra.mrb[68].mxu1 %v12905_v27  ;;  %v12959_v27 = vld [vmem:[#allocation283_spill] sm:$0xff] }
 0x35c   : > { %5643 = vmatmul.mubr.f32.gmra.mrb[68].mxu0 %v12906_v13  ;;  %3285 = vmatprep.mubr.f32.mxu1 %v12907_v56  ;;  %v12960_v13 = vld [vmem:[#allocation281_spill] sm:$0xff]  ;;  %v12961_v56 = vld [vmem:[#allocation284_spill] sm:$0xff] }
 0x35d   : > { %5649 = vmatprep.mubr.f32.mxu0 %v12908_v31  ;;  %v12962_v31 = vld [vmem:[#allocation282_spill] sm:$0xff] }
 0x35f   : > { %3288 = vmatmul.mubr.f32.gmra.mrb[70].mxu1 %v12909_v60  ;;  %v12963_v60 = vld [vmem:[#allocation72_spill] sm:$0xff] }
 0x360   : > { %5651 = vmatmul.mubr.f32.gmra.mrb[70].mxu0 %v12910_v37  ;;  %3295 = vmatprep.mubr.f32.mxu1 %v12911_v35  ;;  %v12964_v37 = vld [vmem:[#allocation71_spill] sm:$0xff]  ;;  %v12965_v35 = vld [vmem:[#allocation289_spill] sm:$0xff] }
 0x361   : > { %5657 = vmatprep.mubr.f32.mxu0 %v12912_v47  ;;  %v12966_v47 = vld [vmem:[#allocation290_spill] sm:$0xff] }
 0x363   : > { %3298 = vmatmul.mubr.f32.gmra.mrb[72].mxu1 %v12913_v14  ;;  %v12967_v14 = vld [vmem:[#allocation291_spill] sm:$0xff] }
 0x364   : > { %5659 = vmatmul.mubr.f32.gmra.mrb[72].mxu0 %v12914_v25  ;;  %3305 = vmatprep.mubr.f32.mxu1 %v12915_v1  ;;  %v12968_v25 = vld [vmem:[#allocation292_spill] sm:$0xff]  ;;  %v12969_v1 = vld [vmem:[#allocation74_spill] sm:$0xff] }
 0x365   : > { %5665 = vmatprep.mubr.f32.mxu0 %v12916_v61  ;;  %v12970_v61 = vld [vmem:[#allocation293_spill] sm:$0xff] }
 0x367   : > { %3308 = vmatmul.mubr.f32.gmra.mrb[74].mxu1 %v12917_v0  ;;  %v12971_v0 = vld [vmem:[#allocation294_spill] sm:$0xff] }
 0x368   : > { %5667 = vmatmul.mubr.f32.gmra.mrb[74].mxu0 %v12918_v12  ;;  %3315 = vmatprep.mubr.f32.mxu1 %v12919_v15  ;;  %v12972_v12 = vld [vmem:[#allocation73_spill] sm:$0xff]  ;;  %v12976_v15 = vld [vmem:[#allocation295_spill] sm:$0xff] }
 0x369   : > { %5673 = vmatprep.mubr.f32.mxu0 %v12920_v51 }
 0x36b   : > { %3318 = vmatmul.mubr.f32.gmra.mrb[76].mxu1 %v12921_v24 }
 0x36c   : > { %5675 = vmatmul.mubr.f32.gmra.mrb[76].mxu0 %v12922_v50  ;;  %3325 = vmatprep.mubr.f32.mxu1 %v12923_v4  ;;  %v12977_v4 = vld [vmem:[#allocation18_spill] sm:$0xff] }
 0x36d   : > { %5681 = vmatprep.mubr.f32.mxu0 %v12924_v41 }
 0x36f   : > { %3328 = vmatmul.mubr.f32.gmra.mrb[78].mxu1 %v12925_v11  ;;  %v12978_v11 = vld [vmem:[#allocation297_spill] sm:$0xff] }
 0x370   : > { %5683 = vmatmul.mubr.f32.gmra.mrb[78].mxu0 %v12926_v16  ;;  %3335 = vmatprep.mubr.f32.mxu1 %v12927_v39  ;;  %v12979_v39 = vld [vmem:[#allocation300_spill] sm:$0xff] }
 0x371   : > { %5689 = vmatprep.mubr.f32.mxu0 %v12928_v5  ;;  %v12980_v5 = vld [vmem:[#allocation299_spill] sm:$0xff] }
 0x373   : > { %3338 = vmatmul.mubr.f32.gmra.mrb[80].mxu1 %v12929_v57 }
 0x374   : > { %5691 = vmatmul.mubr.f32.gmra.mrb[80].mxu0 %v12930_v8  ;;  %3345 = vmatprep.mubr.f32.mxu1 %v12931_v28 }
 0x375   : > { %5697 = vmatprep.mubr.f32.mxu0 %v12932_v29 }
 0x377   : > { %3348 = vmatmul.mubr.f32.gmra.mrb[82].mxu1 %v12933_v30  ;;  %v12981_v30 = vld [vmem:[#allocation301_spill] sm:$0xff] }
 0x378   : > { %5699 = vmatmul.mubr.f32.gmra.mrb[82].mxu0 %v12934_v19  ;;  %3355 = vmatprep.mubr.f32.mxu1 %v12935_v3  ;;  %v12982_v3 = vld [vmem:[#allocation80_spill] sm:$0xff] }
 0x379   : > { %5705 = vmatprep.mubr.f32.mxu0 %v12936_v46 }
 0x37b   : > { %3358 = vmatmul.mubr.f32.gmra.mrb[84].mxu1 %v12937_v52  ;;  %v12983_v52 = vld [vmem:[#allocation302_spill] sm:$0xff] }
 0x37c   : > { %5707 = vmatmul.mubr.f32.gmra.mrb[84].mxu0 %v12938_v42  ;;  %3365 = vmatprep.mubr.f32.mxu1 %v12939_v9  ;;  %v12984_v42 = vld [vmem:[#allocation81_spill] sm:$0xff] }
 0x37d   : > { %5713 = vmatprep.mubr.f32.mxu0 %v12940_v21 }
 0x37f   : > { %3368 = vmatmul.mubr.f32.gmra.mrb[86].mxu1 %v12941_v59 }
 0x380   : > { %5715 = vmatmul.mubr.f32.gmra.mrb[86].mxu0 %v12942_v45  ;;  %3375 = vmatprep.mubr.f32.mxu1 %v12943_v6  ;;  %v12985_v6 = vld [vmem:[#allocation305_spill] sm:$0xff] }
 0x381   : > { %5721 = vmatprep.mubr.f32.mxu0 %v12944_v36 }
 0x383   : > { %3378 = vmatmul.mubr.f32.gmra.mrb[88].mxu1 %v12945_v34  ;;  %v12986_v34 = vld [vmem:[#allocation303_spill] sm:$0xff] }
 0x384   : > { %5723 = vmatmul.mubr.f32.gmra.mrb[88].mxu0 %v12946_v23  ;;  %3385 = vmatprep.mubr.f32.mxu1 %v12947_v63  ;;  %v12987_v63 = vld [vmem:[#allocation307_spill] sm:$0xff] }
 0x385   : > { %5729 = vmatprep.mubr.f32.mxu0 %v12948_v22  ;;  %v12988_v22 = vld [vmem:[#allocation304_spill] sm:$0xff] }
 0x387   : > { %3388 = vmatmul.mubr.f32.gmra.mrb[90].mxu1 %v12949_v44 }
 0x388   : > { %5731 = vmatmul.mubr.f32.gmra.mrb[90].mxu0 %v12950_v7  ;;  %3395 = vmatprep.mubr.f32.mxu1 %v12951_v17 }
 0x389   : > { %5737 = vmatprep.mubr.f32.mxu0 %v12952_v10 }
 0x38b   : > { %3398 = vmatmul.mubr.f32.gmra.mrb[92].mxu1 %v12953_v55  ;;  %v12989_v55 = vld [vmem:[#allocation309_spill] sm:$0xff] }
 0x38c   : > { %5739 = vmatmul.mubr.f32.gmra.mrb[92].mxu0 %v12954_v40  ;;  %3405 = vmatprep.mubr.f32.mxu1 %v12955_v53 }
 0x38d   : > { %5745 = vmatprep.mubr.f32.mxu0 %v12956_v33  ;;  %v12990_v33 = vld [vmem:[#allocation311_spill] sm:$0xff] }
 0x38f   : > { %3408 = vmatmul.mubr.f32.gmra.mrb[94].mxu1 %v12957_v54  ;;  %v12991_v54 = vld [vmem:[#allocation308_spill] sm:$0xff] }
 0x390   : > { %5747 = vmatmul.mubr.f32.gmra.mrb[94].mxu0 %v12958_v43  ;;  %3415 = vmatprep.mubr.f32.mxu1 %v12959_v27 }
 0x391   : > { %5753 = vmatprep.mubr.f32.mxu0 %v12960_v13 }
 0x393   : > { %3418 = vmatmul.mubr.f32.gmra.mrb[96].mxu1 %v12961_v56 }
 0x394   : > { %5755 = vmatmul.mubr.f32.gmra.mrb[96].mxu0 %v12962_v31  ;;  %3425 = vmatprep.mubr.f32.mxu1 %v12963_v60  ;;  %v12992_v31 = vld [vmem:[#allocation314_spill] sm:$0xff] }
 0x395   : > { %5761 = vmatprep.mubr.f32.mxu0 %v12964_v37  ;;  %v12993_v37 = vld [vmem:[#allocation316_spill] sm:$0xff] }
 0x397   : > { %3428 = vmatmul.mubr.f32.gmra.mrb[98].mxu1 %v12965_v35  ;;  %v12994_v35 = vld [vmem:[#allocation312_spill] sm:$0xff] }
 0x398   : > { %5763 = vmatmul.mubr.f32.gmra.mrb[98].mxu0 %v12796_v32  ;;  %3435 = vmatprep.mubr.f32.mxu1 %v12966_v47  ;;  %v12973_v32 = vld [vmem:[#allocation296_spill] sm:$0xff] }
 0x399   : > { %5769 = vmatprep.mubr.f32.mxu0 %v12797_v49  ;;  %v12974_v49 = vld [vmem:[#allocation78_spill] sm:$0xff] }
 0x39b   : > { %3438 = vmatmul.mubr.f32.gmra.mrb[100].mxu1 %v12967_v14 }
 0x39c   : > { %5771 = vmatmul.mubr.f32.gmra.mrb[100].mxu0 %v12798_v18  ;;  %3445 = vmatprep.mubr.f32.mxu1 %v12968_v25  ;;  %v12975_v18 = vld [vmem:[#allocation298_spill] sm:$0xff] }
 0x39d   : > { %5777 = vmatprep.mubr.f32.mxu0 %v12799_v38 }
 0x39f   : > { %3448 = vmatmul.mubr.f32.gmra.mrb[102].mxu1 %v12969_v1 }
 0x3a0   : > { %5779 = vmatmul.mubr.f32.gmra.mrb[102].mxu0 %v12970_v61  ;;  %3455 = vmatprep.mubr.f32.mxu1 %v12971_v0  ;;  %v12995_v61 = vld [vmem:[#allocation317_spill] sm:$0xff] }
 0x3a1   : > { %5785 = vmatprep.mubr.f32.mxu0 %v12972_v12  ;;  %v12996_v12 = vld [vmem:[#allocation318_spill] sm:$0xff] }
 0x3a3   : > { %3458 = vmatmul.mubr.f32.gmra.mrb[104].mxu1 %v12973_v32  ;;  %v12997_v32 = vld [vmem:[#allocation315_spill] sm:$0xff] }
 0x3a4   : > { %5787 = vmatmul.mubr.f32.gmra.mrb[104].mxu0 %v12974_v49  ;;  %3465 = vmatprep.mubr.f32.mxu1 %v12975_v18 }
 0x3a5   : > { %5793 = vmatprep.mubr.f32.mxu0 %v12976_v15 }
 0x3a6   : > { %v2939_v38 = vpop.f32.mrb[0].mxu1 }
 0x3a7   : > { %v5372_v51 = vpop.f32.mrb[0].mxu0  ;;  %v2941_v50 = vpop.f32.mrb[1].mxu1  ;;  %3468 = vmatmul.mubr.f32.gmra.mrb[106].mxu1 %v12977_v4 }
 0x3a8   : > { %v6941_v24 = vadd.f32 %v5372_v51, %v2939_v38  ;;  %v5374_v41 = vpop.f32.mrb[1].mxu0  ;;  %5795 = vmatmul.mubr.f32.gmra.mrb[106].mxu0 %v12978_v11  ;;  %3475 = vmatprep.mubr.f32.mxu1 %v12979_v39  ;;  %v12998_v51 = vld [vmem:[#allocation320_spill] sm:$0xff]  ;;  %v13000_v39 = vld [vmem:[#allocation323_spill] sm:$0xff] }
 0x3a9   : > { %v6942_v16 = vadd.f32 %v5374_v41, %v2941_v50  ;;  %5801 = vmatprep.mubr.f32.mxu0 %v12980_v5  ;;  %v12999_v50 = vld [vmem:[#allocation321_spill] sm:$0xff] }
 0x3aa   : > { %6268 = vst [vmem:[%s11142_s12] sm:$0xff] %v6941_v24  ;;  %v2949_v57 = vpop.f32.mrb[2].mxu1 }
 0x3ab   : > { %6269 = vst [vmem:[%s11142_s12 + $0x8] sm:$0xff] %v6942_v16  ;;  %v5380_v8 = vpop.f32.mrb[2].mxu0  ;;  %v2951_v29 = vpop.f32.mrb[3].mxu1  ;;  %3478 = vmatmul.mubr.f32.gmra.mrb[108].mxu1 %v12981_v30 }
 0x3ac   : > { %v6943_v28 = vadd.f32 %v5380_v8, %v2949_v57  ;;  %v5382_v19 = vpop.f32.mrb[3].mxu0  ;;  %5803 = vmatmul.mubr.f32.gmra.mrb[108].mxu0 %v12982_v3  ;;  %3485 = vmatprep.mubr.f32.mxu1 %v12983_v52  ;;  %v13001_v57 = vld [vmem:[#allocation325_spill] sm:$0xff]  ;;  %v13002_v8 = vld [vmem:[#allocation322_spill] sm:$0xff] }
 0x3ad   : > { %v6944_v46 = vadd.f32 %v5382_v19, %v2951_v29  ;;  %5809 = vmatprep.mubr.f32.mxu0 %v12984_v42  ;;  %v13003_v19 = vld [vmem:[#allocation327_spill] sm:$0xff]  ;;  %v13005_v52 = vld [vmem:[#allocation329_spill] sm:$0xff]  ;;  %v13006_v42 = vld [vmem:[#allocation326_spill] sm:$0xff] }
 0x3ae   : > { %6270 = vst [vmem:[%s11142_s12 + $0x10] sm:$0xff] %v6943_v28  ;;  %v2959_v9 = vpop.f32.mrb[4].mxu1 }
 0x3af   : > { %6271 = vst [vmem:[%s11142_s12 + $0x18] sm:$0xff] %v6944_v46  ;;  %v5388_v21 = vpop.f32.mrb[4].mxu0  ;;  %v2961_v45 = vpop.f32.mrb[5].mxu1  ;;  %3488 = vmatmul.mubr.f32.gmra.mrb[110].mxu1 %v12985_v6  ;;  %v13004_v46 = vld [vmem:[#allocation324_spill] sm:$0xff]  ;;  %v13007_v6 = vld [vmem:[#allocation331_spill] sm:$0xff] }
 0x3b0   : > { %v6945_v59 = vadd.f32 %v5388_v21, %v2959_v9  ;;  %v5390_v36 = vpop.f32.mrb[5].mxu0  ;;  %5811 = vmatmul.mubr.f32.gmra.mrb[110].mxu0 %v12986_v34  ;;  %3495 = vmatprep.mubr.f32.mxu1 %v12987_v63  ;;  %v13008_v34 = vld [vmem:[#allocation328_spill] sm:$0xff]  ;;  %v13009_v63 = vld [vmem:[#allocation333_spill] sm:$0xff] }
 0x3b1   : > { %v6946_v23 = vadd.f32 %v5390_v36, %v2961_v45  ;;  %5817 = vmatprep.mubr.f32.mxu0 %v12988_v22  ;;  %v13010_v22 = vld [vmem:[#allocation330_spill] sm:$0xff] }
 0x3b2   : > { %6272 = vst [vmem:[%s11142_s12 + $0x20] sm:$0xff] %v6945_v59  ;;  %v2969_v44 = vpop.f32.mrb[6].mxu1 }
 0x3b3   : > { %6273 = vst [vmem:[%s11142_s12 + $0x28] sm:$0xff] %v6946_v23  ;;  %v5396_v7 = vpop.f32.mrb[6].mxu0  ;;  %v2971_v10 = vpop.f32.mrb[7].mxu1  ;;  %3498 = vmatmul.mubr.f32.gmra.mrb[112].mxu1 %v12989_v55  ;;  %v13011_v55 = vld [vmem:[#allocation334_spill] sm:$0xff] }
 0x3b4   : > { %v6947_v17 = vadd.f32 %v5396_v7, %v2969_v44  ;;  %v5398_v40 = vpop.f32.mrb[7].mxu0  ;;  %5819 = vmatmul.mubr.f32.gmra.mrb[112].mxu0 %v12806_v2  ;;  %3505 = vmatprep.mubr.f32.mxu1 %v12990_v33 }
 0x3b5   : > { %v6948_v53 = vadd.f32 %v5398_v40, %v2971_v10  ;;  %5825 = vmatprep.mubr.f32.mxu0 %v12991_v54 }
 0x3b6   : > { %6274 = vst [vmem:[%s11142_s12 + $0x30] sm:$0xff] %v6947_v17  ;;  %v2979_v43 = vpop.f32.mrb[8].mxu1 }
 0x3b7   : > { %6275 = vst [vmem:[%s11142_s12 + $0x38] sm:$0xff] %v6948_v53  ;;  %v5404_v27 = vpop.f32.mrb[8].mxu0  ;;  %v2981_v56 = vpop.f32.mrb[9].mxu1  ;;  %3508 = vmatmul.mubr.f32.gmra.mrb[114].mxu1 %v12992_v31  ;;  %v13012_v53 = vld [vmem:[#allocation332_spill] sm:$0xff] }
 0x3b8   : > { %v6949_v13 = vadd.f32 %v5404_v27, %v2979_v43  ;;  %v5406_v60 = vpop.f32.mrb[9].mxu0  ;;  %5827 = vmatmul.mubr.f32.gmra.mrb[114].mxu0 %v12808_v62  ;;  %3515 = vmatprep.mubr.f32.mxu1 %v12993_v37 }
 0x3b9   : > { %v6950_v2 = vadd.f32 %v5406_v60, %v2981_v56  ;;  %5833 = vmatprep.mubr.f32.mxu0 %v12994_v35 }
 0x3ba   : > { %6276 = vst [vmem:[%s11142_s12 + $0x40] sm:$0xff] %v6949_v13  ;;  %v2989_v47 = vpop.f32.mrb[10].mxu1 }
 0x3bb   : > { %6277 = vst [vmem:[%s11142_s12 + $0x48] sm:$0xff] %v6950_v2  ;;  %v5412_v14 = vpop.f32.mrb[10].mxu0  ;;  %v2991_v1 = vpop.f32.mrb[11].mxu1  ;;  %3518 = vmatmul.mubr.f32.gmra.mrb[116].mxu1 %v12995_v61 }
 0x3bc   : > { %v6951_v25 = vadd.f32 %v5412_v14, %v2989_v47  ;;  %v5414_v0 = vpop.f32.mrb[11].mxu0  ;;  %5835 = vmatmul.mubr.f32.gmra.mrb[116].mxu0 %v12810_v58  ;;  %3525 = vmatprep.mubr.f32.mxu1 %v12996_v12 }
 0x3bd   : > { %v6952_v62 = vadd.f32 %v5414_v0, %v2991_v1  ;;  %5841 = vmatprep.mubr.f32.mxu0 %v12997_v32 }
 0x3be   : > { %6278 = vst [vmem:[%s11142_s12 + $0x50] sm:$0xff] %v6951_v25  ;;  %v2999_v49 = vpop.f32.mrb[12].mxu1 }
 0x3bf   : > { %6279 = vst [vmem:[%s11142_s12 + $0x58] sm:$0xff] %v6952_v62  ;;  %v5420_v18 = vpop.f32.mrb[12].mxu0  ;;  %v3001_v38 = vpop.f32.mrb[13].mxu1  ;;  %3528 = vmatmul.mubr.f32.gmra.mrb[118].mxu1 %v12998_v51 }
 0x3c0   : > { %v6953_v15 = vadd.f32 %v5420_v18, %v2999_v49  ;;  %v5422_v24 = vpop.f32.mrb[13].mxu0  ;;  %5843 = vmatmul.mubr.f32.gmra.mrb[118].mxu0 %v10489_v20  ;;  %3535 = vmatprep.mubr.f32.mxu1 %v12999_v50 }
 0x3c1   : > { %v6954_v58 = vadd.f32 %v5422_v24, %v3001_v38  ;;  %5849 = vmatprep.mubr.f32.mxu0 %v12812_v48 }
 0x3c2   : > { %6280 = vst [vmem:[%s11142_s12 + $0x60] sm:$0xff] %v6953_v15  ;;  %v3009_v4 = vpop.f32.mrb[14].mxu1 }
 0x3c3   : > { %6281 = vst [vmem:[%s11142_s12 + $0x68] sm:$0xff] %v6954_v58  ;;  %v5428_v41 = vpop.f32.mrb[14].mxu0  ;;  %v3011_v16 = vpop.f32.mrb[15].mxu1  ;;  %3538 = vmatmul.mubr.f32.gmra.mrb[120].mxu1 %v13000_v39 }
 0x3c4   : > { %v6955_v11 = vadd.f32 %v5428_v41, %v3009_v4  ;;  %v5430_v5 = vpop.f32.mrb[15].mxu0  ;;  %5851 = vmatmul.mubr.f32.gmra.mrb[120].mxu0 %v10508_v26  ;;  %3545 = vmatprep.mubr.f32.mxu1 %v13001_v57 }
 0x3c5   : > { %v6956_v20 = vadd.f32 %v5430_v5, %v3011_v16  ;;  %5857 = vmatprep.mubr.f32.mxu0 %v13002_v8 }
 0x3c6   : > { %6282 = vst [vmem:[%s11142_s12 + $0x70] sm:$0xff] %v6955_v11  ;;  %v3019_v48 = vpop.f32.mrb[16].mxu1 }
 0x3c7   : > { %6283 = vst [vmem:[%s11142_s12 + $0x78] sm:$0xff] %v6956_v20  ;;  %v5436_v28 = vpop.f32.mrb[16].mxu0  ;;  %v3021_v30 = vpop.f32.mrb[17].mxu1  ;;  %3548 = vmatmul.mubr.f32.gmra.mrb[122].mxu1 %v13003_v19 }
 0x3c8   : > { %v6957_v29 = vadd.f32 %v5436_v28, %v3019_v48  ;;  %v5438_v3 = vpop.f32.mrb[17].mxu0  ;;  %5859 = vmatmul.mubr.f32.gmra.mrb[122].mxu0 %v13004_v46  ;;  %3555 = vmatprep.mubr.f32.mxu1 %v13005_v52 }
 0x3c9   : > { %v6958_v26 = vadd.f32 %v5438_v3, %v3021_v30  ;;  %5865 = vmatprep.mubr.f32.mxu0 %v13006_v42 }
 0x3ca   : > { %6284 = vst [vmem:[%s11142_s12 + $0x80] sm:$0xff] %v6957_v29  ;;  %v3029_v9 = vpop.f32.mrb[18].mxu1 }
 0x3cb   : > { %6285 = vst [vmem:[%s11142_s12 + $0x88] sm:$0xff] %v6958_v26  ;;  %v5444_v21 = vpop.f32.mrb[18].mxu0  ;;  %v3031_v45 = vpop.f32.mrb[19].mxu1  ;;  %3558 = vmatmul.mubr.f32.gmra.mrb[124].mxu1 %v13007_v6 }
 0x3cc   : > { %v6959_v59 = vadd.f32 %v5444_v21, %v3029_v9  ;;  %v5446_v36 = vpop.f32.mrb[19].mxu0  ;;  %5867 = vmatmul.mubr.f32.gmra.mrb[124].mxu0 %v13008_v34  ;;  %3565 = vmatprep.mubr.f32.mxu1 %v13009_v63 }
 0x3cd   : > { %v6960_v23 = vadd.f32 %v5446_v36, %v3031_v45  ;;  %5873 = vmatprep.mubr.f32.mxu0 %v13010_v22 }
 0x3ce   : > { %6286 = vst [vmem:[%s11142_s12 + $0x90] sm:$0xff] %v6959_v59  ;;  %v3039_v44 = vpop.f32.mrb[20].mxu1 }
 0x3cf   : > { %6287 = vst [vmem:[%s11142_s12 + $0x98] sm:$0xff] %v6960_v23  ;;  %v5452_v7 = vpop.f32.mrb[20].mxu0  ;;  %v3041_v10 = vpop.f32.mrb[21].mxu1  ;;  %3568 = vmatmul.mubr.f32.gmra.mrb[126].mxu1 %v13011_v55 }
 0x3d0   : > { %v6961_v17 = vadd.f32 %v5452_v7, %v3039_v44  ;;  %v5454_v40 = vpop.f32.mrb[21].mxu0  ;;  %5875 = vmatmul.mubr.f32.gmra.mrb[126].mxu0 %v13012_v53 }
 0x3d1   : > { %v6962_v33 = vadd.f32 %v5454_v40, %v3041_v10 }
 0x3d2   : > { %6288 = vst [vmem:[%s11142_s12 + $0xa0] sm:$0xff] %v6961_v17  ;;  %v3049_v54 = vpop.f32.mrb[22].mxu1 }
 0x3d3   : > { %6289 = vst [vmem:[%s11142_s12 + $0xa8] sm:$0xff] %v6962_v33  ;;  %v5460_v43 = vpop.f32.mrb[22].mxu0  ;;  %v3051_v13 = vpop.f32.mrb[23].mxu1 }
 0x3d4   : > { %v6963_v27 = vadd.f32 %v5460_v43, %v3049_v54  ;;  %v5462_v56 = vpop.f32.mrb[23].mxu0 }
 0x3d5   : > { %v6964_v31 = vadd.f32 %v5462_v56, %v3051_v13 }
 0x3d6   : > { %6290 = vst [vmem:[%s11142_s12 + $0xb0] sm:$0xff] %v6963_v27  ;;  %v3059_v60 = vpop.f32.mrb[24].mxu1 }
 0x3d7   : > { %6291 = vst [vmem:[%s11142_s12 + $0xb8] sm:$0xff] %v6964_v31  ;;  %v5468_v2 = vpop.f32.mrb[24].mxu0  ;;  %v3061_v35 = vpop.f32.mrb[25].mxu1 }
 0x3d8   : > { %v6965_v37 = vadd.f32 %v5468_v2, %v3059_v60  ;;  %v5470_v47 = vpop.f32.mrb[25].mxu0 }
 0x3d9   : > { %v6966_v14 = vadd.f32 %v5470_v47, %v3061_v35 }
 0x3da   : > { %6292 = vst [vmem:[%s11142_s12 + $0xc0] sm:$0xff] %v6965_v37  ;;  %v3069_v25 = vpop.f32.mrb[26].mxu1 }
 0x3db   : > { %6293 = vst [vmem:[%s11142_s12 + $0xc8] sm:$0xff] %v6966_v14  ;;  %v5476_v1 = vpop.f32.mrb[26].mxu0  ;;  %v3071_v0 = vpop.f32.mrb[27].mxu1 }
 0x3dc   : > { %v6967_v61 = vadd.f32 %v5476_v1, %v3069_v25  ;;  %v5478_v62 = vpop.f32.mrb[27].mxu0 }
 0x3dd   : > { %v6968_v12 = vadd.f32 %v5478_v62, %v3071_v0 }
 0x3de   : > { %6294 = vst [vmem:[%s11142_s12 + $0xd0] sm:$0xff] %v6967_v61  ;;  %v3079_v32 = vpop.f32.mrb[28].mxu1 }
 0x3df   : > { %6295 = vst [vmem:[%s11142_s12 + $0xd8] sm:$0xff] %v6968_v12  ;;  %v5484_v49 = vpop.f32.mrb[28].mxu0  ;;  %v3081_v15 = vpop.f32.mrb[29].mxu1 }
 0x3e0   : > { %v6969_v18 = vadd.f32 %v5484_v49, %v3079_v32  ;;  %v5486_v38 = vpop.f32.mrb[29].mxu0 }
 0x3e1   : > { %v6970_v51 = vadd.f32 %v5486_v38, %v3081_v15 }
 0x3e2   : > { %6296 = vst [vmem:[%s11142_s12 + $0xe0] sm:$0xff] %v6969_v18  ;;  %v3089_v24 = vpop.f32.mrb[30].mxu1 }
 0x3e3   : > { %6297 = vst [vmem:[%s11142_s12 + $0xe8] sm:$0xff] %v6970_v51  ;;  %v5492_v58 = vpop.f32.mrb[30].mxu0  ;;  %v3091_v4 = vpop.f32.mrb[31].mxu1 }
 0x3e4   : > { %v6971_v50 = vadd.f32 %v5492_v58, %v3089_v24  ;;  %v5494_v41 = vpop.f32.mrb[31].mxu0 }
 0x3e5   : > { %v6972_v11 = vadd.f32 %v5494_v41, %v3091_v4 }
 0x3e6   : > { %6298 = vst [vmem:[%s11142_s12 + $0xf0] sm:$0xff] %v6971_v50  ;;  %v3099_v16 = vpop.f32.mrb[32].mxu1 }
 0x3e7   : > { %6299 = vst [vmem:[%s11142_s12 + $0xf8] sm:$0xff] %v6972_v11  ;;  %v5500_v39 = vpop.f32.mrb[32].mxu0  ;;  %v3101_v20 = vpop.f32.mrb[33].mxu1 }
 0x3e8   : > { %v6973_v5 = vadd.f32 %v5500_v39, %v3099_v16  ;;  %v5502_v57 = vpop.f32.mrb[33].mxu0 }
 0x3e9   : > { %v6974_v8 = vadd.f32 %v5502_v57, %v3101_v20 }
 0x3ea   : > { %6300 = vst [vmem:[%s11142_s12 + $0x100] sm:$0xff] %v6973_v5  ;;  %v3109_v48 = vpop.f32.mrb[34].mxu1 }
 0x3eb   : > { %6301 = vst [vmem:[%s11142_s12 + $0x108] sm:$0xff] %v6974_v8  ;;  %v5508_v28 = vpop.f32.mrb[34].mxu0  ;;  %v3111_v30 = vpop.f32.mrb[35].mxu1 }
 0x3ec   : > { %v6975_v29 = vadd.f32 %v5508_v28, %v3109_v48  ;;  %v5510_v19 = vpop.f32.mrb[35].mxu0 }
 0x3ed   : > { %v6976_v3 = vadd.f32 %v5510_v19, %v3111_v30 }
 0x3ee   : > { %6302 = vst [vmem:[%s11142_s12 + $0x110] sm:$0xff] %v6975_v29  ;;  %v3119_v46 = vpop.f32.mrb[36].mxu1 }
 0x3ef   : > { %6303 = vst [vmem:[%s11142_s12 + $0x118] sm:$0xff] %v6976_v3  ;;  %v5516_v26 = vpop.f32.mrb[36].mxu0  ;;  %v3121_v42 = vpop.f32.mrb[37].mxu1 }
 0x3f0   : > { %v6977_v52 = vadd.f32 %v5516_v26, %v3119_v46  ;;  %v5518_v9 = vpop.f32.mrb[37].mxu0 }
 0x3f1   : > { %v6978_v21 = vadd.f32 %v5518_v9, %v3121_v42 }
 0x3f2   : > { %6304 = vst [vmem:[%s11142_s12 + $0x120] sm:$0xff] %v6977_v52  ;;  %v3129_v59 = vpop.f32.mrb[38].mxu1 }
 0x3f3   : > { %6305 = vst [vmem:[%s11142_s12 + $0x128] sm:$0xff] %v6978_v21  ;;  %v5524_v45 = vpop.f32.mrb[38].mxu0  ;;  %v3131_v36 = vpop.f32.mrb[39].mxu1 }
 0x3f4   : > { %v6979_v6 = vadd.f32 %v5524_v45, %v3129_v59  ;;  %v5526_v34 = vpop.f32.mrb[39].mxu0 }
 0x3f5   : > { %v6980_v23 = vadd.f32 %v5526_v34, %v3131_v36 }
 0x3f6   : > { %6306 = vst [vmem:[%s11142_s12 + $0x130] sm:$0xff] %v6979_v6  ;;  %v3139_v63 = vpop.f32.mrb[40].mxu1 }
 0x3f7   : > { %6307 = vst [vmem:[%s11142_s12 + $0x138] sm:$0xff] %v6980_v23  ;;  %v5532_v22 = vpop.f32.mrb[40].mxu0  ;;  %v3141_v7 = vpop.f32.mrb[41].mxu1 }
 0x3f8   : > { %v6981_v44 = vadd.f32 %v5532_v22, %v3139_v63  ;;  %v5534_v17 = vpop.f32.mrb[41].mxu0 }
 0x3f9   : > { %v6982_v10 = vadd.f32 %v5534_v17, %v3141_v7 }
 0x3fa   : > { %6308 = vst [vmem:[%s11142_s12 + $0x140] sm:$0xff] %v6981_v44  ;;  %v3149_v55 = vpop.f32.mrb[42].mxu1 }
 0x3fb   : > { %6309 = vst [vmem:[%s11142_s12 + $0x148] sm:$0xff] %v6982_v10  ;;  %v5540_v40 = vpop.f32.mrb[42].mxu0  ;;  %v3151_v33 = vpop.f32.mrb[43].mxu1 }
 0x3fc   : > { %v6983_v53 = vadd.f32 %v5540_v40, %v3149_v55  ;;  %v5542_v54 = vpop.f32.mrb[43].mxu0 }
 0x3fd   : > { %v6984_v43 = vadd.f32 %v5542_v54, %v3151_v33 }
 0x3fe   : > { %6310 = vst [vmem:[%s11142_s12 + $0x150] sm:$0xff] %v6983_v53  ;;  %v3159_v27 = vpop.f32.mrb[44].mxu1 }
 0x3ff   : > { %6311 = vst [vmem:[%s11142_s12 + $0x158] sm:$0xff] %v6984_v43  ;;  %v5548_v13 = vpop.f32.mrb[44].mxu0  ;;  %v3161_v31 = vpop.f32.mrb[45].mxu1 }
 0x400   : > { %v6985_v56 = vadd.f32 %v5548_v13, %v3159_v27  ;;  %v5550_v60 = vpop.f32.mrb[45].mxu0 }
 0x401   : > { %v6986_v2 = vadd.f32 %v5550_v60, %v3161_v31 }
 0x402   : > { %6312 = vst [vmem:[%s11142_s12 + $0x160] sm:$0xff] %v6985_v56  ;;  %v3169_v37 = vpop.f32.mrb[46].mxu1 }
 0x403   : > { %6313 = vst [vmem:[%s11142_s12 + $0x168] sm:$0xff] %v6986_v2  ;;  %v5556_v35 = vpop.f32.mrb[46].mxu0  ;;  %v3171_v14 = vpop.f32.mrb[47].mxu1 }
 0x404   : > { %v6987_v47 = vadd.f32 %v5556_v35, %v3169_v37  ;;  %v5558_v25 = vpop.f32.mrb[47].mxu0 }
 0x405   : > { %v6988_v1 = vadd.f32 %v5558_v25, %v3171_v14 }
 0x406   : > { %6314 = vst [vmem:[%s11142_s12 + $0x170] sm:$0xff] %v6987_v47  ;;  %v3179_v61 = vpop.f32.mrb[48].mxu1 }
 0x407   : > { %6315 = vst [vmem:[%s11142_s12 + $0x178] sm:$0xff] %v6988_v1  ;;  %v5564_v0 = vpop.f32.mrb[48].mxu0  ;;  %v3181_v12 = vpop.f32.mrb[49].mxu1 }
 0x408   : > { %v6989_v62 = vadd.f32 %v5564_v0, %v3179_v61  ;;  %v5566_v32 = vpop.f32.mrb[49].mxu0 }
 0x409   : > { %v6990_v49 = vadd.f32 %v5566_v32, %v3181_v12 }
 0x40a   : > { %6316 = vst [vmem:[%s11142_s12 + $0x180] sm:$0xff] %v6989_v62  ;;  %v3189_v18 = vpop.f32.mrb[50].mxu1 }
 0x40b   : > { %6317 = vst [vmem:[%s11142_s12 + $0x188] sm:$0xff] %v6990_v49  ;;  %v5572_v15 = vpop.f32.mrb[50].mxu0  ;;  %v3191_v51 = vpop.f32.mrb[51].mxu1 }
 0x40c   : > { %v6991_v38 = vadd.f32 %v5572_v15, %v3189_v18  ;;  %v5574_v24 = vpop.f32.mrb[51].mxu0 }
 0x40d   : > { %v6992_v58 = vadd.f32 %v5574_v24, %v3191_v51 }
 0x40e   : > { %6318 = vst [vmem:[%s11142_s12 + $0x190] sm:$0xff] %v6991_v38  ;;  %v3199_v50 = vpop.f32.mrb[52].mxu1 }
 0x40f   : > { %6319 = vst [vmem:[%s11142_s12 + $0x198] sm:$0xff] %v6992_v58  ;;  %v5580_v4 = vpop.f32.mrb[52].mxu0  ;;  %v3201_v11 = vpop.f32.mrb[53].mxu1 }
 0x410   : > { %v6993_v41 = vadd.f32 %v5580_v4, %v3199_v50  ;;  %v5582_v16 = vpop.f32.mrb[53].mxu0 }
 0x411   : > { %v6994_v39 = vadd.f32 %v5582_v16, %v3201_v11 }
 0x412   : > { %6320 = vst [vmem:[%s11142_s12 + $0x1a0] sm:$0xff] %v6993_v41  ;;  %v3209_v5 = vpop.f32.mrb[54].mxu1 }
 0x413   : > { %6321 = vst [vmem:[%s11142_s12 + $0x1a8] sm:$0xff] %v6994_v39  ;;  %v5588_v20 = vpop.f32.mrb[54].mxu0  ;;  %v3211_v8 = vpop.f32.mrb[55].mxu1 }
 0x414   : > { %v6995_v57 = vadd.f32 %v5588_v20, %v3209_v5  ;;  %v5590_v48 = vpop.f32.mrb[55].mxu0 }
 0x415   : > { %v6996_v28 = vadd.f32 %v5590_v48, %v3211_v8 }
 0x416   : > { %6322 = vst [vmem:[%s11142_s12 + $0x1b0] sm:$0xff] %v6995_v57  ;;  %v3219_v29 = vpop.f32.mrb[56].mxu1 }
 0x417   : > { %6323 = vst [vmem:[%s11142_s12 + $0x1b8] sm:$0xff] %v6996_v28  ;;  %v5596_v30 = vpop.f32.mrb[56].mxu0  ;;  %v3221_v3 = vpop.f32.mrb[57].mxu1 }
 0x418   : > { %v6997_v19 = vadd.f32 %v5596_v30, %v3219_v29  ;;  %v5598_v46 = vpop.f32.mrb[57].mxu0 }
 0x419   : > { %v6998_v26 = vadd.f32 %v5598_v46, %v3221_v3 }
 0x41a   : > { %6324 = vst [vmem:[%s11142_s12 + $0x1c0] sm:$0xff] %v6997_v19  ;;  %v3229_v52 = vpop.f32.mrb[58].mxu1 }
 0x41b   : > { %6325 = vst [vmem:[%s11142_s12 + $0x1c8] sm:$0xff] %v6998_v26  ;;  %v5604_v42 = vpop.f32.mrb[58].mxu0  ;;  %v3231_v21 = vpop.f32.mrb[59].mxu1 }
 0x41c   : > { %v6999_v9 = vadd.f32 %v5604_v42, %v3229_v52  ;;  %v5606_v59 = vpop.f32.mrb[59].mxu0 }
 0x41d   : > { %v7000_v45 = vadd.f32 %v5606_v59, %v3231_v21 }
 0x41e   : > { %6326 = vst [vmem:[%s11142_s12 + $0x1d0] sm:$0xff] %v6999_v9  ;;  %v3239_v6 = vpop.f32.mrb[60].mxu1 }
 0x41f   : > { %6327 = vst [vmem:[%s11142_s12 + $0x1d8] sm:$0xff] %v7000_v45  ;;  %v5612_v36 = vpop.f32.mrb[60].mxu0  ;;  %v3241_v23 = vpop.f32.mrb[61].mxu1 }
 0x420   : > { %v7001_v34 = vadd.f32 %v5612_v36, %v3239_v6  ;;  %v5614_v63 = vpop.f32.mrb[61].mxu0 }
 0x421   : > { %v7002_v22 = vadd.f32 %v5614_v63, %v3241_v23 }
 0x422   : > { %6328 = vst [vmem:[%s11142_s12 + $0x1e0] sm:$0xff] %v7001_v34  ;;  %v3249_v44 = vpop.f32.mrb[62].mxu1 }
 0x423   : > { %6329 = vst [vmem:[%s11142_s12 + $0x1e8] sm:$0xff] %v7002_v22  ;;  %v5620_v7 = vpop.f32.mrb[62].mxu0  ;;  %v3251_v10 = vpop.f32.mrb[63].mxu1 }
 0x424   : > { %v7003_v17 = vadd.f32 %v5620_v7, %v3249_v44  ;;  %v5622_v55 = vpop.f32.mrb[63].mxu0 }
 0x425   : > { %v7004_v40 = vadd.f32 %v5622_v55, %v3251_v10 }
 0x426   : > { %6330 = vst [vmem:[%s11142_s12 + $0x1f0] sm:$0xff] %v7003_v17  ;;  %v3259_v53 = vpop.f32.mrb[64].mxu1 }
 0x427   : > { %6331 = vst [vmem:[%s11142_s12 + $0x1f8] sm:$0xff] %v7004_v40  ;;  %v5628_v33 = vpop.f32.mrb[64].mxu0  ;;  %v3261_v43 = vpop.f32.mrb[65].mxu1 }
 0x428   : > { %v7005_v54 = vadd.f32 %v5628_v33, %v3259_v53  ;;  %v5630_v27 = vpop.f32.mrb[65].mxu0 }
 0x429   : > { %v7006_v13 = vadd.f32 %v5630_v27, %v3261_v43 }
 0x42a   : > { %6332 = vst [vmem:[%s11142_s12 + $0x200] sm:$0xff] %v7005_v54  ;;  %v3269_v56 = vpop.f32.mrb[66].mxu1 }
 0x42b   : > { %6333 = vst [vmem:[%s11142_s12 + $0x208] sm:$0xff] %v7006_v13  ;;  %v5636_v31 = vpop.f32.mrb[66].mxu0  ;;  %v3271_v2 = vpop.f32.mrb[67].mxu1 }
 0x42c   : > { %v7007_v60 = vadd.f32 %v5636_v31, %v3269_v56  ;;  %v5638_v37 = vpop.f32.mrb[67].mxu0 }
 0x42d   : > { %v7008_v35 = vadd.f32 %v5638_v37, %v3271_v2 }
 0x42e   : > { %6334 = vst [vmem:[%s11142_s12 + $0x210] sm:$0xff] %v7007_v60  ;;  %v3279_v47 = vpop.f32.mrb[68].mxu1 }
 0x42f   : > { %6335 = vst [vmem:[%s11142_s12 + $0x218] sm:$0xff] %v7008_v35  ;;  %v5644_v14 = vpop.f32.mrb[68].mxu0  ;;  %v3281_v1 = vpop.f32.mrb[69].mxu1 }
 0x430   : > { %v7009_v25 = vadd.f32 %v5644_v14, %v3279_v47  ;;  %v5646_v61 = vpop.f32.mrb[69].mxu0 }
 0x431   : > { %v7010_v0 = vadd.f32 %v5646_v61, %v3281_v1 }
 0x432   : > { %6336 = vst [vmem:[%s11142_s12 + $0x220] sm:$0xff] %v7009_v25  ;;  %v3289_v62 = vpop.f32.mrb[70].mxu1 }
 0x433   : > { %6337 = vst [vmem:[%s11142_s12 + $0x228] sm:$0xff] %v7010_v0  ;;  %v5652_v12 = vpop.f32.mrb[70].mxu0  ;;  %v3291_v49 = vpop.f32.mrb[71].mxu1 }
 0x434   : > { %v7011_v32 = vadd.f32 %v5652_v12, %v3289_v62  ;;  %v5654_v18 = vpop.f32.mrb[71].mxu0 }
 0x435   : > { %v7012_v15 = vadd.f32 %v5654_v18, %v3291_v49 }
 0x436   : > { %6338 = vst [vmem:[%s11142_s12 + $0x230] sm:$0xff] %v7011_v32  ;;  %v3299_v38 = vpop.f32.mrb[72].mxu1 }
 0x437   : > { %6339 = vst [vmem:[%s11142_s12 + $0x238] sm:$0xff] %v7012_v15  ;;  %v5660_v51 = vpop.f32.mrb[72].mxu0  ;;  %v3301_v58 = vpop.f32.mrb[73].mxu1 }
 0x438   : > { %v7013_v24 = vadd.f32 %v5660_v51, %v3299_v38  ;;  %v5662_v50 = vpop.f32.mrb[73].mxu0 }
 0x439   : > { %v7014_v4 = vadd.f32 %v5662_v50, %v3301_v58 }
 0x43a   : > { %6340 = vst [vmem:[%s11142_s12 + $0x240] sm:$0xff] %v7013_v24  ;;  %v3309_v41 = vpop.f32.mrb[74].mxu1 }
 0x43b   : > { %6341 = vst [vmem:[%s11142_s12 + $0x248] sm:$0xff] %v7014_v4  ;;  %v5668_v11 = vpop.f32.mrb[74].mxu0  ;;  %v3311_v39 = vpop.f32.mrb[75].mxu1 }
 0x43c   : > { %v7015_v16 = vadd.f32 %v5668_v11, %v3309_v41  ;;  %v5670_v5 = vpop.f32.mrb[75].mxu0 }
 0x43d   : > { %v7016_v20 = vadd.f32 %v5670_v5, %v3311_v39 }
 0x43e   : > { %6342 = vst [vmem:[%s11142_s12 + $0x250] sm:$0xff] %v7015_v16  ;;  %v3319_v57 = vpop.f32.mrb[76].mxu1 }
 0x43f   : > { %6343 = vst [vmem:[%s11142_s12 + $0x258] sm:$0xff] %v7016_v20  ;;  %v5676_v8 = vpop.f32.mrb[76].mxu0  ;;  %v3321_v28 = vpop.f32.mrb[77].mxu1 }
 0x440   : > { %v7017_v48 = vadd.f32 %v5676_v8, %v3319_v57  ;;  %v5678_v29 = vpop.f32.mrb[77].mxu0 }
 0x441   : > { %v7018_v30 = vadd.f32 %v5678_v29, %v3321_v28 }
 0x442   : > { %6344 = vst [vmem:[%s11142_s12 + $0x260] sm:$0xff] %v7017_v48  ;;  %v3329_v19 = vpop.f32.mrb[78].mxu1 }
 0x443   : > { %6345 = vst [vmem:[%s11142_s12 + $0x268] sm:$0xff] %v7018_v30  ;;  %v5684_v3 = vpop.f32.mrb[78].mxu0  ;;  %v3331_v26 = vpop.f32.mrb[79].mxu1 }
 0x444   : > { %v7019_v46 = vadd.f32 %v5684_v3, %v3329_v19  ;;  %v5686_v52 = vpop.f32.mrb[79].mxu0 }
 0x445   : > { %v7020_v42 = vadd.f32 %v5686_v52, %v3331_v26 }
 0x446   : > { %6346 = vst [vmem:[%s11142_s12 + $0x270] sm:$0xff] %v7019_v46  ;;  %v3339_v9 = vpop.f32.mrb[80].mxu1 }
 0x447   : > { %6347 = vst [vmem:[%s11142_s12 + $0x278] sm:$0xff] %v7020_v42  ;;  %v5692_v21 = vpop.f32.mrb[80].mxu0  ;;  %v3341_v45 = vpop.f32.mrb[81].mxu1 }
 0x448   : > { %v7021_v59 = vadd.f32 %v5692_v21, %v3339_v9  ;;  %v5694_v6 = vpop.f32.mrb[81].mxu0 }
 0x449   : > { %v7022_v36 = vadd.f32 %v5694_v6, %v3341_v45 }
 0x44a   : > { %6348 = vst [vmem:[%s11142_s12 + $0x280] sm:$0xff] %v7021_v59  ;;  %v3349_v34 = vpop.f32.mrb[82].mxu1 }
 0x44b   : > { %6349 = vst [vmem:[%s11142_s12 + $0x288] sm:$0xff] %v7022_v36  ;;  %v5700_v23 = vpop.f32.mrb[82].mxu0  ;;  %v3351_v22 = vpop.f32.mrb[83].mxu1 }
 0x44c   : > { %v7023_v63 = vadd.f32 %v5700_v23, %v3349_v34  ;;  %v5702_v44 = vpop.f32.mrb[83].mxu0 }
 0x44d   : > { %v7024_v7 = vadd.f32 %v5702_v44, %v3351_v22 }
 0x44e   : > { %6350 = vst [vmem:[%s11142_s12 + $0x290] sm:$0xff] %v7023_v63  ;;  %v3359_v17 = vpop.f32.mrb[84].mxu1 }
 0x44f   : > { %6351 = vst [vmem:[%s11142_s12 + $0x298] sm:$0xff] %v7024_v7  ;;  %v5708_v10 = vpop.f32.mrb[84].mxu0  ;;  %v3361_v40 = vpop.f32.mrb[85].mxu1 }
 0x450   : > { %v7025_v55 = vadd.f32 %v5708_v10, %v3359_v17  ;;  %v5710_v53 = vpop.f32.mrb[85].mxu0 }
 0x451   : > { %v7026_v33 = vadd.f32 %v5710_v53, %v3361_v40 }
 0x452   : > { %6352 = vst [vmem:[%s11142_s12 + $0x2a0] sm:$0xff] %v7025_v55  ;;  %v3369_v54 = vpop.f32.mrb[86].mxu1 }
 0x453   : > { %6353 = vst [vmem:[%s11142_s12 + $0x2a8] sm:$0xff] %v7026_v33  ;;  %v5716_v43 = vpop.f32.mrb[86].mxu0  ;;  %v3371_v13 = vpop.f32.mrb[87].mxu1 }
 0x454   : > { %v7027_v27 = vadd.f32 %v5716_v43, %v3369_v54  ;;  %v5718_v56 = vpop.f32.mrb[87].mxu0 }
 0x455   : > { %v7028_v31 = vadd.f32 %v5718_v56, %v3371_v13 }
 0x456   : > { %6354 = vst [vmem:[%s11142_s12 + $0x2b0] sm:$0xff] %v7027_v27  ;;  %v3379_v60 = vpop.f32.mrb[88].mxu1 }
 0x457   : > { %6355 = vst [vmem:[%s11142_s12 + $0x2b8] sm:$0xff] %v7028_v31  ;;  %v5724_v2 = vpop.f32.mrb[88].mxu0  ;;  %v3381_v35 = vpop.f32.mrb[89].mxu1 }
 0x458   : > { %v7029_v37 = vadd.f32 %v5724_v2, %v3379_v60  ;;  %v5726_v47 = vpop.f32.mrb[89].mxu0 }
 0x459   : > { %v7030_v14 = vadd.f32 %v5726_v47, %v3381_v35 }
 0x45a   : > { %6356 = vst [vmem:[%s11142_s12 + $0x2c0] sm:$0xff] %v7029_v37  ;;  %v3389_v25 = vpop.f32.mrb[90].mxu1 }
 0x45b   : > { %6357 = vst [vmem:[%s11142_s12 + $0x2c8] sm:$0xff] %v7030_v14  ;;  %v5732_v1 = vpop.f32.mrb[90].mxu0  ;;  %v3391_v0 = vpop.f32.mrb[91].mxu1 }
 0x45c   : > { %v7031_v61 = vadd.f32 %v5732_v1, %v3389_v25  ;;  %v5734_v62 = vpop.f32.mrb[91].mxu0 }
 0x45d   : > { %v7032_v12 = vadd.f32 %v5734_v62, %v3391_v0 }
 0x45e   : > { %6358 = vst [vmem:[%s11142_s12 + $0x2d0] sm:$0xff] %v7031_v61  ;;  %v3399_v32 = vpop.f32.mrb[92].mxu1 }
 0x45f   : > { %6359 = vst [vmem:[%s11142_s12 + $0x2d8] sm:$0xff] %v7032_v12  ;;  %v5740_v49 = vpop.f32.mrb[92].mxu0  ;;  %v3401_v15 = vpop.f32.mrb[93].mxu1 }
 0x460   : > { %v7033_v18 = vadd.f32 %v5740_v49, %v3399_v32  ;;  %v5742_v38 = vpop.f32.mrb[93].mxu0 }
 0x461   : > { %v7034_v51 = vadd.f32 %v5742_v38, %v3401_v15 }
 0x462   : > { %6360 = vst [vmem:[%s11142_s12 + $0x2e0] sm:$0xff] %v7033_v18  ;;  %v3409_v24 = vpop.f32.mrb[94].mxu1 }
 0x463   : > { %6361 = vst [vmem:[%s11142_s12 + $0x2e8] sm:$0xff] %v7034_v51  ;;  %v5748_v58 = vpop.f32.mrb[94].mxu0  ;;  %v3411_v4 = vpop.f32.mrb[95].mxu1 }
 0x464   : > { %v7035_v50 = vadd.f32 %v5748_v58, %v3409_v24  ;;  %v5750_v41 = vpop.f32.mrb[95].mxu0 }
 0x465   : > { %v7036_v11 = vadd.f32 %v5750_v41, %v3411_v4 }
 0x466   : > { %6362 = vst [vmem:[%s11142_s12 + $0x2f0] sm:$0xff] %v7035_v50  ;;  %v3419_v16 = vpop.f32.mrb[96].mxu1 }
 0x467   : > { %6363 = vst [vmem:[%s11142_s12 + $0x2f8] sm:$0xff] %v7036_v11  ;;  %v5756_v39 = vpop.f32.mrb[96].mxu0  ;;  %v3421_v20 = vpop.f32.mrb[97].mxu1 }
 0x468   : > { %v7037_v5 = vadd.f32 %v5756_v39, %v3419_v16  ;;  %v5758_v57 = vpop.f32.mrb[97].mxu0 }
 0x469   : > { %v7038_v8 = vadd.f32 %v5758_v57, %v3421_v20 }
 0x46a   : > { %6364 = vst [vmem:[%s11142_s12 + $0x300] sm:$0xff] %v7037_v5  ;;  %v3429_v48 = vpop.f32.mrb[98].mxu1 }
 0x46b   : > { %6365 = vst [vmem:[%s11142_s12 + $0x308] sm:$0xff] %v7038_v8  ;;  %v5764_v28 = vpop.f32.mrb[98].mxu0  ;;  %v3431_v30 = vpop.f32.mrb[99].mxu1 }
 0x46c   : > { %v7039_v29 = vadd.f32 %v5764_v28, %v3429_v48  ;;  %v5766_v19 = vpop.f32.mrb[99].mxu0 }
 0x46d   : > { %v7040_v3 = vadd.f32 %v5766_v19, %v3431_v30 }
 0x46e   : > { %6366 = vst [vmem:[%s11142_s12 + $0x310] sm:$0xff] %v7039_v29  ;;  %v3439_v46 = vpop.f32.mrb[100].mxu1 }
 0x46f   : > { %6367 = vst [vmem:[%s11142_s12 + $0x318] sm:$0xff] %v7040_v3  ;;  %v5772_v26 = vpop.f32.mrb[100].mxu0  ;;  %v3441_v42 = vpop.f32.mrb[101].mxu1 }
 0x470   : > { %v7041_v52 = vadd.f32 %v5772_v26, %v3439_v46  ;;  %v5774_v9 = vpop.f32.mrb[101].mxu0 }
 0x471   : > { %v7042_v21 = vadd.f32 %v5774_v9, %v3441_v42 }
 0x472   : > { %6368 = vst [vmem:[%s11142_s12 + $0x320] sm:$0xff] %v7041_v52  ;;  %v3449_v59 = vpop.f32.mrb[102].mxu1 }
 0x473   : > { %6369 = vst [vmem:[%s11142_s12 + $0x328] sm:$0xff] %v7042_v21  ;;  %v5780_v45 = vpop.f32.mrb[102].mxu0  ;;  %v3451_v36 = vpop.f32.mrb[103].mxu1 }
 0x474   : > { %v7043_v6 = vadd.f32 %v5780_v45, %v3449_v59  ;;  %v5782_v34 = vpop.f32.mrb[103].mxu0 }
 0x475   : > { %v7044_v23 = vadd.f32 %v5782_v34, %v3451_v36 }
 0x476   : > { %6370 = vst [vmem:[%s11142_s12 + $0x330] sm:$0xff] %v7043_v6  ;;  %v3459_v63 = vpop.f32.mrb[104].mxu1 }
 0x477   : > { %6371 = vst [vmem:[%s11142_s12 + $0x338] sm:$0xff] %v7044_v23  ;;  %v5788_v22 = vpop.f32.mrb[104].mxu0  ;;  %v3461_v7 = vpop.f32.mrb[105].mxu1 }
 0x478   : > { %v7045_v44 = vadd.f32 %v5788_v22, %v3459_v63  ;;  %v5790_v17 = vpop.f32.mrb[105].mxu0 }
 0x479   : > { %v7046_v10 = vadd.f32 %v5790_v17, %v3461_v7 }
 0x47a   : > { %6372 = vst [vmem:[%s11142_s12 + $0x340] sm:$0xff] %v7045_v44  ;;  %v3469_v55 = vpop.f32.mrb[106].mxu1 }
 0x47b   : > { %6373 = vst [vmem:[%s11142_s12 + $0x348] sm:$0xff] %v7046_v10  ;;  %v5796_v40 = vpop.f32.mrb[106].mxu0  ;;  %v3471_v33 = vpop.f32.mrb[107].mxu1 }
 0x47c   : > { %v7047_v53 = vadd.f32 %v5796_v40, %v3469_v55  ;;  %v5798_v54 = vpop.f32.mrb[107].mxu0 }
 0x47d   : > { %v7048_v43 = vadd.f32 %v5798_v54, %v3471_v33 }
 0x47e   : > { %6374 = vst [vmem:[%s11142_s12 + $0x350] sm:$0xff] %v7047_v53  ;;  %v3479_v27 = vpop.f32.mrb[108].mxu1 }
 0x47f   : > { %6375 = vst [vmem:[%s11142_s12 + $0x358] sm:$0xff] %v7048_v43  ;;  %v5804_v13 = vpop.f32.mrb[108].mxu0  ;;  %v3481_v31 = vpop.f32.mrb[109].mxu1 }
 0x480   : > { %v7049_v56 = vadd.f32 %v5804_v13, %v3479_v27  ;;  %v5806_v60 = vpop.f32.mrb[109].mxu0 }
 0x481   : > { %v7050_v2 = vadd.f32 %v5806_v60, %v3481_v31 }
 0x482   : > { %6376 = vst [vmem:[%s11142_s12 + $0x360] sm:$0xff] %v7049_v56  ;;  %v3489_v37 = vpop.f32.mrb[110].mxu1 }
 0x483   : > { %6377 = vst [vmem:[%s11142_s12 + $0x368] sm:$0xff] %v7050_v2  ;;  %v5812_v35 = vpop.f32.mrb[110].mxu0  ;;  %v3491_v14 = vpop.f32.mrb[111].mxu1 }
 0x484   : > { %v7051_v47 = vadd.f32 %v5812_v35, %v3489_v37  ;;  %v5814_v25 = vpop.f32.mrb[111].mxu0 }
 0x485   : > { %v7052_v1 = vadd.f32 %v5814_v25, %v3491_v14 }
 0x486   : > { %6378 = vst [vmem:[%s11142_s12 + $0x370] sm:$0xff] %v7051_v47  ;;  %v3499_v61 = vpop.f32.mrb[112].mxu1 }
 0x487   : > { %6379 = vst [vmem:[%s11142_s12 + $0x378] sm:$0xff] %v7052_v1  ;;  %v5820_v0 = vpop.f32.mrb[112].mxu0  ;;  %v3501_v12 = vpop.f32.mrb[113].mxu1 }
 0x488   : > { %v7053_v62 = vadd.f32 %v5820_v0, %v3499_v61  ;;  %v5822_v32 = vpop.f32.mrb[113].mxu0 }
 0x489   : > { %v7054_v49 = vadd.f32 %v5822_v32, %v3501_v12 }
 0x48a   : > { %6380 = vst [vmem:[%s11142_s12 + $0x380] sm:$0xff] %v7053_v62  ;;  %v3509_v18 = vpop.f32.mrb[114].mxu1 }
 0x48b   : > { %6381 = vst [vmem:[%s11142_s12 + $0x388] sm:$0xff] %v7054_v49  ;;  %v5828_v15 = vpop.f32.mrb[114].mxu0  ;;  %v3511_v51 = vpop.f32.mrb[115].mxu1 }
 0x48c   : > { %v7055_v38 = vadd.f32 %v5828_v15, %v3509_v18  ;;  %v5830_v24 = vpop.f32.mrb[115].mxu0 }
 0x48d   : > { %v7056_v58 = vadd.f32 %v5830_v24, %v3511_v51 }
 0x48e   : > { %6382 = vst [vmem:[%s11142_s12 + $0x390] sm:$0xff] %v7055_v38  ;;  %v3519_v50 = vpop.f32.mrb[116].mxu1 }
 0x48f   : > { %6383 = vst [vmem:[%s11142_s12 + $0x398] sm:$0xff] %v7056_v58  ;;  %v5836_v4 = vpop.f32.mrb[116].mxu0  ;;  %v3521_v11 = vpop.f32.mrb[117].mxu1 }
 0x490   : > { %v7057_v41 = vadd.f32 %v5836_v4, %v3519_v50  ;;  %v5838_v16 = vpop.f32.mrb[117].mxu0 }
 0x491   : > { %v7058_v39 = vadd.f32 %v5838_v16, %v3521_v11 }
 0x492   : > { %6384 = vst [vmem:[%s11142_s12 + $0x3a0] sm:$0xff] %v7057_v41  ;;  %v3529_v5 = vpop.f32.mrb[118].mxu1 }
 0x493   : > { %6385 = vst [vmem:[%s11142_s12 + $0x3a8] sm:$0xff] %v7058_v39  ;;  %v5844_v20 = vpop.f32.mrb[118].mxu0  ;;  %v3531_v8 = vpop.f32.mrb[119].mxu1 }
 0x494   : > { %v7059_v57 = vadd.f32 %v5844_v20, %v3529_v5  ;;  %v5846_v48 = vpop.f32.mrb[119].mxu0 }
 0x495   : > { %v7060_v28 = vadd.f32 %v5846_v48, %v3531_v8 }
 0x496   : > { %6386 = vst [vmem:[%s11142_s12 + $0x3b0] sm:$0xff] %v7059_v57  ;;  %v3539_v29 = vpop.f32.mrb[120].mxu1 }
 0x497   : > { %6387 = vst [vmem:[%s11142_s12 + $0x3b8] sm:$0xff] %v7060_v28  ;;  %v5852_v30 = vpop.f32.mrb[120].mxu0  ;;  %v3541_v3 = vpop.f32.mrb[121].mxu1 }
 0x498   : > { %v7061_v19 = vadd.f32 %v5852_v30, %v3539_v29  ;;  %v5854_v46 = vpop.f32.mrb[121].mxu0 }
 0x499   : > { %v7062_v26 = vadd.f32 %v5854_v46, %v3541_v3 }
 0x49a   : > { %6388 = vst [vmem:[%s11142_s12 + $0x3c0] sm:$0xff] %v7061_v19  ;;  %v3549_v52 = vpop.f32.mrb[122].mxu1 }
 0x49b   : > { %6389 = vst [vmem:[%s11142_s12 + $0x3c8] sm:$0xff] %v7062_v26  ;;  %v5860_v42 = vpop.f32.mrb[122].mxu0  ;;  %v3551_v21 = vpop.f32.mrb[123].mxu1 }
 0x49c   : > { %v7063_v9 = vadd.f32 %v5860_v42, %v3549_v52  ;;  %v5862_v59 = vpop.f32.mrb[123].mxu0 }
 0x49d   : > { %v7064_v45 = vadd.f32 %v5862_v59, %v3551_v21 }
 0x49e   : > { %6390 = vst [vmem:[%s11142_s12 + $0x3d0] sm:$0xff] %v7063_v9  ;;  %v3559_v6 = vpop.f32.mrb[124].mxu1 }
 0x49f   : > { %6391 = vst [vmem:[%s11142_s12 + $0x3d8] sm:$0xff] %v7064_v45  ;;  %v5868_v36 = vpop.f32.mrb[124].mxu0  ;;  %v3561_v23 = vpop.f32.mrb[125].mxu1 }
 0x4a0   : > { %v7065_v34 = vadd.f32 %v5868_v36, %v3559_v6  ;;  %v5870_v63 = vpop.f32.mrb[125].mxu0 }
 0x4a1   : > { %v7066_v22 = vadd.f32 %v5870_v63, %v3561_v23 }
 0x4a2   : > { %6392 = vst [vmem:[%s11142_s12 + $0x3e0] sm:$0xff] %v7065_v34  ;;  %v3569_v44 = vpop.f32.mrb[126].mxu1 }
 0x4a3   : > { %6393 = vst [vmem:[%s11142_s12 + $0x3e8] sm:$0xff] %v7066_v22  ;;  %v5876_v7 = vpop.f32.mrb[126].mxu0  ;;  %v3571_v10 = vpop.f32.mrb[127].mxu1 }
 0x4a4   : > { %v7067_v17 = vadd.f32 %v5876_v7, %v3569_v44  ;;  %v5878_v55 = vpop.f32.mrb[127].mxu0 }
 0x4a5   : > { %v7068_v40 = vadd.f32 %v5878_v55, %v3571_v10 }
 0x4a6   : > { %6394 = vst [vmem:[%s11142_s12 + $0x3f0] sm:$0xff] %v7067_v17 }
 0x4a7   : > { %6395 = vst [vmem:[%s11142_s12 + $0x3f8] sm:$0xff] %v7068_v40 }
 0x4a8   : > { %7792 = shalt.err (!%p7789_p11)
}
 0x4a9   : > { %s7793_s28 = scalar_lea.hbm %s11314_s23, 16384  ;;  %s7797_s26 = scalar_lea.hbm %s13015_s8, 98304 }
 0x4aa   : > { %p7794_p2 = scmp.ne.s32.totalorder %s11314_s23, %s7793_s28  ;;  %p7798_p7 = scmp.lt.u32.totalorder %s11314_s23, %s13015_s8 }
 0x4ab   : > { %p7799_p13 = scmp.lt.u32.totalorder %s7797_s26, %s7793_s28  ;;  %p7801_p1 = scmp.lt.u32.totalorder %s7793_s28, %s11314_s23 }
 0x4ac   : > { %p7795_p5 = pnand %p7794_p2, %p13016_p12 }
 0x4ad   : > { %p7800_p6 = por %p7799_p13, %p7798_p7 }
 0x4ae   : > { %p7796_p3 = pneg %p7795_p5 }
 0x4af   : > { %p7802_p9 = por %p7801_p1, %p7800_p6 }
 0x4b1   : > { %p7803_p0 = pnand %p7802_p9, %p7796_p3 }
 0x4b3   : > { %7806 = shalt.err (!%p7803_p0)
}
 0x4b4   : > { %s7937_s19 = smov 256   ;;  %s7938_s4 = smov 768  }
 0x4b5   : > { %s7939_s15 = smov 16  }
 0x4b6   : > { %7586 = dma.vmem_to_hbm [thread:$0]  (%p13016_p12), %s11316_s18, 16384, %s11314_s23, %s11322_s5, %s7937_s19, %s7938_s4, %s7939_s15  }
 0x4b7 PF: > { %p7600_p4 = scmp.ge.s32.totalorder %s7929_s22, 2  ;;  %s6428_s25 = sand.u32 1, %s7877_s9  }
 0x4b8   : > { %p13017_p10 = scmp.ne.s32.totalorder %s12009_s27, 0  ;;  %s6429_s2 = scalar_lea.sflag [#allocation5], %s6428_s25 }
 0x4ba   : > { %p7596_p8 = pnand %p7600_p4, %p13017_p10 }
 0x4bc   : > { %7872 = dma.done.wait (!%p7596_p8), %s6429_s2, 16384  }
 0x4bd   : > { %7874 = vsyncadd (!%p7596_p8), %s6429_s2, 4294950912  ;;  %s21_s22 = sadd.s32 1, %s7929_s22   ;;  %s13019_s18 = sld [smem:[#allocation16_spill]] }
 0x4be   : > { %p11351_p11 = scmp.ge.s32.totalorder %s21_s22, 8   ;;  %s13020_s19 = sld [smem:[#allocation13_spill]] }
 0x4bf   : > { %s13021_s27 = sld [smem:[#allocation14_spill]]  ;;  %s13022_s21 = sld [smem:[#allocation15_spill]] }
 0x4c0   : > { %s13023_s9 = smov %s7881_s10  ;;  %s13024_s10 = smov %s7885_s11 }
 0x4c1   : > { %s13025_s11 = smov %s8149_s30  ;;  %s13026_s12 = smov %s7893_s13 }
 0x4c2   : > { %s13027_s13 = smov %s7897_s14  ;;  %s13029_s15 = smov %s7905_s16 }
 0x4c3   : > { %s13028_s14 = smov %s13019_s18  ;;  %s13030_s16 = smov %s7909_s17 }
 0x4c4   : > { %s13031_s17 = smov %s8146_s0  ;;  %s13032_s18 = smov %s7921_s20 }
 0x4c5   : > { %s13033_s20 = smov %s13021_s27  ;;  %20 = sbr.rel (!%p11351_p11) target bundleno = 15 (0xf), region = 94 }
 0x4cc   :  { %6434 = vsyncpa [#allocation4], 1 }
 0x4cd   :  { %6436 = vsyncpa [#allocation4 + $0x1], 1 }
 0x4ce   :  { %6437 = vsyncpa [#allocation7], 1 }
 0x4cf   :  { %6439 = vsyncpa [#allocation7 + $0x1], 1 }
 0x4d0   :  { %6440 = vsyncpa [#allocation5], 1 }
 0x4d1   :  { %6442 = vsyncpa [#allocation5 + $0x1], 1 }

</bundles_post_ra>
